<compile_context>
chip_gen: v7x
topology: tpu7x:2x2x1
jax: 0.10.0
libtpu: 0.0.40
codegen_flags: <defaults>
</compile_context>

<pallas_src>
import functools

import jax
import jax.numpy as jnp
from jax import lax
from jax.experimental import pallas as pl
from jax.experimental.pallas import tpu as pltpu

EPS = 1e-5  # nn.GroupNorm default


# ----------------------------------------------------------------------------
# Fused kernel
# ----------------------------------------------------------------------------
def _gn_silu(x2, gamma, beta, gmask, inv_cnt):
    """GroupNorm + SiLU on a flattened (HW, C) tile.  Stats in f32."""
    s = jnp.sum(x2, axis=0, keepdims=True)                      # (1, C)
    ss = jnp.sum(x2 * x2, axis=0, keepdims=True)                # (1, C)
    gs = jnp.dot(s, gmask, preferred_element_type=jnp.float32)  # group sums
    gss = jnp.dot(ss, gmask, preferred_element_type=jnp.float32)
    mean = gs * inv_cnt
    var = jnp.maximum(gss * inv_cnt - mean * mean, 0.0)
    y = (x2 - mean) * lax.rsqrt(var + EPS) * gamma + beta
    return y * jax.nn.sigmoid(y)                                # SiLU


def _fused_down_res_kernel(
    x_ref, wmask_ref, gmask_in_ref, gmask_out_ref,
    # block 1
    g1a_ref, be1a_ref, w1a_ref, c1a_ref,
    g2a_ref, be2a_ref, w2a_ref, c2a_ref, scw_ref,
    # block 2
    g1b_ref, be1b_ref, w1b_ref, c1b_ref,
    g2b_ref, be2b_ref, w2b_ref, c2b_ref,
    o_ref, *, Cin, inv_cnt_in, inv_cnt_out):
    H, Wo = x_ref.shape[1], x_ref.shape[2]      # block is (1, H, Wo, 2*Cin)
    Ho = H // 2
    HW = Ho * Wo

    wm = wmask_ref[...]                          # (2, 1, Wo, 1) W-edge masks
    gmask_in = gmask_in_ref[...]
    gmask_out = gmask_out_ref[...]

    # ---- fused 2x2 max pool (W taps were folded into lanes by the wrapper) --
    x = x_ref[0].astype(jnp.float32)             # (H, Wo, 2*Cin)
    xw = jnp.maximum(x[:, :, :Cin], x[:, :, Cin:])     # pool over W
    xw = xw.reshape(Ho, 2, Wo, Cin)
    xpool = jnp.maximum(xw[:, 0], xw[:, 1])      # pool over H -> (Ho, Wo, Cin)
    x2 = xpool.reshape(HW, Cin)                  # flattened pooled input

    # ---- im2col 3x3 conv: one (HW, 9C) x (9C, Cout) MXU matmul -------------
    def conv3x3(h2, w_ref_, c_ref_):
        C = h2.shape[-1]
        h3 = h2.reshape(Ho, Wo, C)
        zrow = jnp.zeros((1, Wo, C), jnp.float32)
        hp = jnp.concatenate([zrow, h3, zrow], axis=0)          # H halo (outer)
        taps = []
        for ky in range(3):
            rows = hp[ky:ky + Ho]                               # (Ho, Wo, C)
            left = pltpu.roll(rows, 1, axis=1) * wm[0]          # tap kx=0
            right = pltpu.roll(rows, Wo - 1, axis=1) * wm[1]    # tap kx=2
            taps += [left, rows, right]                         # kx = 0,1,2
        patches = jnp.concatenate(taps, axis=-1).reshape(HW, 9 * C)
        wf = w_ref_[...]
        y = jnp.dot(patches.astype(wf.dtype), wf,
                    preferred_element_type=jnp.float32)
        return y + c_ref_[...]

    # ---- ResBlock 1 (Cin -> Cout, 1x1-conv shortcut) ------------------------
    h = _gn_silu(x2, g1a_ref[...], be1a_ref[...], gmask_in, inv_cnt_in)
    h = conv3x3(h, w1a_ref, c1a_ref)
    h = _gn_silu(h, g2a_ref[...], be2a_ref[...], gmask_out, inv_cnt_out)
    # TODO(synk): Dropout(p=0.1) is eval-mode identity here; train mode would
    # mask via pltpu.prng_seed / pltpu.prng_random_bits.
    h = conv3x3(h, w2a_ref, c2a_ref)             # bias already includes sc bias
    scw = scw_ref[...]
    h1 = h + jnp.dot(x2.astype(scw.dtype), scw,
                     preferred_element_type=jnp.float32)

    # ---- ResBlock 2 (Cout -> Cout, identity shortcut: plain add) ------------
    h = _gn_silu(h1, g1b_ref[...], be1b_ref[...], gmask_out, inv_cnt_out)
    h = conv3x3(h, w1b_ref, c1b_ref)
    h = _gn_silu(h, g2b_ref[...], be2b_ref[...], gmask_out, inv_cnt_out)
    h = conv3x3(h, w2b_ref, c2b_ref)
    h2 = h + h1

    o_ref[0] = h2.reshape(Ho, Wo, -1).astype(o_ref.dtype)


# ----------------------------------------------------------------------------
# Wrapper: one pallas_call per forward pass
# ----------------------------------------------------------------------------
def down_res_groupnorm_silu_d(x_nchw, params, n_groups,
                              matmul_dtype=jnp.float32):
    N, Cin, H, W = x_nchw.shape
    Ho, Wo = H // 2, W // 2
    b1, b2 = params["block1"], params["block2"]
    Cout = b1["conv1_w"].shape[-1]

    x = jnp.transpose(x_nchw, (0, 2, 3, 1))      # NCHW -> NHWC
    xr = x.reshape(N, H, Wo, 2 * Cin)            # fold W pool taps into lanes

    # W-edge validity masks for the dx=-1 / dx=+1 conv taps (built once).
    xi = jnp.arange(Wo)
    wmask = jnp.stack([(xi >= 1), (xi <= Wo - 2)]).astype(jnp.float32)
    wmask = wmask.reshape(2, 1, Wo, 1)

    def gmask(C):                                # group-membership mask (C, C)
        ids = jnp.arange(C) // (C // n_groups)
        return (ids[:, None] == ids[None, :]).astype(jnp.float32)

    def wflat(w):                                # (3,3,Ci,Co) -> (9*Ci, Co)
        return w.reshape(-1, w.shape[-1]).astype(matmul_dtype)

    def row(v):                                  # per-channel vec -> (1, C) f32
        return v.reshape(1, -1).astype(jnp.float32)

    inputs = (
        xr, wmask, gmask(Cin), gmask(Cout),
        # block 1
        row(b1["gn1_w"]), row(b1["gn1_b"]), wflat(b1["conv1_w"]), row(b1["conv1_b"]),
        row(b1["gn2_w"]), row(b1["gn2_b"]), wflat(b1["conv2_w"]),
        row(b1["conv2_b"] + b1["sc_b"]),                 # fold shortcut bias
        b1["sc_w"].astype(matmul_dtype),
        # block 2 (identity shortcut -> no sc params)
        row(b2["gn1_w"]), row(b2["gn1_b"]), wflat(b2["conv1_w"]), row(b2["conv1_b"]),
        row(b2["gn2_w"]), row(b2["gn2_b"]), wflat(b2["conv2_w"]), row(b2["conv2_b"]),
    )

    def const_spec(a):
        nd = a.ndim
        return pl.BlockSpec(a.shape, lambda n, _nd=nd: (0,) * _nd)

    in_specs = [pl.BlockSpec((1, H, Wo, 2 * Cin), lambda n: (n, 0, 0, 0))]
    in_specs += [const_spec(a) for a in inputs[1:]]

    kernel = functools.partial(
        _fused_down_res_kernel,
        Cin=Cin,
        inv_cnt_in=1.0 / (Ho * Wo * (Cin // n_groups)),
        inv_cnt_out=1.0 / (Ho * Wo * (Cout // n_groups)),
    )

    out = pl.pallas_call(
        kernel,
        out_shape=jax.ShapeDtypeStruct((N, Ho, Wo, Cout), x_nchw.dtype),
        grid=(N,),
        in_specs=in_specs,
        out_specs=pl.BlockSpec((1, Ho, Wo, Cout), lambda n: (n, 0, 0, 0)),
        compiler_params=pltpu.CompilerParams(
            dimension_semantics=("parallel",)),
    )(*inputs)
    return jnp.transpose(out, (0, 3, 1, 2))      # NHWC -> NCHW


# ----------------------------------------------------------------------------
# Deterministic params + pure-JAX reference for the correctness check
# ----------------------------------------------------------------------------
def init_params(key, cin, cout):
    ks = jax.random.split(key, 18)
    conv = lambda k, ci, co: jax.random.normal(k, (3, 3, ci, co), jnp.float32) * 0.1
    vec = lambda k, c: jax.random.normal(k, (c,), jnp.float32) * 0.1
    block1 = dict(
        gn1_w=1.0 + vec(ks[0], cin), gn1_b=vec(ks[1], cin),
        conv1_w=conv(ks[2], cin, cout), conv1_b=vec(ks[3], cout),
        gn2_w=1.0 + vec(ks[4], cout), gn2_b=vec(ks[5], cout),
        conv2_w=conv(ks[6], cout, cout), conv2_b=vec(ks[7], cout),
        sc_w=jax.random.normal(ks[8], (cin, cout), jnp.float32) * 0.1,
        sc_b=vec(ks[9], cout))
    block2 = dict(
        gn1_w=1.0 + vec(ks[10], cout), gn1_b=vec(ks[11], cout),
        conv1_w=conv(ks[12], cout, cout), conv1_b=vec(ks[13], cout),
        gn2_w=1.0 + vec(ks[14], cout), gn2_b=vec(ks[15], cout),
        conv2_w=conv(ks[16], cout, cout), conv2_b=vec(ks[17], cout))
    return dict(block1=block1, block2=block2)


def _ref_gn_silu(x, gamma, beta, G):
    N, H, W, C = x.shape
    xg = x.reshape(N, H, W, G, C // G)
    mean = xg.mean(axis=(1, 2, 4), keepdims=True)
    var = ((xg - mean) ** 2).mean(axis=(1, 2, 4), keepdims=True)
    y = ((xg - mean) / jnp.sqrt(var + EPS)).reshape(N, H, W, C) * gamma + beta
    return y * jax.nn.sigmoid(y)


def _ref_conv3x3(x, w, b):
    return lax.conv_general_dilated(
        x, w, (1, 1), "SAME", dimension_numbers=("NHWC", "HWIO", "NHWC")) + b


def _ref_res_block(x, p, G):
    h = _ref_gn_silu(x, p["gn1_w"], p["gn1_b"], G)
    h = _ref_conv3x3(h, p["conv1_w"], p["conv1_b"])
    h = _ref_gn_silu(h, p["gn2_w"], p["gn2_b"], G)
    h = _ref_conv3x3(h, p["conv2_w"], p["conv2_b"])
    if "sc_w" in p:
        sc = jnp.einsum("nhwc,cd->nhwd", x, p["sc_w"]) + p["sc_b"]
    else:
        sc = x
    return h + sc


def _ref_forward(x_nchw, params, G):
    x = jnp.transpose(x_nchw, (0, 2, 3, 1))
    N, H, W, C = x.shape
    x = x.reshape(N, H // 2, 2, W // 2, 2, C).max(axis=(2, 4))
    x = _ref_res_block(x, params["block1"], G)
    x = _ref_res_block(x, params["block2"], G)
    return jnp.transpose(x, (0, 3, 1, 2))


# ----------------------------------------------------------------------------
if __name__ == "__main__":
    N, C_IN, C_OUT, H, W, N_GROUPS = 2, 8, 16, 16, 16, 4
    key = jax.random.PRNGKey(0)
    kx, kp = jax.random.split(key)
    x = jax.random.normal(kx, (N, C_IN, H, W), jnp.float32)   # NCHW like PyTorch
    params = init_params(kp, C_IN, C_OUT)

    ref = jax.block_until_ready(_ref_forward(x, params, N_GROUPS))

    # f32 path (all generations)
    out = jax.block_until_ready(down_res_groupnorm_silu_d(x, params, N_GROUPS))
    assert out.shape == (N, C_OUT, H // 2, W // 2), out.shape
    assert jnp.allclose(out, ref, atol=2e-4, rtol=2e-4), \
        float(jnp.max(jnp.abs(out - ref)))

    # bf16 MXU-operand path (v6e/v7x win; f32 accumulation + f32 GN stats)
    out_bf16 = jax.block_until_ready(
        down_res_groupnorm_silu_d(x, params, N_GROUPS,
                                  matmul_dtype=jnp.bfloat16))
    assert jnp.allclose(out_bf16, ref, atol=1e-1, rtol=1e-1), \
        float(jnp.max(jnp.abs(out_bf16 - ref)))

    print("KERNEL_OK")
</pallas_src>

<mosaic_0001>
module attributes {stable_mosaic.version = 11 : i64} {
  func.func @_fused_down_res_kernel(%arg0: i32, %arg1: memref<1x16x8x16xf32, #tpu.memory_space<vmem>>, %arg2: memref<2x1x8x1xf32, #tpu.memory_space<vmem>>, %arg3: memref<8x8xf32, #tpu.memory_space<vmem>>, %arg4: memref<16x16xf32, #tpu.memory_space<vmem>>, %arg5: memref<1x8xf32, #tpu.memory_space<vmem>>, %arg6: memref<1x8xf32, #tpu.memory_space<vmem>>, %arg7: memref<72x16xf32, #tpu.memory_space<vmem>>, %arg8: memref<1x16xf32, #tpu.memory_space<vmem>>, %arg9: memref<1x16xf32, #tpu.memory_space<vmem>>, %arg10: memref<1x16xf32, #tpu.memory_space<vmem>>, %arg11: memref<144x16xf32, #tpu.memory_space<vmem>>, %arg12: memref<1x16xf32, #tpu.memory_space<vmem>>, %arg13: memref<8x16xf32, #tpu.memory_space<vmem>>, %arg14: memref<1x16xf32, #tpu.memory_space<vmem>>, %arg15: memref<1x16xf32, #tpu.memory_space<vmem>>, %arg16: memref<144x16xf32, #tpu.memory_space<vmem>>, %arg17: memref<1x16xf32, #tpu.memory_space<vmem>>, %arg18: memref<1x16xf32, #tpu.memory_space<vmem>>, %arg19: memref<1x16xf32, #tpu.memory_space<vmem>>, %arg20: memref<144x16xf32, #tpu.memory_space<vmem>>, %arg21: memref<1x16xf32, #tpu.memory_space<vmem>>, %arg22: memref<1x8x8x16xf32, #tpu.memory_space<vmem>>) attributes {dimension_semantics = [#tpu.dimension_semantics<parallel>], iteration_bounds = array<i64: 2>, scalar_prefetch = 0 : i64, scratch_operands = 0 : i64, tpu.core_type = #tpu.core_type<tc>, window_params = [{transform_indices = @transform_0, window_bounds = array<i64: 1, 16, 8, 16>}, {pipeline_mode = #tpu.pipeline_mode<synchronous>, transform_indices = @transform_1, window_bounds = array<i64: 2, 1, 8, 1>}, {pipeline_mode = #tpu.pipeline_mode<synchronous>, transform_indices = @transform_2, window_bounds = array<i64: 8, 8>}, {pipeline_mode = #tpu.pipeline_mode<synchronous>, transform_indices = @transform_3, window_bounds = array<i64: 16, 16>}, {pipeline_mode = #tpu.pipeline_mode<synchronous>, transform_indices = @transform_4, window_bounds = array<i64: 1, 8>}, {pipeline_mode = #tpu.pipeline_mode<synchronous>, transform_indices = @transform_5, window_bounds = array<i64: 1, 8>}, {pipeline_mode = #tpu.pipeline_mode<synchronous>, transform_indices = @transform_6, window_bounds = array<i64: 72, 16>}, {pipeline_mode = #tpu.pipeline_mode<synchronous>, transform_indices = @transform_7, window_bounds = array<i64: 1, 16>}, {pipeline_mode = #tpu.pipeline_mode<synchronous>, transform_indices = @transform_8, window_bounds = array<i64: 1, 16>}, {pipeline_mode = #tpu.pipeline_mode<synchronous>, transform_indices = @transform_9, window_bounds = array<i64: 1, 16>}, {pipeline_mode = #tpu.pipeline_mode<synchronous>, transform_indices = @transform_10, window_bounds = array<i64: 144, 16>}, {pipeline_mode = #tpu.pipeline_mode<synchronous>, transform_indices = @transform_11, window_bounds = array<i64: 1, 16>}, {pipeline_mode = #tpu.pipeline_mode<synchronous>, transform_indices = @transform_12, window_bounds = array<i64: 8, 16>}, {pipeline_mode = #tpu.pipeline_mode<synchronous>, transform_indices = @transform_13, window_bounds = array<i64: 1, 16>}, {pipeline_mode = #tpu.pipeline_mode<synchronous>, transform_indices = @transform_14, window_bounds = array<i64: 1, 16>}, {pipeline_mode = #tpu.pipeline_mode<synchronous>, transform_indices = @transform_15, window_bounds = array<i64: 144, 16>}, {pipeline_mode = #tpu.pipeline_mode<synchronous>, transform_indices = @transform_16, window_bounds = array<i64: 1, 16>}, {pipeline_mode = #tpu.pipeline_mode<synchronous>, transform_indices = @transform_17, window_bounds = array<i64: 1, 16>}, {pipeline_mode = #tpu.pipeline_mode<synchronous>, transform_indices = @transform_18, window_bounds = array<i64: 1, 16>}, {pipeline_mode = #tpu.pipeline_mode<synchronous>, transform_indices = @transform_19, window_bounds = array<i64: 144, 16>}, {pipeline_mode = #tpu.pipeline_mode<synchronous>, transform_indices = @transform_20, window_bounds = array<i64: 1, 16>}, {transform_indices = @transform_21, window_bounds = array<i64: 1, 8, 8, 16>}]} {
    %c0 = arith.constant 0 : index
    %c0_0 = arith.constant 0 : index
    %c0_1 = arith.constant 0 : index
    %c0_2 = arith.constant 0 : index
    %0 = vector.load %arg2[%c0, %c0_0, %c0_1, %c0_2] : memref<2x1x8x1xf32, #tpu.memory_space<vmem>>, vector<2x1x8x1xf32>
    %c0_3 = arith.constant 0 : index
    %c0_4 = arith.constant 0 : index
    %1 = vector.load %arg3[%c0_3, %c0_4] : memref<8x8xf32, #tpu.memory_space<vmem>>, vector<8x8xf32>
    %c0_5 = arith.constant 0 : index
    %c0_6 = arith.constant 0 : index
    %2 = vector.load %arg4[%c0_5, %c0_6] : memref<16x16xf32, #tpu.memory_space<vmem>>, vector<16x16xf32>
    %c0_7 = arith.constant 0 : index
    %c0_8 = arith.constant 0 : index
    %c0_9 = arith.constant 0 : index
    %c0_10 = arith.constant 0 : index
    %3 = vector.load %arg1[%c0_7, %c0_8, %c0_9, %c0_10] : memref<1x16x8x16xf32, #tpu.memory_space<vmem>>, vector<1x16x8x16xf32>
    %4 = vector.shape_cast %3 : vector<1x16x8x16xf32> to vector<16x8x16xf32>
    %5 = vector.extract_strided_slice %4 {offsets = [0, 0, 0], sizes = [16, 8, 8], strides = [1, 1, 1]} : vector<16x8x16xf32> to vector<16x8x8xf32>
    %6 = vector.extract_strided_slice %4 {offsets = [0, 0, 8], sizes = [16, 8, 8], strides = [1, 1, 1]} : vector<16x8x16xf32> to vector<16x8x8xf32>
    %7 = arith.maximumf %5, %6 : vector<16x8x8xf32>
    %8 = vector.shape_cast %7 : vector<16x8x8xf32> to vector<8x2x8x8xf32>
    %9 = vector.extract_strided_slice %8 {offsets = [0, 0, 0, 0], sizes = [8, 1, 8, 8], strides = [1, 1, 1, 1]} : vector<8x2x8x8xf32> to vector<8x1x8x8xf32>
    %10 = vector.shape_cast %9 : vector<8x1x8x8xf32> to vector<8x8x8xf32>
    %11 = vector.extract_strided_slice %8 {offsets = [0, 1, 0, 0], sizes = [8, 1, 8, 8], strides = [1, 1, 1, 1]} : vector<8x2x8x8xf32> to vector<8x1x8x8xf32>
    %12 = vector.shape_cast %11 : vector<8x1x8x8xf32> to vector<8x8x8xf32>
    %13 = arith.maximumf %10, %12 : vector<8x8x8xf32>
    %14 = vector.shape_cast %13 : vector<8x8x8xf32> to vector<64x8xf32>
    %c0_11 = arith.constant 0 : index
    %c0_12 = arith.constant 0 : index
    %15 = vector.load %arg5[%c0_11, %c0_12] : memref<1x8xf32, #tpu.memory_space<vmem>>, vector<1x8xf32>
    %c0_13 = arith.constant 0 : index
    %c0_14 = arith.constant 0 : index
    %16 = vector.load %arg6[%c0_13, %c0_14] : memref<1x8xf32, #tpu.memory_space<vmem>>, vector<1x8xf32>
    %cst = arith.constant dense<0.000000e+00> : vector<8xf32>
    %17 = vector.multi_reduction <add>, %14, %cst [0] : vector<64x8xf32> to vector<8xf32>
    %18 = vector.shape_cast %17 : vector<8xf32> to vector<1x8xf32>
    %19 = arith.mulf %14, %14 : vector<64x8xf32>
    %cst_15 = arith.constant dense<0.000000e+00> : vector<8xf32>
    %20 = vector.multi_reduction <add>, %19, %cst_15 [0] : vector<64x8xf32> to vector<8xf32>
    %21 = vector.shape_cast %20 : vector<8xf32> to vector<1x8xf32>
    %cst_16 = arith.constant dense<0.000000e+00> : vector<1x8xf32>
    %22 = tpu.matmul %18, %1, %cst_16 {dimension_numbers = #tpu.dot_dimension_numbers<[1], [0], [0], [1], [0, 0, 1, 1], [], []>} : vector<1x8xf32>, vector<8x8xf32>, vector<1x8xf32> -> vector<1x8xf32>
    %cst_17 = arith.constant dense<0.000000e+00> : vector<1x8xf32>
    %23 = tpu.matmul %21, %1, %cst_17 {dimension_numbers = #tpu.dot_dimension_numbers<[1], [0], [0], [1], [0, 0, 1, 1], [], []>} : vector<1x8xf32>, vector<8x8xf32>, vector<1x8xf32> -> vector<1x8xf32>
    %cst_18 = arith.constant 7.812500e-03 : f32
    %24 = vector.broadcast %cst_18 : f32 to vector<1x8xf32>
    %25 = arith.mulf %22, %24 : vector<1x8xf32>
    %cst_19 = arith.constant 7.812500e-03 : f32
    %26 = vector.broadcast %cst_19 : f32 to vector<1x8xf32>
    %27 = arith.mulf %23, %26 : vector<1x8xf32>
    %28 = arith.mulf %25, %25 : vector<1x8xf32>
    %29 = arith.subf %27, %28 : vector<1x8xf32>
    %cst_20 = arith.constant 0.000000e+00 : f32
    %30 = vector.broadcast %cst_20 : f32 to vector<1x8xf32>
    %31 = arith.maximumf %29, %30 : vector<1x8xf32>
    %32 = vector.broadcast %25 : vector<1x8xf32> to vector<64x8xf32>
    %33 = arith.subf %14, %32 : vector<64x8xf32>
    %cst_21 = arith.constant 9.99999974E-6 : f32
    %34 = vector.broadcast %cst_21 : f32 to vector<1x8xf32>
    %35 = arith.addf %31, %34 : vector<1x8xf32>
    %36 = math.rsqrt %35 : vector<1x8xf32>
    %37 = vector.broadcast %36 : vector<1x8xf32> to vector<64x8xf32>
    %38 = arith.mulf %33, %37 : vector<64x8xf32>
    %39 = vector.broadcast %15 : vector<1x8xf32> to vector<64x8xf32>
    %40 = arith.mulf %38, %39 : vector<64x8xf32>
    %41 = vector.broadcast %16 : vector<1x8xf32> to vector<64x8xf32>
    %42 = arith.addf %40, %41 : vector<64x8xf32>
    %43 = arith.negf %42 : vector<64x8xf32>
    %44 = math.exp %43 : vector<64x8xf32>
    %cst_22 = arith.constant 1.000000e+00 : f32
    %45 = vector.broadcast %cst_22 : f32 to vector<64x8xf32>
    %46 = arith.addf %45, %44 : vector<64x8xf32>
    %47 = arith.divf %45, %46 : vector<64x8xf32>
    %48 = arith.mulf %42, %47 : vector<64x8xf32>
    %49 = vector.shape_cast %48 : vector<64x8xf32> to vector<8x8x8xf32>
    %cst_23 = arith.constant 0.000000e+00 : f32
    %50 = vector.broadcast %cst_23 : f32 to vector<1x8x8xf32>
    %51 = tpu.concatenate %50, %49, %50 in 0 : vector<1x8x8xf32>, vector<8x8x8xf32>, vector<1x8x8xf32> -> vector<10x8x8xf32>
    %52 = vector.extract_strided_slice %51 {offsets = [0, 0, 0], sizes = [8, 8, 8], strides = [1, 1, 1]} : vector<10x8x8xf32> to vector<8x8x8xf32>
    %c1_i32 = arith.constant 1 : i32
    %53 = tpu.dynamic_rotate %52 by %c1_i32 dim 1 : vector<8x8x8xf32>, i32 -> vector<8x8x8xf32>
    %54 = vector.extract_strided_slice %0 {offsets = [0, 0, 0, 0], sizes = [1, 1, 8, 1], strides = [1, 1, 1, 1]} : vector<2x1x8x1xf32> to vector<1x1x8x1xf32>
    %55 = vector.shape_cast %54 : vector<1x1x8x1xf32> to vector<1x8x1xf32>
    %56 = vector.broadcast %55 : vector<1x8x1xf32> to vector<8x8x8xf32>
    %57 = arith.mulf %53, %56 : vector<8x8x8xf32>
    %c7_i32 = arith.constant 7 : i32
    %58 = tpu.dynamic_rotate %52 by %c7_i32 dim 1 : vector<8x8x8xf32>, i32 -> vector<8x8x8xf32>
    %59 = vector.extract_strided_slice %0 {offsets = [1, 0, 0, 0], sizes = [1, 1, 8, 1], strides = [1, 1, 1, 1]} : vector<2x1x8x1xf32> to vector<1x1x8x1xf32>
    %60 = vector.shape_cast %59 : vector<1x1x8x1xf32> to vector<1x8x1xf32>
    %61 = vector.broadcast %60 : vector<1x8x1xf32> to vector<8x8x8xf32>
    %62 = arith.mulf %58, %61 : vector<8x8x8xf32>
    %63 = vector.extract_strided_slice %51 {offsets = [1, 0, 0], sizes = [8, 8, 8], strides = [1, 1, 1]} : vector<10x8x8xf32> to vector<8x8x8xf32>
    %c1_i32_24 = arith.constant 1 : i32
    %64 = tpu.dynamic_rotate %63 by %c1_i32_24 dim 1 : vector<8x8x8xf32>, i32 -> vector<8x8x8xf32>
    %65 = vector.extract_strided_slice %0 {offsets = [0, 0, 0, 0], sizes = [1, 1, 8, 1], strides = [1, 1, 1, 1]} : vector<2x1x8x1xf32> to vector<1x1x8x1xf32>
    %66 = vector.shape_cast %65 : vector<1x1x8x1xf32> to vector<1x8x1xf32>
    %67 = vector.broadcast %66 : vector<1x8x1xf32> to vector<8x8x8xf32>
    %68 = arith.mulf %64, %67 : vector<8x8x8xf32>
    %c7_i32_25 = arith.constant 7 : i32
    %69 = tpu.dynamic_rotate %63 by %c7_i32_25 dim 1 : vector<8x8x8xf32>, i32 -> vector<8x8x8xf32>
    %70 = vector.extract_strided_slice %0 {offsets = [1, 0, 0, 0], sizes = [1, 1, 8, 1], strides = [1, 1, 1, 1]} : vector<2x1x8x1xf32> to vector<1x1x8x1xf32>
    %71 = vector.shape_cast %70 : vector<1x1x8x1xf32> to vector<1x8x1xf32>
    %72 = vector.broadcast %71 : vector<1x8x1xf32> to vector<8x8x8xf32>
    %73 = arith.mulf %69, %72 : vector<8x8x8xf32>
    %74 = vector.extract_strided_slice %51 {offsets = [2, 0, 0], sizes = [8, 8, 8], strides = [1, 1, 1]} : vector<10x8x8xf32> to vector<8x8x8xf32>
    %c1_i32_26 = arith.constant 1 : i32
    %75 = tpu.dynamic_rotate %74 by %c1_i32_26 dim 1 : vector<8x8x8xf32>, i32 -> vector<8x8x8xf32>
    %76 = vector.extract_strided_slice %0 {offsets = [0, 0, 0, 0], sizes = [1, 1, 8, 1], strides = [1, 1, 1, 1]} : vector<2x1x8x1xf32> to vector<1x1x8x1xf32>
    %77 = vector.shape_cast %76 : vector<1x1x8x1xf32> to vector<1x8x1xf32>
    %78 = vector.broadcast %77 : vector<1x8x1xf32> to vector<8x8x8xf32>
    %79 = arith.mulf %75, %78 : vector<8x8x8xf32>
    %c7_i32_27 = arith.constant 7 : i32
    %80 = tpu.dynamic_rotate %74 by %c7_i32_27 dim 1 : vector<8x8x8xf32>, i32 -> vector<8x8x8xf32>
    %81 = vector.extract_strided_slice %0 {offsets = [1, 0, 0, 0], sizes = [1, 1, 8, 1], strides = [1, 1, 1, 1]} : vector<2x1x8x1xf32> to vector<1x1x8x1xf32>
    %82 = vector.shape_cast %81 : vector<1x1x8x1xf32> to vector<1x8x1xf32>
    %83 = vector.broadcast %82 : vector<1x8x1xf32> to vector<8x8x8xf32>
    %84 = arith.mulf %80, %83 : vector<8x8x8xf32>
    %85 = tpu.concatenate %57, %52, %62, %68, %63, %73, %79, %74, %84 in 2 : vector<8x8x8xf32>, vector<8x8x8xf32>, vector<8x8x8xf32>, vector<8x8x8xf32>, vector<8x8x8xf32>, vector<8x8x8xf32>, vector<8x8x8xf32>, vector<8x8x8xf32>, vector<8x8x8xf32> -> vector<8x8x72xf32>
    %86 = vector.shape_cast %85 : vector<8x8x72xf32> to vector<64x72xf32>
    %c0_28 = arith.constant 0 : index
    %c0_29 = arith.constant 0 : index
    %87 = vector.load %arg7[%c0_28, %c0_29] : memref<72x16xf32, #tpu.memory_space<vmem>>, vector<72x16xf32>
    %cst_30 = arith.constant dense<0.000000e+00> : vector<64x16xf32>
    %88 = tpu.matmul %86, %87, %cst_30 {dimension_numbers = #tpu.dot_dimension_numbers<[1], [0], [0], [1], [0, 0, 1, 1], [], []>} : vector<64x72xf32>, vector<72x16xf32>, vector<64x16xf32> -> vector<64x16xf32>
    %c0_31 = arith.constant 0 : index
    %c0_32 = arith.constant 0 : index
    %89 = vector.load %arg8[%c0_31, %c0_32] : memref<1x16xf32, #tpu.memory_space<vmem>>, vector<1x16xf32>
    %90 = vector.broadcast %89 : vector<1x16xf32> to vector<64x16xf32>
    %91 = arith.addf %88, %90 : vector<64x16xf32>
    %c0_33 = arith.constant 0 : index
    %c0_34 = arith.constant 0 : index
    %92 = vector.load %arg9[%c0_33, %c0_34] : memref<1x16xf32, #tpu.memory_space<vmem>>, vector<1x16xf32>
    %c0_35 = arith.constant 0 : index
    %c0_36 = arith.constant 0 : index
    %93 = vector.load %arg10[%c0_35, %c0_36] : memref<1x16xf32, #tpu.memory_space<vmem>>, vector<1x16xf32>
    %cst_37 = arith.constant dense<0.000000e+00> : vector<16xf32>
    %94 = vector.multi_reduction <add>, %91, %cst_37 [0] : vector<64x16xf32> to vector<16xf32>
    %95 = vector.shape_cast %94 : vector<16xf32> to vector<1x16xf32>
    %96 = arith.mulf %91, %91 : vector<64x16xf32>
    %cst_38 = arith.constant dense<0.000000e+00> : vector<16xf32>
    %97 = vector.multi_reduction <add>, %96, %cst_38 [0] : vector<64x16xf32> to vector<16xf32>
    %98 = vector.shape_cast %97 : vector<16xf32> to vector<1x16xf32>
    %cst_39 = arith.constant dense<0.000000e+00> : vector<1x16xf32>
    %99 = tpu.matmul %95, %2, %cst_39 {dimension_numbers = #tpu.dot_dimension_numbers<[1], [0], [0], [1], [0, 0, 1, 1], [], []>} : vector<1x16xf32>, vector<16x16xf32>, vector<1x16xf32> -> vector<1x16xf32>
    %cst_40 = arith.constant dense<0.000000e+00> : vector<1x16xf32>
    %100 = tpu.matmul %98, %2, %cst_40 {dimension_numbers = #tpu.dot_dimension_numbers<[1], [0], [0], [1], [0, 0, 1, 1], [], []>} : vector<1x16xf32>, vector<16x16xf32>, vector<1x16xf32> -> vector<1x16xf32>
    %cst_41 = arith.constant 3.906250e-03 : f32
    %101 = vector.broadcast %cst_41 : f32 to vector<1x16xf32>
    %102 = arith.mulf %99, %101 : vector<1x16xf32>
    %cst_42 = arith.constant 3.906250e-03 : f32
    %103 = vector.broadcast %cst_42 : f32 to vector<1x16xf32>
    %104 = arith.mulf %100, %103 : vector<1x16xf32>
    %105 = arith.mulf %102, %102 : vector<1x16xf32>
    %106 = arith.subf %104, %105 : vector<1x16xf32>
    %cst_43 = arith.constant 0.000000e+00 : f32
    %107 = vector.broadcast %cst_43 : f32 to vector<1x16xf32>
    %108 = arith.maximumf %106, %107 : vector<1x16xf32>
    %109 = vector.broadcast %102 : vector<1x16xf32> to vector<64x16xf32>
    %110 = arith.subf %91, %109 : vector<64x16xf32>
    %cst_44 = arith.constant 9.99999974E-6 : f32
    %111 = vector.broadcast %cst_44 : f32 to vector<1x16xf32>
    %112 = arith.addf %108, %111 : vector<1x16xf32>
    %113 = math.rsqrt %112 : vector<1x16xf32>
    %114 = vector.broadcast %113 : vector<1x16xf32> to vector<64x16xf32>
    %115 = arith.mulf %110, %114 : vector<64x16xf32>
    %116 = vector.broadcast %92 : vector<1x16xf32> to vector<64x16xf32>
    %117 = arith.mulf %115, %116 : vector<64x16xf32>
    %118 = vector.broadcast %93 : vector<1x16xf32> to vector<64x16xf32>
    %119 = arith.addf %117, %118 : vector<64x16xf32>
    %120 = arith.negf %119 : vector<64x16xf32>
    %121 = math.exp %120 : vector<64x16xf32>
    %cst_45 = arith.constant 1.000000e+00 : f32
    %122 = vector.broadcast %cst_45 : f32 to vector<64x16xf32>
    %123 = arith.addf %122, %121 : vector<64x16xf32>
    %124 = arith.divf %122, %123 : vector<64x16xf32>
    %125 = arith.mulf %119, %124 : vector<64x16xf32>
    %126 = vector.shape_cast %125 : vector<64x16xf32> to vector<8x8x16xf32>
    %cst_46 = arith.constant 0.000000e+00 : f32
    %127 = vector.broadcast %cst_46 : f32 to vector<1x8x16xf32>
    %128 = tpu.concatenate %127, %126, %127 in 0 : vector<1x8x16xf32>, vector<8x8x16xf32>, vector<1x8x16xf32> -> vector<10x8x16xf32>
    %129 = vector.extract_strided_slice %128 {offsets = [0, 0, 0], sizes = [8, 8, 16], strides = [1, 1, 1]} : vector<10x8x16xf32> to vector<8x8x16xf32>
    %c1_i32_47 = arith.constant 1 : i32
    %130 = tpu.dynamic_rotate %129 by %c1_i32_47 dim 1 : vector<8x8x16xf32>, i32 -> vector<8x8x16xf32>
    %131 = vector.extract_strided_slice %0 {offsets = [0, 0, 0, 0], sizes = [1, 1, 8, 1], strides = [1, 1, 1, 1]} : vector<2x1x8x1xf32> to vector<1x1x8x1xf32>
    %132 = vector.shape_cast %131 : vector<1x1x8x1xf32> to vector<1x8x1xf32>
    %133 = vector.broadcast %132 : vector<1x8x1xf32> to vector<8x8x16xf32>
    %134 = arith.mulf %130, %133 : vector<8x8x16xf32>
    %c7_i32_48 = arith.constant 7 : i32
    %135 = tpu.dynamic_rotate %129 by %c7_i32_48 dim 1 : vector<8x8x16xf32>, i32 -> vector<8x8x16xf32>
    %136 = vector.extract_strided_slice %0 {offsets = [1, 0, 0, 0], sizes = [1, 1, 8, 1], strides = [1, 1, 1, 1]} : vector<2x1x8x1xf32> to vector<1x1x8x1xf32>
    %137 = vector.shape_cast %136 : vector<1x1x8x1xf32> to vector<1x8x1xf32>
    %138 = vector.broadcast %137 : vector<1x8x1xf32> to vector<8x8x16xf32>
    %139 = arith.mulf %135, %138 : vector<8x8x16xf32>
    %140 = vector.extract_strided_slice %128 {offsets = [1, 0, 0], sizes = [8, 8, 16], strides = [1, 1, 1]} : vector<10x8x16xf32> to vector<8x8x16xf32>
    %c1_i32_49 = arith.constant 1 : i32
    %141 = tpu.dynamic_rotate %140 by %c1_i32_49 dim 1 : vector<8x8x16xf32>, i32 -> vector<8x8x16xf32>
    %142 = vector.extract_strided_slice %0 {offsets = [0, 0, 0, 0], sizes = [1, 1, 8, 1], strides = [1, 1, 1, 1]} : vector<2x1x8x1xf32> to vector<1x1x8x1xf32>
    %143 = vector.shape_cast %142 : vector<1x1x8x1xf32> to vector<1x8x1xf32>
    %144 = vector.broadcast %143 : vector<1x8x1xf32> to vector<8x8x16xf32>
    %145 = arith.mulf %141, %144 : vector<8x8x16xf32>
    %c7_i32_50 = arith.constant 7 : i32
    %146 = tpu.dynamic_rotate %140 by %c7_i32_50 dim 1 : vector<8x8x16xf32>, i32 -> vector<8x8x16xf32>
    %147 = vector.extract_strided_slice %0 {offsets = [1, 0, 0, 0], sizes = [1, 1, 8, 1], strides = [1, 1, 1, 1]} : vector<2x1x8x1xf32> to vector<1x1x8x1xf32>
    %148 = vector.shape_cast %147 : vector<1x1x8x1xf32> to vector<1x8x1xf32>
    %149 = vector.broadcast %148 : vector<1x8x1xf32> to vector<8x8x16xf32>
    %150 = arith.mulf %146, %149 : vector<8x8x16xf32>
    %151 = vector.extract_strided_slice %128 {offsets = [2, 0, 0], sizes = [8, 8, 16], strides = [1, 1, 1]} : vector<10x8x16xf32> to vector<8x8x16xf32>
    %c1_i32_51 = arith.constant 1 : i32
    %152 = tpu.dynamic_rotate %151 by %c1_i32_51 dim 1 : vector<8x8x16xf32>, i32 -> vector<8x8x16xf32>
    %153 = vector.extract_strided_slice %0 {offsets = [0, 0, 0, 0], sizes = [1, 1, 8, 1], strides = [1, 1, 1, 1]} : vector<2x1x8x1xf32> to vector<1x1x8x1xf32>
    %154 = vector.shape_cast %153 : vector<1x1x8x1xf32> to vector<1x8x1xf32>
    %155 = vector.broadcast %154 : vector<1x8x1xf32> to vector<8x8x16xf32>
    %156 = arith.mulf %152, %155 : vector<8x8x16xf32>
    %c7_i32_52 = arith.constant 7 : i32
    %157 = tpu.dynamic_rotate %151 by %c7_i32_52 dim 1 : vector<8x8x16xf32>, i32 -> vector<8x8x16xf32>
    %158 = vector.extract_strided_slice %0 {offsets = [1, 0, 0, 0], sizes = [1, 1, 8, 1], strides = [1, 1, 1, 1]} : vector<2x1x8x1xf32> to vector<1x1x8x1xf32>
    %159 = vector.shape_cast %158 : vector<1x1x8x1xf32> to vector<1x8x1xf32>
    %160 = vector.broadcast %159 : vector<1x8x1xf32> to vector<8x8x16xf32>
    %161 = arith.mulf %157, %160 : vector<8x8x16xf32>
    %162 = tpu.concatenate %134, %129, %139, %145, %140, %150, %156, %151, %161 in 2 : vector<8x8x16xf32>, vector<8x8x16xf32>, vector<8x8x16xf32>, vector<8x8x16xf32>, vector<8x8x16xf32>, vector<8x8x16xf32>, vector<8x8x16xf32>, vector<8x8x16xf32>, vector<8x8x16xf32> -> vector<8x8x144xf32>
    %163 = vector.shape_cast %162 : vector<8x8x144xf32> to vector<64x144xf32>
    %c0_53 = arith.constant 0 : index
    %c0_54 = arith.constant 0 : index
    %164 = vector.load %arg11[%c0_53, %c0_54] : memref<144x16xf32, #tpu.memory_space<vmem>>, vector<144x16xf32>
    %cst_55 = arith.constant dense<0.000000e+00> : vector<64x16xf32>
    %165 = tpu.matmul %163, %164, %cst_55 {dimension_numbers = #tpu.dot_dimension_numbers<[1], [0], [0], [1], [0, 0, 1, 1], [], []>} : vector<64x144xf32>, vector<144x16xf32>, vector<64x16xf32> -> vector<64x16xf32>
    %c0_56 = arith.constant 0 : index
    %c0_57 = arith.constant 0 : index
    %166 = vector.load %arg12[%c0_56, %c0_57] : memref<1x16xf32, #tpu.memory_space<vmem>>, vector<1x16xf32>
    %167 = vector.broadcast %166 : vector<1x16xf32> to vector<64x16xf32>
    %168 = arith.addf %165, %167 : vector<64x16xf32>
    %c0_58 = arith.constant 0 : index
    %c0_59 = arith.constant 0 : index
    %169 = vector.load %arg13[%c0_58, %c0_59] : memref<8x16xf32, #tpu.memory_space<vmem>>, vector<8x16xf32>
    %cst_60 = arith.constant dense<0.000000e+00> : vector<64x16xf32>
    %170 = tpu.matmul %14, %169, %cst_60 {dimension_numbers = #tpu.dot_dimension_numbers<[1], [0], [0], [1], [0, 0, 1, 1], [], []>} : vector<64x8xf32>, vector<8x16xf32>, vector<64x16xf32> -> vector<64x16xf32>
    %171 = arith.addf %168, %170 : vector<64x16xf32>
    %c0_61 = arith.constant 0 : index
    %c0_62 = arith.constant 0 : index
    %172 = vector.load %arg14[%c0_61, %c0_62] : memref<1x16xf32, #tpu.memory_space<vmem>>, vector<1x16xf32>
    %c0_63 = arith.constant 0 : index
    %c0_64 = arith.constant 0 : index
    %173 = vector.load %arg15[%c0_63, %c0_64] : memref<1x16xf32, #tpu.memory_space<vmem>>, vector<1x16xf32>
    %cst_65 = arith.constant dense<0.000000e+00> : vector<16xf32>
    %174 = vector.multi_reduction <add>, %171, %cst_65 [0] : vector<64x16xf32> to vector<16xf32>
    %175 = vector.shape_cast %174 : vector<16xf32> to vector<1x16xf32>
    %176 = arith.mulf %171, %171 : vector<64x16xf32>
    %cst_66 = arith.constant dense<0.000000e+00> : vector<16xf32>
    %177 = vector.multi_reduction <add>, %176, %cst_66 [0] : vector<64x16xf32> to vector<16xf32>
    %178 = vector.shape_cast %177 : vector<16xf32> to vector<1x16xf32>
    %cst_67 = arith.constant dense<0.000000e+00> : vector<1x16xf32>
    %179 = tpu.matmul %175, %2, %cst_67 {dimension_numbers = #tpu.dot_dimension_numbers<[1], [0], [0], [1], [0, 0, 1, 1], [], []>} : vector<1x16xf32>, vector<16x16xf32>, vector<1x16xf32> -> vector<1x16xf32>
    %cst_68 = arith.constant dense<0.000000e+00> : vector<1x16xf32>
    %180 = tpu.matmul %178, %2, %cst_68 {dimension_numbers = #tpu.dot_dimension_numbers<[1], [0], [0], [1], [0, 0, 1, 1], [], []>} : vector<1x16xf32>, vector<16x16xf32>, vector<1x16xf32> -> vector<1x16xf32>
    %cst_69 = arith.constant 3.906250e-03 : f32
    %181 = vector.broadcast %cst_69 : f32 to vector<1x16xf32>
    %182 = arith.mulf %179, %181 : vector<1x16xf32>
    %cst_70 = arith.constant 3.906250e-03 : f32
    %183 = vector.broadcast %cst_70 : f32 to vector<1x16xf32>
    %184 = arith.mulf %180, %183 : vector<1x16xf32>
    %185 = arith.mulf %182, %182 : vector<1x16xf32>
    %186 = arith.subf %184, %185 : vector<1x16xf32>
    %cst_71 = arith.constant 0.000000e+00 : f32
    %187 = vector.broadcast %cst_71 : f32 to vector<1x16xf32>
    %188 = arith.maximumf %186, %187 : vector<1x16xf32>
    %189 = vector.broadcast %182 : vector<1x16xf32> to vector<64x16xf32>
    %190 = arith.subf %171, %189 : vector<64x16xf32>
    %cst_72 = arith.constant 9.99999974E-6 : f32
    %191 = vector.broadcast %cst_72 : f32 to vector<1x16xf32>
    %192 = arith.addf %188, %191 : vector<1x16xf32>
    %193 = math.rsqrt %192 : vector<1x16xf32>
    %194 = vector.broadcast %193 : vector<1x16xf32> to vector<64x16xf32>
    %195 = arith.mulf %190, %194 : vector<64x16xf32>
    %196 = vector.broadcast %172 : vector<1x16xf32> to vector<64x16xf32>
    %197 = arith.mulf %195, %196 : vector<64x16xf32>
    %198 = vector.broadcast %173 : vector<1x16xf32> to vector<64x16xf32>
    %199 = arith.addf %197, %198 : vector<64x16xf32>
    %200 = arith.negf %199 : vector<64x16xf32>
    %201 = math.exp %200 : vector<64x16xf32>
    %cst_73 = arith.constant 1.000000e+00 : f32
    %202 = vector.broadcast %cst_73 : f32 to vector<64x16xf32>
    %203 = arith.addf %202, %201 : vector<64x16xf32>
    %204 = arith.divf %202, %203 : vector<64x16xf32>
    %205 = arith.mulf %199, %204 : vector<64x16xf32>
    %206 = vector.shape_cast %205 : vector<64x16xf32> to vector<8x8x16xf32>
    %cst_74 = arith.constant 0.000000e+00 : f32
    %207 = vector.broadcast %cst_74 : f32 to vector<1x8x16xf32>
    %208 = tpu.concatenate %207, %206, %207 in 0 : vector<1x8x16xf32>, vector<8x8x16xf32>, vector<1x8x16xf32> -> vector<10x8x16xf32>
    %209 = vector.extract_strided_slice %208 {offsets = [0, 0, 0], sizes = [8, 8, 16], strides = [1, 1, 1]} : vector<10x8x16xf32> to vector<8x8x16xf32>
    %c1_i32_75 = arith.constant 1 : i32
    %210 = tpu.dynamic_rotate %209 by %c1_i32_75 dim 1 : vector<8x8x16xf32>, i32 -> vector<8x8x16xf32>
    %211 = vector.extract_strided_slice %0 {offsets = [0, 0, 0, 0], sizes = [1, 1, 8, 1], strides = [1, 1, 1, 1]} : vector<2x1x8x1xf32> to vector<1x1x8x1xf32>
    %212 = vector.shape_cast %211 : vector<1x1x8x1xf32> to vector<1x8x1xf32>
    %213 = vector.broadcast %212 : vector<1x8x1xf32> to vector<8x8x16xf32>
    %214 = arith.mulf %210, %213 : vector<8x8x16xf32>
    %c7_i32_76 = arith.constant 7 : i32
    %215 = tpu.dynamic_rotate %209 by %c7_i32_76 dim 1 : vector<8x8x16xf32>, i32 -> vector<8x8x16xf32>
    %216 = vector.extract_strided_slice %0 {offsets = [1, 0, 0, 0], sizes = [1, 1, 8, 1], strides = [1, 1, 1, 1]} : vector<2x1x8x1xf32> to vector<1x1x8x1xf32>
    %217 = vector.shape_cast %216 : vector<1x1x8x1xf32> to vector<1x8x1xf32>
    %218 = vector.broadcast %217 : vector<1x8x1xf32> to vector<8x8x16xf32>
    %219 = arith.mulf %215, %218 : vector<8x8x16xf32>
    %220 = vector.extract_strided_slice %208 {offsets = [1, 0, 0], sizes = [8, 8, 16], strides = [1, 1, 1]} : vector<10x8x16xf32> to vector<8x8x16xf32>
    %c1_i32_77 = arith.constant 1 : i32
    %221 = tpu.dynamic_rotate %220 by %c1_i32_77 dim 1 : vector<8x8x16xf32>, i32 -> vector<8x8x16xf32>
    %222 = vector.extract_strided_slice %0 {offsets = [0, 0, 0, 0], sizes = [1, 1, 8, 1], strides = [1, 1, 1, 1]} : vector<2x1x8x1xf32> to vector<1x1x8x1xf32>
    %223 = vector.shape_cast %222 : vector<1x1x8x1xf32> to vector<1x8x1xf32>
    %224 = vector.broadcast %223 : vector<1x8x1xf32> to vector<8x8x16xf32>
    %225 = arith.mulf %221, %224 : vector<8x8x16xf32>
    %c7_i32_78 = arith.constant 7 : i32
    %226 = tpu.dynamic_rotate %220 by %c7_i32_78 dim 1 : vector<8x8x16xf32>, i32 -> vector<8x8x16xf32>
    %227 = vector.extract_strided_slice %0 {offsets = [1, 0, 0, 0], sizes = [1, 1, 8, 1], strides = [1, 1, 1, 1]} : vector<2x1x8x1xf32> to vector<1x1x8x1xf32>
    %228 = vector.shape_cast %227 : vector<1x1x8x1xf32> to vector<1x8x1xf32>
    %229 = vector.broadcast %228 : vector<1x8x1xf32> to vector<8x8x16xf32>
    %230 = arith.mulf %226, %229 : vector<8x8x16xf32>
    %231 = vector.extract_strided_slice %208 {offsets = [2, 0, 0], sizes = [8, 8, 16], strides = [1, 1, 1]} : vector<10x8x16xf32> to vector<8x8x16xf32>
    %c1_i32_79 = arith.constant 1 : i32
    %232 = tpu.dynamic_rotate %231 by %c1_i32_79 dim 1 : vector<8x8x16xf32>, i32 -> vector<8x8x16xf32>
    %233 = vector.extract_strided_slice %0 {offsets = [0, 0, 0, 0], sizes = [1, 1, 8, 1], strides = [1, 1, 1, 1]} : vector<2x1x8x1xf32> to vector<1x1x8x1xf32>
    %234 = vector.shape_cast %233 : vector<1x1x8x1xf32> to vector<1x8x1xf32>
    %235 = vector.broadcast %234 : vector<1x8x1xf32> to vector<8x8x16xf32>
    %236 = arith.mulf %232, %235 : vector<8x8x16xf32>
    %c7_i32_80 = arith.constant 7 : i32
    %237 = tpu.dynamic_rotate %231 by %c7_i32_80 dim 1 : vector<8x8x16xf32>, i32 -> vector<8x8x16xf32>
    %238 = vector.extract_strided_slice %0 {offsets = [1, 0, 0, 0], sizes = [1, 1, 8, 1], strides = [1, 1, 1, 1]} : vector<2x1x8x1xf32> to vector<1x1x8x1xf32>
    %239 = vector.shape_cast %238 : vector<1x1x8x1xf32> to vector<1x8x1xf32>
    %240 = vector.broadcast %239 : vector<1x8x1xf32> to vector<8x8x16xf32>
    %241 = arith.mulf %237, %240 : vector<8x8x16xf32>
    %242 = tpu.concatenate %214, %209, %219, %225, %220, %230, %236, %231, %241 in 2 : vector<8x8x16xf32>, vector<8x8x16xf32>, vector<8x8x16xf32>, vector<8x8x16xf32>, vector<8x8x16xf32>, vector<8x8x16xf32>, vector<8x8x16xf32>, vector<8x8x16xf32>, vector<8x8x16xf32> -> vector<8x8x144xf32>
    %243 = vector.shape_cast %242 : vector<8x8x144xf32> to vector<64x144xf32>
    %c0_81 = arith.constant 0 : index
    %c0_82 = arith.constant 0 : index
    %244 = vector.load %arg16[%c0_81, %c0_82] : memref<144x16xf32, #tpu.memory_space<vmem>>, vector<144x16xf32>
    %cst_83 = arith.constant dense<0.000000e+00> : vector<64x16xf32>
    %245 = tpu.matmul %243, %244, %cst_83 {dimension_numbers = #tpu.dot_dimension_numbers<[1], [0], [0], [1], [0, 0, 1, 1], [], []>} : vector<64x144xf32>, vector<144x16xf32>, vector<64x16xf32> -> vector<64x16xf32>
    %c0_84 = arith.constant 0 : index
    %c0_85 = arith.constant 0 : index
    %246 = vector.load %arg17[%c0_84, %c0_85] : memref<1x16xf32, #tpu.memory_space<vmem>>, vector<1x16xf32>
    %247 = vector.broadcast %246 : vector<1x16xf32> to vector<64x16xf32>
    %248 = arith.addf %245, %247 : vector<64x16xf32>
    %c0_86 = arith.constant 0 : index
    %c0_87 = arith.constant 0 : index
    %249 = vector.load %arg18[%c0_86, %c0_87] : memref<1x16xf32, #tpu.memory_space<vmem>>, vector<1x16xf32>
    %c0_88 = arith.constant 0 : index
    %c0_89 = arith.constant 0 : index
    %250 = vector.load %arg19[%c0_88, %c0_89] : memref<1x16xf32, #tpu.memory_space<vmem>>, vector<1x16xf32>
    %cst_90 = arith.constant dense<0.000000e+00> : vector<16xf32>
    %251 = vector.multi_reduction <add>, %248, %cst_90 [0] : vector<64x16xf32> to vector<16xf32>
    %252 = vector.shape_cast %251 : vector<16xf32> to vector<1x16xf32>
    %253 = arith.mulf %248, %248 : vector<64x16xf32>
    %cst_91 = arith.constant dense<0.000000e+00> : vector<16xf32>
    %254 = vector.multi_reduction <add>, %253, %cst_91 [0] : vector<64x16xf32> to vector<16xf32>
    %255 = vector.shape_cast %254 : vector<16xf32> to vector<1x16xf32>
    %cst_92 = arith.constant dense<0.000000e+00> : vector<1x16xf32>
    %256 = tpu.matmul %252, %2, %cst_92 {dimension_numbers = #tpu.dot_dimension_numbers<[1], [0], [0], [1], [0, 0, 1, 1], [], []>} : vector<1x16xf32>, vector<16x16xf32>, vector<1x16xf32> -> vector<1x16xf32>
    %cst_93 = arith.constant dense<0.000000e+00> : vector<1x16xf32>
    %257 = tpu.matmul %255, %2, %cst_93 {dimension_numbers = #tpu.dot_dimension_numbers<[1], [0], [0], [1], [0, 0, 1, 1], [], []>} : vector<1x16xf32>, vector<16x16xf32>, vector<1x16xf32> -> vector<1x16xf32>
    %cst_94 = arith.constant 3.906250e-03 : f32
    %258 = vector.broadcast %cst_94 : f32 to vector<1x16xf32>
    %259 = arith.mulf %256, %258 : vector<1x16xf32>
    %cst_95 = arith.constant 3.906250e-03 : f32
    %260 = vector.broadcast %cst_95 : f32 to vector<1x16xf32>
    %261 = arith.mulf %257, %260 : vector<1x16xf32>
    %262 = arith.mulf %259, %259 : vector<1x16xf32>
    %263 = arith.subf %261, %262 : vector<1x16xf32>
    %cst_96 = arith.constant 0.000000e+00 : f32
    %264 = vector.broadcast %cst_96 : f32 to vector<1x16xf32>
    %265 = arith.maximumf %263, %264 : vector<1x16xf32>
    %266 = vector.broadcast %259 : vector<1x16xf32> to vector<64x16xf32>
    %267 = arith.subf %248, %266 : vector<64x16xf32>
    %cst_97 = arith.constant 9.99999974E-6 : f32
    %268 = vector.broadcast %cst_97 : f32 to vector<1x16xf32>
    %269 = arith.addf %265, %268 : vector<1x16xf32>
    %270 = math.rsqrt %269 : vector<1x16xf32>
    %271 = vector.broadcast %270 : vector<1x16xf32> to vector<64x16xf32>
    %272 = arith.mulf %267, %271 : vector<64x16xf32>
    %273 = vector.broadcast %249 : vector<1x16xf32> to vector<64x16xf32>
    %274 = arith.mulf %272, %273 : vector<64x16xf32>
    %275 = vector.broadcast %250 : vector<1x16xf32> to vector<64x16xf32>
    %276 = arith.addf %274, %275 : vector<64x16xf32>
    %277 = arith.negf %276 : vector<64x16xf32>
    %278 = math.exp %277 : vector<64x16xf32>
    %cst_98 = arith.constant 1.000000e+00 : f32
    %279 = vector.broadcast %cst_98 : f32 to vector<64x16xf32>
    %280 = arith.addf %279, %278 : vector<64x16xf32>
    %281 = arith.divf %279, %280 : vector<64x16xf32>
    %282 = arith.mulf %276, %281 : vector<64x16xf32>
    %283 = vector.shape_cast %282 : vector<64x16xf32> to vector<8x8x16xf32>
    %cst_99 = arith.constant 0.000000e+00 : f32
    %284 = vector.broadcast %cst_99 : f32 to vector<1x8x16xf32>
    %285 = tpu.concatenate %284, %283, %284 in 0 : vector<1x8x16xf32>, vector<8x8x16xf32>, vector<1x8x16xf32> -> vector<10x8x16xf32>
    %286 = vector.extract_strided_slice %285 {offsets = [0, 0, 0], sizes = [8, 8, 16], strides = [1, 1, 1]} : vector<10x8x16xf32> to vector<8x8x16xf32>
    %c1_i32_100 = arith.constant 1 : i32
    %287 = tpu.dynamic_rotate %286 by %c1_i32_100 dim 1 : vector<8x8x16xf32>, i32 -> vector<8x8x16xf32>
    %288 = vector.extract_strided_slice %0 {offsets = [0, 0, 0, 0], sizes = [1, 1, 8, 1], strides = [1, 1, 1, 1]} : vector<2x1x8x1xf32> to vector<1x1x8x1xf32>
    %289 = vector.shape_cast %288 : vector<1x1x8x1xf32> to vector<1x8x1xf32>
    %290 = vector.broadcast %289 : vector<1x8x1xf32> to vector<8x8x16xf32>
    %291 = arith.mulf %287, %290 : vector<8x8x16xf32>
    %c7_i32_101 = arith.constant 7 : i32
    %292 = tpu.dynamic_rotate %286 by %c7_i32_101 dim 1 : vector<8x8x16xf32>, i32 -> vector<8x8x16xf32>
    %293 = vector.extract_strided_slice %0 {offsets = [1, 0, 0, 0], sizes = [1, 1, 8, 1], strides = [1, 1, 1, 1]} : vector<2x1x8x1xf32> to vector<1x1x8x1xf32>
    %294 = vector.shape_cast %293 : vector<1x1x8x1xf32> to vector<1x8x1xf32>
    %295 = vector.broadcast %294 : vector<1x8x1xf32> to vector<8x8x16xf32>
    %296 = arith.mulf %292, %295 : vector<8x8x16xf32>
    %297 = vector.extract_strided_slice %285 {offsets = [1, 0, 0], sizes = [8, 8, 16], strides = [1, 1, 1]} : vector<10x8x16xf32> to vector<8x8x16xf32>
    %c1_i32_102 = arith.constant 1 : i32
    %298 = tpu.dynamic_rotate %297 by %c1_i32_102 dim 1 : vector<8x8x16xf32>, i32 -> vector<8x8x16xf32>
    %299 = vector.extract_strided_slice %0 {offsets = [0, 0, 0, 0], sizes = [1, 1, 8, 1], strides = [1, 1, 1, 1]} : vector<2x1x8x1xf32> to vector<1x1x8x1xf32>
    %300 = vector.shape_cast %299 : vector<1x1x8x1xf32> to vector<1x8x1xf32>
    %301 = vector.broadcast %300 : vector<1x8x1xf32> to vector<8x8x16xf32>
    %302 = arith.mulf %298, %301 : vector<8x8x16xf32>
    %c7_i32_103 = arith.constant 7 : i32
    %303 = tpu.dynamic_rotate %297 by %c7_i32_103 dim 1 : vector<8x8x16xf32>, i32 -> vector<8x8x16xf32>
    %304 = vector.extract_strided_slice %0 {offsets = [1, 0, 0, 0], sizes = [1, 1, 8, 1], strides = [1, 1, 1, 1]} : vector<2x1x8x1xf32> to vector<1x1x8x1xf32>
    %305 = vector.shape_cast %304 : vector<1x1x8x1xf32> to vector<1x8x1xf32>
    %306 = vector.broadcast %305 : vector<1x8x1xf32> to vector<8x8x16xf32>
    %307 = arith.mulf %303, %306 : vector<8x8x16xf32>
    %308 = vector.extract_strided_slice %285 {offsets = [2, 0, 0], sizes = [8, 8, 16], strides = [1, 1, 1]} : vector<10x8x16xf32> to vector<8x8x16xf32>
    %c1_i32_104 = arith.constant 1 : i32
    %309 = tpu.dynamic_rotate %308 by %c1_i32_104 dim 1 : vector<8x8x16xf32>, i32 -> vector<8x8x16xf32>
    %310 = vector.extract_strided_slice %0 {offsets = [0, 0, 0, 0], sizes = [1, 1, 8, 1], strides = [1, 1, 1, 1]} : vector<2x1x8x1xf32> to vector<1x1x8x1xf32>
    %311 = vector.shape_cast %310 : vector<1x1x8x1xf32> to vector<1x8x1xf32>
    %312 = vector.broadcast %311 : vector<1x8x1xf32> to vector<8x8x16xf32>
    %313 = arith.mulf %309, %312 : vector<8x8x16xf32>
    %c7_i32_105 = arith.constant 7 : i32
    %314 = tpu.dynamic_rotate %308 by %c7_i32_105 dim 1 : vector<8x8x16xf32>, i32 -> vector<8x8x16xf32>
    %315 = vector.extract_strided_slice %0 {offsets = [1, 0, 0, 0], sizes = [1, 1, 8, 1], strides = [1, 1, 1, 1]} : vector<2x1x8x1xf32> to vector<1x1x8x1xf32>
    %316 = vector.shape_cast %315 : vector<1x1x8x1xf32> to vector<1x8x1xf32>
    %317 = vector.broadcast %316 : vector<1x8x1xf32> to vector<8x8x16xf32>
    %318 = arith.mulf %314, %317 : vector<8x8x16xf32>
    %319 = tpu.concatenate %291, %286, %296, %302, %297, %307, %313, %308, %318 in 2 : vector<8x8x16xf32>, vector<8x8x16xf32>, vector<8x8x16xf32>, vector<8x8x16xf32>, vector<8x8x16xf32>, vector<8x8x16xf32>, vector<8x8x16xf32>, vector<8x8x16xf32>, vector<8x8x16xf32> -> vector<8x8x144xf32>
    %320 = vector.shape_cast %319 : vector<8x8x144xf32> to vector<64x144xf32>
    %c0_106 = arith.constant 0 : index
    %c0_107 = arith.constant 0 : index
    %321 = vector.load %arg20[%c0_106, %c0_107] : memref<144x16xf32, #tpu.memory_space<vmem>>, vector<144x16xf32>
    %cst_108 = arith.constant dense<0.000000e+00> : vector<64x16xf32>
    %322 = tpu.matmul %320, %321, %cst_108 {dimension_numbers = #tpu.dot_dimension_numbers<[1], [0], [0], [1], [0, 0, 1, 1], [], []>} : vector<64x144xf32>, vector<144x16xf32>, vector<64x16xf32> -> vector<64x16xf32>
    %c0_109 = arith.constant 0 : index
    %c0_110 = arith.constant 0 : index
    %323 = vector.load %arg21[%c0_109, %c0_110] : memref<1x16xf32, #tpu.memory_space<vmem>>, vector<1x16xf32>
    %324 = vector.broadcast %323 : vector<1x16xf32> to vector<64x16xf32>
    %325 = arith.addf %322, %324 : vector<64x16xf32>
    %326 = arith.addf %325, %171 : vector<64x16xf32>
    %327 = vector.shape_cast %326 : vector<64x16xf32> to vector<8x8x16xf32>
    %c0_111 = arith.constant 0 : index
    %c0_112 = arith.constant 0 : index
    %c0_113 = arith.constant 0 : index
    %c0_114 = arith.constant 0 : index
    %328 = vector.load %arg22[%c0_111, %c0_112, %c0_113, %c0_114] : memref<1x8x8x16xf32, #tpu.memory_space<vmem>>, vector<1x8x8x16xf32>
    %329 = vector.shape_cast %328 : vector<1x8x8x16xf32> to vector<8x8x16xf32>
    %330 = vector.shape_cast %327 : vector<8x8x16xf32> to vector<1x8x8x16xf32>
    tpu.vector_store %arg22[%c0_111, %c0_112, %c0_113, %c0_114], %330 {strides = array<i32>} : memref<1x8x8x16xf32, #tpu.memory_space<vmem>>, vector<1x8x8x16xf32>,
    return
  }
  func.func @transform_0(%arg0: i32) -> (i32, i32, i32, i32) {
    %c0_i32 = arith.constant 0 : i32
    %c0_i32_0 = arith.constant 0 : i32
    %c0_i32_1 = arith.constant 0 : i32
    %c0_i32_2 = arith.constant 0 : i32
    return %arg0, %c0_i32, %c0_i32_0, %c0_i32_1 : i32, i32, i32, i32
  }
  func.func @transform_1(%arg0: i32) -> (i32, i32, i32, i32) {
    %c0_i32 = arith.constant 0 : i32
    %c0_i32_0 = arith.constant 0 : i32
    %c0_i32_1 = arith.constant 0 : i32
    %c0_i32_2 = arith.constant 0 : i32
    %c0_i32_3 = arith.constant 0 : i32
    return %c0_i32, %c0_i32_0, %c0_i32_1, %c0_i32_2 : i32, i32, i32, i32
  }
  func.func @transform_2(%arg0: i32) -> (i32, i32) {
    %c0_i32 = arith.constant 0 : i32
    %c0_i32_0 = arith.constant 0 : i32
    %c0_i32_1 = arith.constant 0 : i32
    return %c0_i32, %c0_i32_0 : i32, i32
  }
  func.func @transform_3(%arg0: i32) -> (i32, i32) {
    %c0_i32 = arith.constant 0 : i32
    %c0_i32_0 = arith.constant 0 : i32
    %c0_i32_1 = arith.constant 0 : i32
    return %c0_i32, %c0_i32_0 : i32, i32
  }
  func.func @transform_4(%arg0: i32) -> (i32, i32) {
    %c0_i32 = arith.constant 0 : i32
    %c0_i32_0 = arith.constant 0 : i32
    %c0_i32_1 = arith.constant 0 : i32
    return %c0_i32, %c0_i32_0 : i32, i32
  }
  func.func @transform_5(%arg0: i32) -> (i32, i32) {
    %c0_i32 = arith.constant 0 : i32
    %c0_i32_0 = arith.constant 0 : i32
    %c0_i32_1 = arith.constant 0 : i32
    return %c0_i32, %c0_i32_0 : i32, i32
  }
  func.func @transform_6(%arg0: i32) -> (i32, i32) {
    %c0_i32 = arith.constant 0 : i32
    %c0_i32_0 = arith.constant 0 : i32
    %c0_i32_1 = arith.constant 0 : i32
    return %c0_i32, %c0_i32_0 : i32, i32
  }
  func.func @transform_7(%arg0: i32) -> (i32, i32) {
    %c0_i32 = arith.constant 0 : i32
    %c0_i32_0 = arith.constant 0 : i32
    %c0_i32_1 = arith.constant 0 : i32
    return %c0_i32, %c0_i32_0 : i32, i32
  }
  func.func @transform_8(%arg0: i32) -> (i32, i32) {
    %c0_i32 = arith.constant 0 : i32
    %c0_i32_0 = arith.constant 0 : i32
    %c0_i32_1 = arith.constant 0 : i32
    return %c0_i32, %c0_i32_0 : i32, i32
  }
  func.func @transform_9(%arg0: i32) -> (i32, i32) {
    %c0_i32 = arith.constant 0 : i32
    %c0_i32_0 = arith.constant 0 : i32
    %c0_i32_1 = arith.constant 0 : i32
    return %c0_i32, %c0_i32_0 : i32, i32
  }
  func.func @transform_10(%arg0: i32) -> (i32, i32) {
    %c0_i32 = arith.constant 0 : i32
    %c0_i32_0 = arith.constant 0 : i32
    %c0_i32_1 = arith.constant 0 : i32
    return %c0_i32, %c0_i32_0 : i32, i32
  }
  func.func @transform_11(%arg0: i32) -> (i32, i32) {
    %c0_i32 = arith.constant 0 : i32
    %c0_i32_0 = arith.constant 0 : i32
    %c0_i32_1 = arith.constant 0 : i32
    return %c0_i32, %c0_i32_0 : i32, i32
  }
  func.func @transform_12(%arg0: i32) -> (i32, i32) {
    %c0_i32 = arith.constant 0 : i32
    %c0_i32_0 = arith.constant 0 : i32
    %c0_i32_1 = arith.constant 0 : i32
    return %c0_i32, %c0_i32_0 : i32, i32
  }
  func.func @transform_13(%arg0: i32) -> (i32, i32) {
    %c0_i32 = arith.constant 0 : i32
    %c0_i32_0 = arith.constant 0 : i32
    %c0_i32_1 = arith.constant 0 : i32
    return %c0_i32, %c0_i32_0 : i32, i32
  }
  func.func @transform_14(%arg0: i32) -> (i32, i32) {
    %c0_i32 = arith.constant 0 : i32
    %c0_i32_0 = arith.constant 0 : i32
    %c0_i32_1 = arith.constant 0 : i32
    return %c0_i32, %c0_i32_0 : i32, i32
  }
  func.func @transform_15(%arg0: i32) -> (i32, i32) {
    %c0_i32 = arith.constant 0 : i32
    %c0_i32_0 = arith.constant 0 : i32
    %c0_i32_1 = arith.constant 0 : i32
    return %c0_i32, %c0_i32_0 : i32, i32
  }
  func.func @transform_16(%arg0: i32) -> (i32, i32) {
    %c0_i32 = arith.constant 0 : i32
    %c0_i32_0 = arith.constant 0 : i32
    %c0_i32_1 = arith.constant 0 : i32
    return %c0_i32, %c0_i32_0 : i32, i32
  }
  func.func @transform_17(%arg0: i32) -> (i32, i32) {
    %c0_i32 = arith.constant 0 : i32
    %c0_i32_0 = arith.constant 0 : i32
    %c0_i32_1 = arith.constant 0 : i32
    return %c0_i32, %c0_i32_0 : i32, i32
  }
  func.func @transform_18(%arg0: i32) -> (i32, i32) {
    %c0_i32 = arith.constant 0 : i32
    %c0_i32_0 = arith.constant 0 : i32
    %c0_i32_1 = arith.constant 0 : i32
    return %c0_i32, %c0_i32_0 : i32, i32
  }
  func.func @transform_19(%arg0: i32) -> (i32, i32) {
    %c0_i32 = arith.constant 0 : i32
    %c0_i32_0 = arith.constant 0 : i32
    %c0_i32_1 = arith.constant 0 : i32
    return %c0_i32, %c0_i32_0 : i32, i32
  }
  func.func @transform_20(%arg0: i32) -> (i32, i32) {
    %c0_i32 = arith.constant 0 : i32
    %c0_i32_0 = arith.constant 0 : i32
    %c0_i32_1 = arith.constant 0 : i32
    return %c0_i32, %c0_i32_0 : i32, i32
  }
  func.func @transform_21(%arg0: i32) -> (i32, i32, i32, i32) {
    %c0_i32 = arith.constant 0 : i32
    %c0_i32_0 = arith.constant 0 : i32
    %c0_i32_1 = arith.constant 0 : i32
    %c0_i32_2 = arith.constant 0 : i32
    return %arg0, %c0_i32, %c0_i32_0, %c0_i32_1 : i32, i32, i32, i32
  }
}

</mosaic_0001>

<bundles_post_ra>
// kernel: tpu_custom_call.1
= control target key start
LH: loop header
LB: loop body
LE: loop exit
PB: predicated region body
PF: predicated region fallthrough
CT: control target
= control target key end

     0   :  { %s7034_s0 = inlined_call_operand.vmem [shape: f32[2,16,8,16], index: 0, kind: input, shape index: {}]   ;;  %s7035_s1 = inlined_call_operand.vmem [shape: f32[2,1,8,1], index: 1, kind: input, shape index: {}]   ;;  %s7036_s2 = inlined_call_operand.vmem [shape: f32[8,8], index: 2, kind: input, shape index: {}]   ;;  %s7037_s3 = inlined_call_operand.vmem [shape: f32[16,16], index: 3, kind: input, shape index: {}]   ;;  %s7038_s4 = inlined_call_operand.vmem [shape: f32[1,8], index: 4, kind: input, shape index: {}]   ;;  %s7039_s5 = inlined_call_operand.vmem [shape: f32[1,8], index: 5, kind: input, shape index: {}]   ;;  %s7040_s6 = inlined_call_operand.vmem [shape: f32[72,16], index: 6, kind: input, shape index: {}]   ;;  %s7041_s7 = inlined_call_operand.vmem [shape: f32[1,16], index: 7, kind: input, shape index: {}]   ;;  %s7042_s8 = inlined_call_operand.vmem [shape: f32[1,16], index: 8, kind: input, shape index: {}]   ;;  %s7043_s9 = inlined_call_operand.vmem [shape: f32[1,16], index: 9, kind: input, shape index: {}]   ;;  %s7044_s10 = inlined_call_operand.vmem [shape: f32[144,16], index: 10, kind: input, shape index: {}]   ;;  %s7045_s11 = inlined_call_operand.vmem [shape: f32[1,16], index: 11, kind: input, shape index: {}]   ;;  %s7046_s12 = inlined_call_operand.vmem [shape: f32[8,16], index: 12, kind: input, shape index: {}]   ;;  %s7047_s13 = inlined_call_operand.vmem [shape: f32[1,16], index: 13, kind: input, shape index: {}]   ;;  %s7048_s14 = inlined_call_operand.vmem [shape: f32[1,16], index: 14, kind: input, shape index: {}]   ;;  %s7049_s15 = inlined_call_operand.vmem [shape: f32[144,16], index: 15, kind: input, shape index: {}]   ;;  %s7050_s16 = inlined_call_operand.vmem [shape: f32[1,16], index: 16, kind: input, shape index: {}]   ;;  %s7051_s17 = inlined_call_operand.vmem [shape: f32[1,16], index: 17, kind: input, shape index: {}]   ;;  %s7052_s18 = inlined_call_operand.vmem [shape: f32[1,16], index: 18, kind: input, shape index: {}]   ;;  %s7053_s19 = inlined_call_operand.vmem [shape: f32[144,16], index: 19, kind: input, shape index: {}]   ;;  %s7054_s20 = inlined_call_operand.vmem [shape: f32[1,16], index: 20, kind: input, shape index: {}]   ;;  %s7055_s21 = inlined_call_operand.hbm [shape: f32[2,8,8,16], index: 21, kind: output, shape index: {}]  }
   0x1   :  { %7083 = sst [smem:[#allocation9_spill]] %s7034_s0 }
   0x2   :  { %7084 = sst [smem:[#allocation10_spill]] %s7035_s1 }
   0x3   :  { %7085 = sst [smem:[#allocation11_spill]] %s7036_s2 }
   0x4   :  { %7086 = sst [smem:[#allocation12_spill]] %s7037_s3 }
   0x5   :  { %7087 = sst [smem:[#allocation13_spill]] %s7038_s4 }
   0x6   :  { %7088 = sst [smem:[#allocation14_spill]] %s7039_s5 }
   0x7   :  { %7089 = sst [smem:[#allocation15_spill]] %s7040_s6 }
   0x8   :  { %7090 = sst [smem:[#allocation16_spill]] %s7041_s7 }
   0x9   :  { %7091 = sst [smem:[#allocation17_spill]] %s7042_s8 }
   0xa   :  { %7092 = sst [smem:[#allocation18_spill]] %s7043_s9 }
   0xb   :  { %7093 = sst [smem:[#allocation19_spill]] %s7044_s10 }
   0xc   :  { %7094 = sst [smem:[#allocation20_spill]] %s7045_s11 }
   0xd   :  { %7095 = sst [smem:[#allocation21_spill]] %s7046_s12 }
   0xe   :  { %26 = vsyncpa [#allocation3], 0 }
   0xf   :  { %28 = vsyncpa [#allocation3 + $0x1], 0  ;;  %s5072_s2 = smov 0   ;;  %s5074_s25 = smov 0  }
  0x10   :  { %s5076_s26 = smov 0   ;;  %s5078_s27 = smov 0  }
  0x11 LB: > { %7096 = sst [smem:[#allocation5_spill]] %s4938_s26  ;;  %s5093_s3 = sadd.s32 4294967295, %s4942_s27   ;;  %s4942_s27 = sphi %s5078_s27, %s7126_s27   ;;  %s4938_s26 = sphi %s5076_s26, %s7128_s26   ;;  %s4934_s25 = sphi %s5074_s25, %s7130_s25   ;;  %s4930_s2 = sphi %s5072_s2, %s7129_s2  }
  0x12   : > { %s3976_s28 = sadd.s32 4294967294, %s4942_s27   ;;  %s5097_s29 = sadd.s32 1, %s4942_s27  }
  0x13   : > { %7097 = sst [smem:[#allocation6_spill]] %s5097_s29  ;;  %s487_s0 = sadd.s32 1, %s4938_s26 }
  0x14   : > { %s484_s4 = ssub.s32 %s4942_s27, %s5097_s29  ;;  %p497_p0 = scmp.ne.s32.totalorder %s4938_s26, %s4934_s25 }
  0x15   : > { %p485_p1 = scmp.eq.s32.totalorder %s484_s4, 0  ;;  %p498_p2 = scmp.eq.s32.totalorder %s5093_s3, 1 }
  0x16   : > { %p503_p3 = scmp.ne.s32.totalorder %s4934_s25, %s4930_s2  ;;  %p504_p4 = scmp.eq.s32.totalorder %s3976_s28, 1 }
  0x17   : > { %s5108_s30 = scalar_select %p485_p1, %s4938_s26, %s487_s0  }
  0x18   : > { %p5110_p5 = por %p498_p2, %p497_p0  ;;  %p5114_p6 = por %p504_p4, %p503_p3 }
  0x19   : > { %7098 = sst [smem:[#allocation7_spill]] %s5108_s30  ;;  %p3979_p7 = scmp.ge.s32.totalorder %s4942_s27, 1 }
  0x1a   : > { %s7100_s22 = scalar_select %p5114_p6, 1, 0 }
  0x1b   : > { %p590_p8 = scmp.lt.s32.totalorder %s4942_s27, 3 }
  0x1c   : > { %7101 = sst [smem:[#allocation8_spill]] %s7100_s22 }
  0x1d   : > { %p591_p9 = pnand %p3979_p7, %p590_p8 }
  0x1e   : > { %p650_p10 = scmp.lt.s32.totalorder (!%p591_p9), %s5093_s3, 1  ;;  %s7102_s0 = sld [smem:[#allocation9_spill]] (!%p591_p9)  ;;  %v7079_v15 = vmov (!%p591_p9), 0.0   ;;  %vm4946_vm0 = vmmov (!%p591_p9), 0   ;;  %v4947_v20 = vmov (!%p591_p9), 0   ;;  %vm766_vm1 = vcmask (!%p591_p9), 64512  }
  0x1f   : > { %594 = sbr.rel (%p591_p9) target bundleno = 2977 (0xba1), region = 104  ;;  %s4944_s30 = smov (!%p591_p9), 120   ;;  %4130 = vmatprep.subr.mxu0 (!%p591_p9), %v7079_v15  ;;  %4132 = vmatprep.mubr.msk.f32.mxu0 (!%p591_p9), %vm4946_vm0, %v7079_v15  ;;  %vm1349_vm2 = vcmask (!%p591_p9), 130048   ;;  %vm1358_vm3 = vcmask (!%p591_p9), 195584   ;;  %vm1367_vm4 = vcmask (!%p591_p9), 261120   ;;  %vm1376_vm5 = vcmask (!%p591_p9), 326656  }
  0x20   : > { %s7103_s24 = sld [smem:[#allocation11_spill]] (!%p591_p9)  ;;  %4135 = vmatprep.subr.mxu1 (!%p591_p9), %v7079_v15  ;;  %4137 = vmatprep.mubr.msk.f32.mxu1 (!%p591_p9), %vm4946_vm0, %v7079_v15  ;;  %s7062_s28 = smov (!%p591_p9), 56   ;;  %vm1385_vm6 = vcmask (!%p591_p9), 392192   ;;  %vm1394_vm7 = vcmask (!%p591_p9), 457728   ;;  %vm1403_vm8 = vcmask (!%p591_p9), 523264   ;;  %vm1428_vm9 = vcmask (!%p591_p9), 588800  }
  0x21   : > { %4397 = vset.pattern.permute.xlu0 (!%p591_p9), %v4947_v20  ;;  %4398 = vset.pattern.permute.xlu1 (!%p591_p9), %v4947_v20  ;;  %s7109_s6 = sld [smem:[#allocation15_spill]] (!%p591_p9)  ;;  %s4954_s22 = smov (!%p591_p9), 40   ;;  %vm2127_vm10 = vcmask (!%p591_p9), 654336   ;;  %vm2136_vm11 = vcmask (!%p591_p9), 785408   ;;  %vm2145_vm12 = vcmask (!%p591_p9), 916480  }
  0x22   : > { %s7112_s26 = smov (!%p591_p9), 48   ;;  %s7113_s12 = sld [smem:[#allocation21_spill]] (!%p591_p9) }
  0x23   : > { %s7115_s7 = sld [smem:[#allocation16_spill]] (!%p591_p9)  ;;  %s7116_s10 = sld [smem:[#allocation19_spill]] (!%p591_p9) }
  0x24   : > { %s7117_s8 = sld [smem:[#allocation17_spill]] (!%p591_p9)  ;;  %s7118_s9 = sld [smem:[#allocation18_spill]] (!%p591_p9) }
  0x25   : > { %s7120_s11 = sld [smem:[#allocation20_spill]] (!%p591_p9)  ;;  %s7121_s29 = smov (!%p591_p9), 80  }
  0x26   : > { %s651_s23 = scalar_select %p650_p10, %s5093_s3, 1  ;;  %v657_v14 = vld [vmem:[%s7103_s24] sm:$0xff] }
  0x27   : > { %4131 = vmatpush3.msra.mxu0 %v657_v14  ;;  %4136 = vmatpush3.msra.mxu1 %v657_v14  ;;  %s7114_s24 = sld [smem:[#allocation12_spill]] }
  0x28   : > { %s4080_s1 = sshll.u32 %s651_s23, 7  ;;  %s7104_s23 = sld [smem:[#allocation10_spill]] }
  0x29   : > { %s5125_s4 = scalar_lea.vmem %s7102_s0, %s4080_s1  ;;  %s7058_s0 = smov 48  }
  0x2a   : > { %v5128_v0 = vld [vmem:[%s5125_s4 + $0x10] sm:$0xff]  ;;  %v5131_v1 = vld [vmem:[%s5125_s4] sm:$0xff]  ;;  %v663_v2 = vld [vmem:[%s5125_s4 + $0x18] sm:$0xff]  ;;  %s7111_s1 = smov 32  }
  0x2b   : > { %696 = vrot.lane.b32.xlu1 %v5128_v0, %s4944_s30  ;;  %692 = vrot.lane.b32.xlu0 %v5131_v1, %s4944_s30  ;;  %v661_v3 = vld [vmem:[%s5125_s4 + $0x8] sm:$0xff]  ;;  %v664_v5 = vld [vmem:[%s5125_s4 + $0x20] sm:$0xff] }
  0x2c   : > { %v665_v4 = vld [vmem:[%s5125_s4 + $0x28] sm:$0xff]  ;;  %v5146_v6 = vld [vmem:[%s5125_s4 + $0x38] sm:$0xff]  ;;  %v666_v7 = vld [vmem:[%s5125_s4 + $0x30] sm:$0xff] }
  0x2d   : > { %v5153_v8 = vld [vmem:[%s5125_s4 + $0x48] sm:$0xff]  ;;  %v5156_v9 = vld [vmem:[%s5125_s4 + $0x40] sm:$0xff]  ;;  %v5163_v10 = vld [vmem:[%s5125_s4 + $0x58] sm:$0xff] }
  0x2e   : > { %v5166_v11 = vld [vmem:[%s5125_s4 + $0x50] sm:$0xff]  ;;  %v5173_v12 = vld [vmem:[%s5125_s4 + $0x68] sm:$0xff]  ;;  %v5176_v13 = vld [vmem:[%s5125_s4 + $0x60] sm:$0xff] }
  0x2f   : > { %698 = vrot.lane.b32.xlu1 %v663_v2, %s4944_s30  ;;  %694 = vrot.lane.b32.xlu0 %v661_v3, %s4944_s30  ;;  %v5190_v16 = vld [vmem:[%s5125_s4 + $0x78] sm:$0xff]  ;;  %v5193_v17 = vld [vmem:[%s5125_s4 + $0x70] sm:$0xff]  ;;  %s7064_s4 = smov 8  }
  0x30   : > { %v656_v18 = vld [vmem:[%s7104_s23 + $0x8] sm:$0xff]  ;;  %v655_v19 = vld [vmem:[%s7104_s23] sm:$0xff]  ;;  %s7073_s23 = smov 64  }
  0x33   : > { %702 = vrot.lane.b32.xlu1 %v665_v4, %s4944_s30  ;;  %700 = vrot.lane.b32.xlu0 %v664_v5, %s4944_s30 }
  0x37   : > { %706 = vrot.lane.b32.xlu1 %v5146_v6, %s4944_s30  ;;  %704 = vrot.lane.b32.xlu0 %v666_v7, %s4944_s30 }
  0x3b   : > { %710 = vrot.lane.b32.xlu1 %v5153_v8, %s4944_s30  ;;  %708 = vrot.lane.b32.xlu0 %v5156_v9, %s4944_s30 }
  0x3f   : > { %714 = vrot.lane.b32.xlu1 %v5163_v10, %s4944_s30  ;;  %712 = vrot.lane.b32.xlu0 %v5166_v11, %s4944_s30 }
  0x43   : > { %718 = vrot.lane.b32.xlu1 %v5173_v12, %s4944_s30  ;;  %716 = vrot.lane.b32.xlu0 %v5176_v13, %s4944_s30 }
  0x47   : > { %722 = vrot.lane.b32.xlu1 %v5190_v16, %s4944_s30  ;;  %720 = vrot.lane.b32.xlu0 %v5193_v17, %s4944_s30  ;;  %s7060_s30 = smov 16  }
  0x4b   : > { %1107 = vperm.xlu0 %4397, %v656_v18   ;;  %1087 = vperm.xlu1 %4398, %v655_v19  }
  0x4f   : > { %1130 = vrot.lane.b32.xlu1 %v7079_v15, %s7064_s4  ;;  %1307 = vrot.lane.b32.xlu0 %v7079_v15, %s7062_s28  ;;  %s7106_s4 = sld [smem:[#allocation14_spill]]  ;;  %s7108_s28 = smov 56  }
  0x9d   : > { %v697_v21 = vpop.permute.xlu1 %696  ;;  %v693_v22 = vpop.permute.xlu0 %692 }
  0x9e   : > { %v742_v29 = vmax.f32 %v5128_v0, %v697_v21  ;;  %v740_v30 = vmax.f32 %v5131_v1, %v693_v22 }
  0xa1   : > { %v699_v23 = vpop.permute.xlu1 %698  ;;  %v695_v24 = vpop.permute.xlu0 %694 }
  0xa2   : > { %v743_v25 = vmax.f32 %v663_v2, %v699_v23  ;;  %v741_v26 = vmax.f32 %v661_v3, %v695_v24 }
  0xa4   : > { %v5211_v33 = vmax.f32 %v742_v29, %v743_v25  ;;  %v5213_v34 = vmax.f32 %v740_v30, %v741_v26 }
  0xa5   : > { %v703_v27 = vpop.permute.xlu1 %702  ;;  %v701_v28 = vpop.permute.xlu0 %700 }
  0xa6   : > { %v745_v31 = vmax.f32 %v665_v4, %v703_v27  ;;  %v744_v32 = vmax.f32 %v664_v5, %v701_v28  ;;  %v789_v40 = vmul.f32 %v5211_v33, %v5211_v33  ;;  %v788_v41 = vmul.f32 %v5213_v34, %v5213_v34 }
  0xa7   : > { %v768_v47 = vsel %vm766_vm1, %v5211_v33, 0.0  ;;  %v767_v48 = vsel %vm766_vm1, %v5213_v34, 0.0 }
  0xa8   : > { %v5216_v39 = vmax.f32 %v744_v32, %v745_v31  ;;  %v797_v50 = vsel %vm766_vm1, %v789_v40, 0.0  ;;  %v796_v51 = vsel %vm766_vm1, %v788_v41, 0.0  ;;  %v769_v59 = vadd.f32 %v768_v47, %v767_v48 }
  0xa9   : > { %v707_v35 = vpop.permute.xlu1 %706  ;;  %v705_v36 = vpop.permute.xlu0 %704  ;;  %v798_v0 = vadd.f32 %v797_v50, %v796_v51 }
  0xaa   : > { %v747_v37 = vmax.f32 %v5146_v6, %v707_v35  ;;  %v746_v38 = vmax.f32 %v666_v7, %v705_v36  ;;  %v790_v49 = vmul.f32 %v5216_v39, %v5216_v39  ;;  %v770_v55 = vsel %vm766_vm1, %v5216_v39, 0.0 }
  0xab   : > { %v771_v1 = vadd.f32 %v770_v55, %v769_v59 }
  0xac   : > { %v5222_v44 = vmax.f32 %v746_v38, %v747_v37  ;;  %v799_v60 = vsel %vm766_vm1, %v790_v49, 0.0 }
  0xad   : > { %v711_v42 = vpop.permute.xlu1 %710  ;;  %v709_v43 = vpop.permute.xlu0 %708 }
  0xae   : > { %v749_v45 = vmax.f32 %v5153_v8, %v711_v42  ;;  %v748_v46 = vmax.f32 %v5156_v9, %v709_v43  ;;  %v791_v56 = vmul.f32 %v5222_v44, %v5222_v44  ;;  %v772_v61 = vsel %vm766_vm1, %v5222_v44, 0.0 }
  0xaf   : > { %v800_v8 = vadd.f32 %v799_v60, %v798_v0  ;;  %v773_v9 = vadd.f32 %v772_v61, %v771_v1  ;;  %v968_v1 = vlaneseq }
  0xb0   : > { %v5234_v52 = vmax.f32 %v748_v46, %v749_v45  ;;  %v801_v4 = vsel %vm766_vm1, %v791_v56, 0.0 }
  0xb1   : > { %v715_v53 = vpop.permute.xlu1 %714  ;;  %v713_v54 = vpop.permute.xlu0 %712  ;;  %v802_v18 = vadd.f32 %v801_v4, %v800_v8  ;;  %v969_v4 = vshrl.u32 %v968_v1, 7 }
  0xb2   : > { %v751_v57 = vmax.f32 %v5163_v10, %v715_v53  ;;  %v750_v58 = vmax.f32 %v5166_v11, %v713_v54  ;;  %v792_v62 = vmul.f32 %v5234_v52, %v5234_v52  ;;  %v774_v5 = vsel %vm766_vm1, %v5234_v52, 0.0 }
  0xb3   : > { %v775_v19 = vadd.f32 %v774_v5, %v773_v9 }
  0xb4   : > { %v5247_v63 = vmax.f32 %v750_v58, %v751_v57  ;;  %v803_v11 = vsel %vm766_vm1, %v792_v62, 0.0 }
  0xb5   : > { %v719_v2 = vpop.permute.xlu1 %718  ;;  %v717_v3 = vpop.permute.xlu0 %716  ;;  %v804_v25 = vadd.f32 %v803_v11, %v802_v18 }
  0xb6   : > { %v793_v6 = vmul.f32 %v5247_v63, %v5247_v63  ;;  %v753_v7 = vmax.f32 %v5173_v12, %v719_v2  ;;  %v752_v10 = vmax.f32 %v5176_v13, %v717_v3  ;;  %v776_v14 = vsel %vm766_vm1, %v5247_v63, 0.0 }
  0xb7   : > { %v777_v26 = vadd.f32 %v776_v14, %v775_v19 }
  0xb8   : > { %v5259_v20 = vmax.f32 %v752_v10, %v753_v7  ;;  %v805_v23 = vsel %vm766_vm1, %v793_v6, 0.0  ;;  %v5296_v6 = vsub.s32 0, %v969_v4 }
  0xb9   : > { %v723_v21 = vpop.permute.xlu1 %722  ;;  %v721_v22 = vpop.permute.xlu0 %720  ;;  %v806_v29 = vadd.f32 %v805_v23, %v804_v25 }
  0xba   : > { %v755_v24 = vmax.f32 %v5190_v16, %v723_v21  ;;  %v754_v12 = vmax.f32 %v5193_v17, %v721_v22  ;;  %v778_v13 = vsel %vm766_vm1, %v5259_v20, 0.0  ;;  %v794_v27 = vmul.f32 %v5259_v20, %v5259_v20 }
  0xbb   : > { %v779_v30 = vadd.f32 %v778_v13, %v777_v26 }
  0xbc   : > { %v5268_v28 = vmax.f32 %v754_v12, %v755_v24  ;;  %v807_v31 = vsel %vm766_vm1, %v794_v27, 0.0  ;;  %v3986_v27 = vld [vmem:[%s7106_s4] ss:$0 sm:$0xff]  ;;  %s7107_s4 = smov 8  }
  0xbd   : > { %v808_v17 = vadd.f32 %v807_v31, %v806_v29 }
  0xbe   : > { %v780_v32 = vsel %vm766_vm1, %v5268_v28, 0.0  ;;  %v795_v16 = vmul.f32 %v5268_v28, %v5268_v28 }
  0xbf   : > { %v781_v35 = vadd.f32 %v780_v32, %v779_v30 }
  0xc0   : > { %v809_v36 = vsel %vm766_vm1, %v795_v16, 0.0 }
  0xc1   : > { %v782_v37 = vrot.slane %v781_v35, 4  ;;  %v810_v38 = vadd.f32 %v809_v36, %v808_v17 }
  0xc3   : > { %v783_v40 = vadd.f32 %v782_v37, %v781_v35  ;;  %v811_v41 = vrot.slane %v810_v38, 4 }
  0xc5   : > { %v784_v42 = vrot.slane %v783_v40, 2  ;;  %v812_v43 = vadd.f32 %v811_v41, %v810_v38 }
  0xc7   : > { %v785_v45 = vadd.f32 %v784_v42, %v783_v40  ;;  %v813_v46 = vrot.slane %v812_v43, 2 }
  0xc9   : > { %v786_v47 = vrot.slane %v785_v45, 1  ;;  %v814_v48 = vadd.f32 %v813_v46, %v812_v43 }
  0xca   : > { %v5278_v53 = vpop.permute.xlu0 %1107  ;;  %v5287_v55 = vpop.permute.xlu1 %1087 }
  0xcb   : > { %v787_v49 = vadd.f32 %v786_v47, %v785_v45  ;;  %v815_v50 = vrot.slane %v814_v48, 1  ;;  %v5283_v54 = vmul.f32 0.0, %v5278_v53  ;;  %v5292_v56 = vmul.f32 0.0, %v5287_v55 }
  0xcd   : > { %4133 = vmatmul.mubr.msk.f32.vlgmr.msra.gmra.mrb[0].mxu0 %vm766_vm1, %v787_v49  ;;  %v816_v51 = vadd.f32 %v815_v50, %v814_v48  ;;  %1162 = vrot.lane.b32.xlu1 %v5283_v54, %s7060_s30  ;;  %s7068_s30 = smov 32  }
  0xce   : > { %1283 = vrot.lane.b32.xlu0 %v5292_v56, %s7058_s0  ;;  %s7105_s0 = sld [smem:[#allocation13_spill]] }
  0xcf   : > { %4138 = vmatmul.mubr.msk.f32.vlgmr.msra.gmra.mrb[0].mxu1 %vm766_vm1, %v816_v51 }
  0xd0   : > { %4174 = vmatprep.mubr.msk.f32.mxu1 %vm4946_vm0, %v7079_v15 }
  0xd4   : > { %v3985_v19 = vld [vmem:[%s7105_s0] ss:$0 sm:$0xff]  ;;  %s7110_s0 = smov 16  }
 0x1a0   : > { %v886_v57 = vpop.f32.mrb[0].mxu0 }
 0x1a1   : > { %v963_v58 = vmul.f32 0.0078125, %v886_v57  ;;  %v4134_v59 = vpop.f32.mrb[1].mxu0 }
 0x1a2   : > { %v959_v60 = vpop.f32.mrb[0].mxu1 }
 0x1a3   : > { %v965_v61 = vmul.f32 %v963_v58, %v963_v58  ;;  %v964_v62 = vmul.f32 0.0078125, %v959_v60  ;;  %v4139_v0 = vpop.f32.mrb[1].mxu1  ;;  %v971_v7 = vrot.slane %v963_v58, %v5296_v6 }
 0x1a5   : > { %v966_v2 = vsub.f32 %v964_v62, %v965_v61  ;;  %v972_v9 = vsub.f32 %v5213_v34, %v971_v7  ;;  %v973_v11 = vsub.f32 %v5211_v33, %v971_v7  ;;  %v974_v14 = vsub.f32 %v5216_v39, %v971_v7 }
 0x1a6   : > { %v975_v18 = vsub.f32 %v5222_v44, %v971_v7  ;;  %v976_v21 = vsub.f32 %v5234_v52, %v971_v7  ;;  %v977_v22 = vsub.f32 %v5247_v63, %v971_v7  ;;  %v978_v23 = vsub.f32 %v5259_v20, %v971_v7 }
 0x1a7   : > { %v967_v3 = vmax.f32 %v966_v2, 0.0  ;;  %v979_v24 = vsub.f32 %v5268_v28, %v971_v7 }
 0x1a9   : > { %v980_v5 = vadd.f32 1e-05, %v967_v3 }
 0x1ab   : > { %4744 = vrsqrt.f32 %v980_v5 }
 0x1b5   : > { %v4745_v8 = vpop.eup %4744 }
 0x1b6   : > { %v985_v10 = vrot.slane %v4745_v8, %v5296_v6 }
 0x1b8   : > { %v986_v12 = vmul.f32 %v985_v10, %v972_v9  ;;  %v987_v25 = vmul.f32 %v985_v10, %v973_v11  ;;  %v988_v26 = vmul.f32 %v985_v10, %v974_v14  ;;  %v989_v13 = vmul.f32 %v985_v10, %v975_v18 }
 0x1b9   : > { %v990_v29 = vmul.f32 %v985_v10, %v976_v21  ;;  %v991_v30 = vmul.f32 %v985_v10, %v977_v22  ;;  %v992_v31 = vmul.f32 %v985_v10, %v978_v23  ;;  %v993_v32 = vmul.f32 %v985_v10, %v979_v24 }
 0x1ba   : > { %v1000_v16 = vmul.f32 %v3985_v19, %v986_v12  ;;  %v1001_v17 = vmul.f32 %v3985_v19, %v987_v25  ;;  %v1002_v35 = vmul.f32 %v3985_v19, %v988_v26  ;;  %v1003_v43 = vmul.f32 %v3985_v19, %v989_v13 }
 0x1bb   : > { %v1004_v46 = vmul.f32 %v3985_v19, %v990_v29  ;;  %v1005_v51 = vmul.f32 %v3985_v19, %v991_v30  ;;  %v1006_v62 = vmul.f32 %v3985_v19, %v992_v31  ;;  %v1007_v5 = vmul.f32 %v3985_v19, %v993_v32 }
 0x1bc   : > { %v1014_v36 = vadd.f32 %v3986_v27, %v1000_v16  ;;  %v1015_v37 = vadd.f32 %v3986_v27, %v1001_v17  ;;  %v1016_v38 = vadd.f32 %v3986_v27, %v1002_v35  ;;  %v1017_v45 = vadd.f32 %v3986_v27, %v1003_v43 }
 0x1bd   : > { %v1018_v48 = vadd.f32 %v3986_v27, %v1004_v46  ;;  %v1019_v61 = vadd.f32 %v3986_v27, %v1005_v51  ;;  %v1020_v2 = vadd.f32 %v3986_v27, %v1006_v62  ;;  %v1021_v14 = vadd.f32 %v3986_v27, %v1007_v5  ;;  %v1418_v62 = vld [vmem:[%s7109_s6 + $0x30] sm:$0xff] }
 0x1be   : > { %v3987_v40 = vmul.f32 -1.442695, %v1014_v36  ;;  %v3988_v41 = vmul.f32 -1.442695, %v1015_v37  ;;  %v3989_v42 = vmul.f32 -1.442695, %v1016_v38 }
 0x1bf   : > { %v3990_v47 = vmul.f32 -1.442695, %v1017_v45  ;;  %v3991_v50 = vmul.f32 -1.442695, %v1018_v48  ;;  %v3992_v1 = vmul.f32 -1.442695, %v1019_v61 }
 0x1c0   : > { %4746 = vpow2.f32 %v3987_v40  ;;  %v3993_v4 = vmul.f32 -1.442695, %v1020_v2  ;;  %v3994_v22 = vmul.f32 -1.442695, %v1021_v14  ;;  %v1412_v40 = vld [vmem:[%s7109_s6] sm:$0xff] }
 0x1c1   : > { %4748 = vpow2.f32 %v3988_v41  ;;  %v1413_v41 = vld [vmem:[%s7109_s6 + $0x8] sm:$0xff] }
 0x1c2   : > { %4750 = vpow2.f32 %v3989_v42  ;;  %v4226_v46 = vpack.c.bf16 %v1413_v41, %v1412_v40 }
 0x1c3   : > { %4752 = vpow2.f32 %v3990_v47  ;;  %v1414_v47 = vld [vmem:[%s7109_s6 + $0x10] sm:$0xff] }
 0x1c4   : > { %4227 = vmatprep.subr.bf16.mxu0 %v4226_v46 }
 0x1c5   : > { %4229 = vmatpush3.bf16.msra.mxu0 %v4226_v46 }
 0x1ca   : > { %v4747_v49 = vpop.eup %4746 }
 0x1cb   : > { %v4749_v57 = vpop.eup %4748  ;;  %v1046_v58 = vadd.f32 1.0, %v4747_v49 }
 0x1cc   : > { %v4751_v59 = vpop.eup %4750  ;;  %v1047_v60 = vadd.f32 1.0, %v4749_v57  ;;  %v1416_v57 = vld [vmem:[%s7109_s6 + $0x20] sm:$0xff] }
 0x1cd   : > { %4754 = vrcp.f32 %v1046_v58  ;;  %v1048_v0 = vadd.f32 1.0, %v4751_v59  ;;  %v4753_v3 = vpop.eup %4752  ;;  %v1417_v58 = vld [vmem:[%s7109_s6 + $0x28] sm:$0xff] }
 0x1ce   : > { %4756 = vpow2.f32 %v3991_v50  ;;  %v1049_v8 = vadd.f32 1.0, %v4753_v3  ;;  %v4234_v59 = vpack.c.bf16 %v1417_v58, %v1416_v57 }
 0x1cf   : > { %4758 = vrcp.f32 %v1047_v60 }
 0x1d0   : > { %4760 = vrcp.f32 %v1048_v0  ;;  %v1419_v0 = vld [vmem:[%s7109_s6 + $0x38] sm:$0xff] }
 0x1d1   : > { %4762 = vpow2.f32 %v3992_v1  ;;  %v4238_v1 = vpack.c.bf16 %v1419_v0, %v1418_v62 }
 0x1d2   : > { %4764 = vpow2.f32 %v3993_v4  ;;  %v1420_v4 = vld [vmem:[%s7109_s6 + $0x40] sm:$0xff] }
 0x1d3   : > { %4766 = vrcp.f32 %v1049_v8 }
 0x1d7   : > { %v4755_v7 = vpop.eup %4754 }
 0x1d8   : > { %v4757_v9 = vpop.eup %4756  ;;  %v5314_v10 = vmul.f32 %v4755_v7, %v1014_v36 }
 0x1d9   : > { %v4759_v11 = vpop.eup %4758  ;;  %v1050_v18 = vadd.f32 1.0, %v4757_v9 }
 0x1da   : > { %1132 = vrot.lane.b32.xlu0 %v5314_v10, %s7107_s4  ;;  %1219 = vrot.lane.b32.xlu1 %v5314_v10, %s7068_s30  ;;  %v5320_v21 = vmul.f32 %v4759_v11, %v1015_v37  ;;  %v4761_v19 = vpop.eup %4760  ;;  %v1098_v37 = vrot.slane %v5314_v10, 1  ;;  %v1078_v51 = vrot.slane %v5314_v10, 7 }
 0x1db   : > { %4768 = vrcp.f32 %v1050_v18  ;;  %v4763_v23 = vpop.eup %4762  ;;  %v5326_v24 = vmul.f32 %v4761_v19, %v1016_v38 }
 0x1dc   : > { %4770 = vpow2.f32 %v3994_v22  ;;  %v1051_v12 = vadd.f32 1.0, %v4763_v23  ;;  %v4765_v25 = vpop.eup %4764  ;;  %v1111_v42 = vmul.f32 %v5278_v53, %v1098_v37  ;;  %v5403_v60 = vmul.f32 %v5287_v55, %v1078_v51 }
 0x1dd   : > { %v4767_v26 = vpop.eup %4766  ;;  %v1052_v13 = vadd.f32 1.0, %v4765_v25  ;;  %v1100_v3 = vrot.slane %v5326_v24, 1  ;;  %v1080_v7 = vrot.slane %v5326_v24, 7 }
 0x1de   : > { %1134 = vrot.lane.b32.xlu0 %v5320_v21, %s7107_s4  ;;  %1221 = vrot.lane.b32.xlu1 %v5320_v21, %s7068_s30  ;;  %4772 = vrcp.f32 %v1051_v12  ;;  %v5336_v27 = vmul.f32 %v4767_v26, %v1017_v45  ;;  %v1079_v45 = vrot.slane %v5320_v21, 7 }
 0x1df   : > { %4774 = vrcp.f32 %v1052_v13  ;;  %v1113_v5 = vmul.f32 %v5278_v53, %v1100_v3  ;;  %v5428_v8 = vmul.f32 %v5287_v55, %v1080_v7 }
 0x1e0   : > { %v5389_v50 = vmul.f32 %v5287_v55, %v1079_v45  ;;  %v1081_v9 = vrot.slane %v5336_v27, 7  ;;  %v1101_v11 = vrot.slane %v5336_v27, 1 }
 0x1e2   : > { %1293 = vrot.lane.b32.xlu0 %v5320_v21, %s7108_s28  ;;  %1136 = vrot.lane.b32.xlu1 %v5326_v24, %s7107_s4  ;;  %v5436_v10 = vmul.f32 %v5287_v55, %v1081_v9 }
 0x1e5   : > { %v4769_v29 = vpop.eup %4768 }
 0x1e6   : > { %1223 = vrot.lane.b32.xlu0 %v5326_v24, %s7068_s30  ;;  %1295 = vrot.lane.b32.xlu1 %v5326_v24, %s7108_s28  ;;  %v4771_v30 = vpop.eup %4770  ;;  %v5342_v31 = vmul.f32 %v4769_v29, %v1018_v48  ;;  %v1415_v48 = vld [vmem:[%s7109_s6 + $0x18] sm:$0xff]  ;;  %s7119_s6 = smov 64  }
 0x1e7   : > { %v1053_v32 = vadd.f32 1.0, %v4771_v30  ;;  %v4230_v49 = vpack.c.bf16 %v1415_v48, %v1414_v47 }
 0x1e8   : > { %v4773_v16 = vpop.eup %4772  ;;  %v1102_v18 = vrot.slane %v5342_v31, 1  ;;  %v1082_v19 = vrot.slane %v5342_v31, 7 }
 0x1e9   : > { %4776 = vrcp.f32 %v1053_v32  ;;  %v5352_v17 = vmul.f32 %v4773_v16, %v1019_v61  ;;  %v4775_v35 = vpop.eup %4774  ;;  %4231 = vmatprep.subr.bf16.mxu0 %v4230_v49  ;;  %v1099_v61 = vrot.slane %v5320_v21, 1  ;;  %v5488_v32 = vpop.permute.xlu0 %1307 }
 0x1ea   : > { %1225 = vrot.lane.b32.xlu0 %v5336_v27, %s7068_s30  ;;  %1138 = vrot.lane.b32.xlu1 %v5336_v27, %s7107_s4  ;;  %v5358_v36 = vmul.f32 %v4775_v35, %v1020_v2  ;;  %v1115_v21 = vmul.f32 %v5278_v53, %v1102_v18  ;;  %v5454_v22 = vmul.f32 %v5287_v55, %v1082_v19  ;;  %v1131_v16 = vpop.permute.xlu1 %1130  ;;  %v5496_v35 = vld [vmem:[%s7113_s12] sm:$0xff]  ;;  %s7075_s12 = smov 96  }
 0x1eb   : > { %4233 = vmatpush3.bf16.msra.mxu0 %v4230_v49  ;;  %v1112_v2 = vmul.f32 %v5278_v53, %v1099_v61  ;;  %v1083_v23 = vrot.slane %v5352_v17, 7  ;;  %v1103_v12 = vrot.slane %v5352_v17, 1 }
 0x1ec   : > { %4235 = vmatprep.subr.bf16.mxu0 %v4234_v59  ;;  %v1104_v26 = vrot.slane %v5358_v36, 1 }
 0x1ed   : > { %v5462_v24 = vmul.f32 %v5287_v55, %v1083_v23  ;;  %v1116_v25 = vmul.f32 %v5278_v53, %v1103_v12 }
 0x1ee   : > { %1297 = vrot.lane.b32.xlu0 %v5336_v27, %s7108_s28  ;;  %1140 = vrot.lane.b32.xlu1 %v5342_v31, %s7107_s4  ;;  %v1117_v13 = vmul.f32 %v5278_v53, %v1104_v26  ;;  %v1084_v27 = vrot.slane %v5358_v36, 7  ;;  %v1163_v37 = vpop.permute.xlu1 %1162 }
 0x1ef   : > { %4237 = vmatpush3.bf16.msra.mxu0 %v4234_v59 }
 0x1f0   : > { %4239 = vmatprep.subr.bf16.mxu0 %v4238_v1  ;;  %v5480_v29 = vmul.f32 %v5287_v55, %v1084_v27 }
 0x1f2   : > { %1227 = vrot.lane.b32.xlu0 %v5342_v31, %s7068_s30  ;;  %1299 = vrot.lane.b32.xlu1 %v5342_v31, %s7108_s28 }
 0x1f3   : > { %v4777_v38 = vpop.eup %4776  ;;  %4241 = vmatpush3.bf16.msra.mxu0 %v4238_v1 }
 0x1f4   : > { %v5376_v43 = vmul.f32 %v4777_v38, %v1021_v14  ;;  %4156 = vmatprep.subr.mxu0 %v1420_v4  ;;  %v1114_v14 = vmul.f32 %v5278_v53, %v1101_v11 }
 0x1f6   : > { %1229 = vrot.lane.b32.xlu0 %v5352_v17, %s7068_s30  ;;  %1142 = vrot.lane.b32.xlu1 %v5352_v17, %s7107_s4  ;;  %v1118_v30 = vrot.slane %v5376_v43, 7 }
 0x1f7   : > { %4157 = vmatpush3.msra.mxu0 %v1420_v4 }
 0x1f8   : > { %v1119_v31 = vmul.f32 %v1118_v30, %v5287_v55  ;;  %4184 = vmatprep.subr.mxu0 %v5496_v35 }
 0x1fa   : > { %1301 = vrot.lane.b32.xlu0 %v5352_v17, %s7108_s28  ;;  %1144 = vrot.lane.b32.xlu1 %v5358_v36, %s7107_s4  ;;  %v1120_v17 = vrot.slane %v5376_v43, 1 }
 0x1fc   : > { %v1121_v38 = vmul.f32 %v1120_v17, %v5278_v53 }
 0x1fe   : > { %1231 = vrot.lane.b32.xlu0 %v5358_v36, %s7068_s30  ;;  %1303 = vrot.lane.b32.xlu1 %v5358_v36, %s7108_s28  ;;  %s4953_s30 = smov 24   ;;  %v5501_v36 = vpop.permute.xlu0 %1283 }
 0x202   : > { %1164 = vrot.lane.b32.xlu0 %v1111_v42, %s7110_s0  ;;  %1233 = vrot.lane.b32.xlu1 %v5376_v43, %s7111_s1 }
 0x206   : > { %1196 = vrot.lane.b32.xlu0 %v5389_v50, %s4953_s30  ;;  %1305 = vrot.lane.b32.xlu1 %v5376_v43, %s7108_s28  ;;  %s7077_s28 = smov 80  }
 0x20a   : > { %1244 = vrot.lane.b32.xlu0 %v1111_v42, %s4954_s22  ;;  %1194 = vrot.lane.b32.xlu1 %v5403_v60, %s4953_s30 }
 0x20e   : > { %1166 = vrot.lane.b32.xlu0 %v1112_v2, %s7110_s0  ;;  %1246 = vrot.lane.b32.xlu1 %v1112_v2, %s4954_s22 }
 0x212   : > { %1269 = vrot.lane.b32.xlu0 %v5389_v50, %s7112_s26  ;;  %1168 = vrot.lane.b32.xlu1 %v1113_v5, %s7110_s0 }
 0x216   : > { %1198 = vrot.lane.b32.xlu0 %v5428_v8, %s4953_s30  ;;  %1271 = vrot.lane.b32.xlu1 %v5428_v8, %s7112_s26 }
 0x21a   : > { %1317 = vrot.lane.b32.xlu0 %v1112_v2, %s7073_s23  ;;  %1200 = vrot.lane.b32.xlu1 %v5436_v10, %s4953_s30 }
 0x21e   : > { %1319 = vrot.lane.b32.xlu0 %v1113_v5, %s7073_s23  ;;  %1248 = vrot.lane.b32.xlu1 %v1113_v5, %s4954_s22 }
 0x222   : > { %1170 = vrot.lane.b32.xlu0 %v1114_v14, %s7110_s0  ;;  %1250 = vrot.lane.b32.xlu1 %v1114_v14, %s4954_s22 }
 0x226   : > { %1273 = vrot.lane.b32.xlu0 %v5436_v10, %s7112_s26  ;;  %1172 = vrot.lane.b32.xlu1 %v1115_v21, %s7110_s0 }
 0x22a   : > { %1202 = vrot.lane.b32.xlu0 %v5454_v22, %s4953_s30  ;;  %1275 = vrot.lane.b32.xlu1 %v5454_v22, %s7112_s26 }
 0x22e   : > { %1321 = vrot.lane.b32.xlu0 %v1114_v14, %s7073_s23  ;;  %1204 = vrot.lane.b32.xlu1 %v5462_v24, %s4953_s30 }
 0x232   : > { %1323 = vrot.lane.b32.xlu0 %v1115_v21, %s7073_s23  ;;  %1252 = vrot.lane.b32.xlu1 %v1115_v21, %s4954_s22  ;;  %v1341_v21 = vsel %vm766_vm1, %v5292_v56, %v1131_v16 }
 0x233   : > { %v1350_v12 = vsel %vm1349_vm2, %v1341_v21, %v1163_v37 }
 0x236   : > { %1174 = vrot.lane.b32.xlu0 %v1116_v25, %s7110_s0  ;;  %1254 = vrot.lane.b32.xlu1 %v1116_v25, %s4954_s22 }
 0x23a   : > { %1277 = vrot.lane.b32.xlu0 %v5462_v24, %s7112_s26  ;;  %1176 = vrot.lane.b32.xlu1 %v1117_v13, %s7110_s0 }
 0x23e   : > { %1206 = vrot.lane.b32.xlu0 %v5480_v29, %s4953_s30  ;;  %1279 = vrot.lane.b32.xlu1 %v5480_v29, %s7112_s26 }
 0x242   : > { %1325 = vrot.lane.b32.xlu0 %v1116_v25, %s7073_s23  ;;  %1208 = vrot.lane.b32.xlu1 %v1119_v31, %s4953_s30 }
 0x246   : > { %1256 = vrot.lane.b32.xlu0 %v1117_v13, %s4954_s22  ;;  %1327 = vrot.lane.b32.xlu1 %v1117_v13, %s7073_s23 }
 0x24a   : > { %1258 = vrot.lane.b32.xlu0 %v1121_v38, %s4954_s22  ;;  %1281 = vrot.lane.b32.xlu1 %v1119_v31, %s7112_s26  ;;  %s4960_s22 = smov [#allocation2]  }
 0x24c   : > { %v1220_v40 = vpop.permute.xlu1 %1219  ;;  %v1133_v41 = vpop.permute.xlu0 %1132 }
 0x24d   : > { %v1342_v30 = vsel %vm766_vm1, %v5403_v60, %v1133_v41 }
 0x24e   : > { %1331 = vrot.lane.b32.xlu0 %v5283_v54, %s7073_s23  ;;  %1329 = vrot.lane.b32.xlu1 %v1121_v38, %s7073_s23 }
 0x250   : > { %v1222_v42 = vpop.permute.xlu1 %1221  ;;  %v5509_v43 = vpop.permute.xlu0 %1134 }
 0x254   : > { %v5511_v45 = vpop.permute.xlu1 %1136  ;;  %v1294_v46 = vpop.permute.xlu0 %1293 }
 0x258   : > { %v1296_v47 = vpop.permute.xlu1 %1295  ;;  %v5513_v48 = vpop.permute.xlu0 %1223 }
 0x25c   : > { %v5515_v49 = vpop.permute.xlu1 %1138  ;;  %v5517_v51 = vpop.permute.xlu0 %1225 }
 0x260   : > { %v5519_v57 = vpop.permute.xlu1 %1140  ;;  %v5521_v58 = vpop.permute.xlu0 %1297 }
 0x264   : > { %v5523_v59 = vpop.permute.xlu1 %1299  ;;  %v5525_v61 = vpop.permute.xlu0 %1227 }
 0x268   : > { %v5527_v62 = vpop.permute.xlu1 %1142  ;;  %v5529_v0 = vpop.permute.xlu0 %1229 }
 0x26c   : > { %v5531_v1 = vpop.permute.xlu1 %1144  ;;  %v5533_v2 = vpop.permute.xlu0 %1301 }
 0x270   : > { %v5535_v3 = vpop.permute.xlu1 %1303  ;;  %v5537_v4 = vpop.permute.xlu0 %1231 }
 0x274   : > { %v5539_v5 = vpop.permute.xlu1 %1233  ;;  %v1165_v7 = vpop.permute.xlu0 %1164 }
 0x275   : > { %v1351_v31 = vsel %vm1349_vm2, %v1342_v30, %v1165_v7 }
 0x278   : > { %v5541_v9 = vpop.permute.xlu1 %1305  ;;  %v1197_v11 = vpop.permute.xlu0 %1196 }
 0x279   : > { %v1360_v16 = vsel %vm1358_vm3, %v1351_v31, %v1197_v11 }
 0x27a   : > { %v1369_v21 = vsel %vm1367_vm4, %v1360_v16, %v1222_v42 }
 0x27c   : > { %v1195_v14 = vpop.permute.xlu1 %1194  ;;  %v1245_v18 = vpop.permute.xlu0 %1244 }
 0x27d   : > { %v1359_v25 = vsel %vm1358_vm3, %v1350_v12, %v1195_v14 }
 0x27e   : > { %v1368_v27 = vsel %vm1367_vm4, %v1359_v25, %v1220_v40 }
 0x27f   : > { %v1377_v17 = vsel %vm1376_vm5, %v1368_v27, %v1245_v18 }
 0x280   : > { %v1247_v19 = vpop.permute.xlu1 %1246  ;;  %v1167_v23 = vpop.permute.xlu0 %1166 }
 0x281   : > { %v1378_v40 = vsel %vm1376_vm5, %v1369_v21, %v1247_v19 }
 0x284   : > { %v1169_v26 = vpop.permute.xlu1 %1168  ;;  %v1270_v13 = vpop.permute.xlu0 %1269 }
 0x285   : > { %v1386_v14 = vsel %vm1385_vm6, %v1377_v17, %v1270_v13 }
 0x286   : > { %v1395_v60 = vsel %vm1394_vm7, %v1386_v14, %v1294_v46  ;;  %v1343_v46 = vsel %vm766_vm1, %v5389_v50, %v5509_v43 }
 0x287   : > { %v1352_v30 = vsel %vm1349_vm2, %v1343_v46, %v1167_v23 }
 0x288   : > { %v1272_v37 = vpop.permute.xlu1 %1271  ;;  %v1199_v38 = vpop.permute.xlu0 %1198 }
 0x289   : > { %v1387_v7 = vsel %vm1385_vm6, %v1378_v40, %v1272_v37  ;;  %v1361_v31 = vsel %vm1358_vm3, %v1352_v30, %v1199_v38 }
 0x28a   : > { %v1396_v25 = vsel %vm1394_vm7, %v1387_v7, %v1296_v47  ;;  %v1344_v47 = vsel %vm766_vm1, %v5428_v8, %v5511_v45 }
 0x28b   : > { %v1353_v37 = vsel %vm1349_vm2, %v1344_v47, %v1169_v26 }
 0x28c   : > { %v1201_v12 = vpop.permute.xlu1 %1200  ;;  %v1318_v41 = vpop.permute.xlu0 %1317 }
 0x28d   : > { %v1404_v11 = vsel %vm1403_vm8, %v1395_v60, %v1318_v41  ;;  %v1362_v14 = vsel %vm1358_vm3, %v1353_v37, %v1201_v12 }
 0x28e   : > { %4158 = vmatprep.mubr.msk.f32.mxu0 %vm1428_vm9, %v1404_v11  ;;  %v1371_v38 = vsel %vm1367_vm4, %v1362_v14, %v5517_v51  ;;  %v1347_v14 = vsel %vm766_vm1, %v5462_v24, %v5527_v62 }
 0x290   : > { %v1249_v18 = vpop.permute.xlu1 %1248  ;;  %v1320_v13 = vpop.permute.xlu0 %1319 }
 0x291   : > { %v1405_v27 = vsel %vm1403_vm8, %v1396_v25, %v1320_v13 }
 0x292   : > { %4159 = vmatmul.mubr.msk.f32.vlgmr.msra.gmra.mrb[2].mxu0 %vm1428_vm9, %v1405_v27 }
 0x293   : > { %4185 = vmatpush3.msra.mxu0 %v5496_v35  ;;  %v1370_v35 = vsel %vm1367_vm4, %v1361_v31, %v5513_v48 }
 0x294   : > { %v1251_v42 = vpop.permute.xlu1 %1250  ;;  %v1171_v19 = vpop.permute.xlu0 %1170  ;;  %v1379_v21 = vsel %vm1376_vm5, %v1370_v35, %v1249_v18 }
 0x295   : > { %v1380_v40 = vsel %vm1376_vm5, %v1371_v38, %v1251_v42 }
 0x298   : > { %v1173_v16 = vpop.permute.xlu1 %1172  ;;  %v1274_v17 = vpop.permute.xlu0 %1273 }
 0x299   : > { %v1388_v23 = vsel %vm1385_vm6, %v1379_v21, %v1274_v17 }
 0x29a   : > { %v1397_v8 = vsel %vm1394_vm7, %v1388_v23, %v5521_v58  ;;  %v1345_v58 = vsel %vm766_vm1, %v5436_v10, %v5515_v49 }
 0x29b   : > { %v1354_v25 = vsel %vm1349_vm2, %v1345_v58, %v1171_v19 }
 0x29c   : > { %v1276_v50 = vpop.permute.xlu1 %1275  ;;  %v1203_v43 = vpop.permute.xlu0 %1202 }
 0x29d   : > { %v1389_v48 = vsel %vm1385_vm6, %v1380_v40, %v1276_v50  ;;  %v1363_v13 = vsel %vm1358_vm3, %v1354_v25, %v1203_v43 }
 0x29e   : > { %v1398_v41 = vsel %vm1394_vm7, %v1389_v48, %v5523_v59  ;;  %v1346_v59 = vsel %vm766_vm1, %v5454_v22, %v5519_v57  ;;  %v1372_v30 = vsel %vm1367_vm4, %v1363_v13, %v5525_v61 }
 0x29f   : > { %v1355_v46 = vsel %vm1349_vm2, %v1346_v59, %v1173_v16 }
 0x2a0   : > { %v1205_v60 = vpop.permute.xlu1 %1204  ;;  %v1322_v45 = vpop.permute.xlu0 %1321 }
 0x2a1   : > { %v1406_v26 = vsel %vm1403_vm8, %v1397_v8, %v1322_v45  ;;  %v1364_v31 = vsel %vm1358_vm3, %v1355_v46, %v1205_v60 }
 0x2a2   : > { %4161 = vmatprep.mubr.msk.f32.mxu0 %vm1428_vm9, %v1406_v26  ;;  %v1373_v47 = vsel %vm1367_vm4, %v1364_v31, %v5529_v0  ;;  %v1348_v0 = vsel %vm766_vm1, %v5480_v29, %v5531_v1 }
 0x2a4   : > { %v1253_v12 = vpop.permute.xlu1 %1252  ;;  %v1324_v7 = vpop.permute.xlu0 %1323 }
 0x2a5   : > { %v1407_v51 = vsel %vm1403_vm8, %v1398_v41, %v1324_v7  ;;  %v1381_v17 = vsel %vm1376_vm5, %v1372_v30, %v1253_v12 }
 0x2a6   : > { %4162 = vmatmul.mubr.msk.f32.gmra.mrb[4].mxu0 %vm1428_vm9, %v1407_v51 }
 0x2a8   : > { %v1255_v11 = vpop.permute.xlu1 %1254  ;;  %v1175_v18 = vpop.permute.xlu0 %1174 }
 0x2a9   : > { %v1382_v37 = vsel %vm1376_vm5, %v1373_v47, %v1255_v11  ;;  %v1356_v21 = vsel %vm1349_vm2, %v1347_v14, %v1175_v18 }
 0x2ac   : > { %v1177_v27 = vpop.permute.xlu1 %1176  ;;  %v1278_v42 = vpop.permute.xlu0 %1277 }
 0x2ad   : > { %v1390_v19 = vsel %vm1385_vm6, %v1381_v17, %v1278_v42  ;;  %v1357_v50 = vsel %vm1349_vm2, %v1348_v0, %v1177_v27 }
 0x2ae   : > { %v1399_v22 = vsel %vm1394_vm7, %v1390_v19, %v5533_v2 }
 0x2b0   : > { %v1280_v10 = vpop.permute.xlu1 %1279  ;;  %v1207_v49 = vpop.permute.xlu0 %1206 }
 0x2b1   : > { %v1391_v61 = vsel %vm1385_vm6, %v1382_v37, %v1280_v10  ;;  %v1365_v2 = vsel %vm1358_vm3, %v1356_v21, %v1207_v49 }
 0x2b2   : > { %v1400_v23 = vsel %vm1394_vm7, %v1391_v61, %v5535_v3  ;;  %v1374_v29 = vsel %vm1367_vm4, %v1365_v2, %v5537_v4 }
 0x2b4   : > { %v1209_v35 = vpop.permute.xlu1 %1208  ;;  %v1326_v57 = vpop.permute.xlu0 %1325 }
 0x2b5   : > { %v1408_v16 = vsel %vm1403_vm8, %v1399_v22, %v1326_v57  ;;  %v1366_v40 = vsel %vm1358_vm3, %v1357_v50, %v1209_v35 }
 0x2b6   : > { %4164 = vmatprep.mubr.msk.f32.mxu0 %vm1428_vm9, %v1408_v16  ;;  %v1375_v60 = vsel %vm1367_vm4, %v1366_v40, %v5539_v5 }
 0x2b8   : > { %v1328_v43 = vpop.permute.xlu1 %1327  ;;  %v1257_v38 = vpop.permute.xlu0 %1256 }
 0x2b9   : > { %v1409_v24 = vsel %vm1403_vm8, %v1400_v23, %v1328_v43  ;;  %v1383_v62 = vsel %vm1376_vm5, %v1374_v29, %v1257_v38 }
 0x2ba   : > { %4165 = vmatmul.mubr.msk.f32.gmra.mrb[6].mxu0 %vm1428_vm9, %v1409_v24 }
 0x2bc   : > { %v1282_v1 = vpop.permute.xlu1 %1281  ;;  %v1259_v8 = vpop.permute.xlu0 %1258 }
 0x2bd   : > { %v1392_v45 = vsel %vm1385_vm6, %v1383_v62, %v1282_v1  ;;  %v1384_v3 = vsel %vm1376_vm5, %v1375_v60, %v1259_v8 }
 0x2be   : > { %v1393_v48 = vsel %vm1385_vm6, %v1384_v3, %v5501_v36  ;;  %v1401_v4 = vsel %vm1394_vm7, %v1392_v45, %v5541_v9 }
 0x2bf   : > { %v1402_v26 = vsel %vm1394_vm7, %v1393_v48, %v5488_v32  ;;  %v3995_v32 = vld [vmem:[%s7115_s7] ss:$0 sm:$0xff]  ;;  %s7081_s7 = smov 112  }
 0x2c0   : > { %v1330_v12 = vpop.permute.xlu1 %1329  ;;  %v1332_v41 = vpop.permute.xlu0 %1331 }
 0x2c1   : > { %v1410_v7 = vsel %vm1403_vm8, %v1401_v4, %v1330_v12  ;;  %v1411_v5 = vsel %vm1403_vm8, %v1402_v26, %v1332_v41 }
 0x2c2   : > { %4167 = vmatprep.mubr.msk.f32.mxu0 %vm1428_vm9, %v1410_v7 }
 0x2c3   : > { %4168 = vmatmul.mubr.msk.f32.gmra.mrb[8].mxu0 %vm1428_vm9, %v1411_v5 }
 0x2c4   : > { %4186 = vmatprep.mubr.msk.f32.mxu0 %vm766_vm1, %v5213_v34  ;;  %v658_v34 = vld [vmem:[%s7114_s24] sm:$0xff] }
 0x2c7   : > { %4187 = vmatmul.mubr.msk.f32.vlgmr.msra.gmra.mrb[10].mxu0 %vm766_vm1, %v5211_v33  ;;  %v4956_v33 = vmov 0.0|0.0  }
 0x2c8   : > { %4189 = vmatprep.mubr.msk.f32.mxu0 %vm766_vm1, %v5216_v39  ;;  %4242 = vmatprep.subr.bf16.mxu1 %v4956_v33  ;;  %v659_v39 = vld [vmem:[%s7114_s24 + $0x8] sm:$0xff] }
 0x2c9   : > { %4275 = vmatprep.subr.bf16.mxu0 %v4956_v33 }
 0x2cb   : > { %4190 = vmatmul.mubr.msk.f32.gmra.mrb[12].mxu0 %vm766_vm1, %v5222_v44  ;;  %v5669_v44 = vpack.c.bf16 %v659_v39, %v658_v34 }
 0x2cc   : > { %4192 = vmatprep.mubr.msk.f32.mxu0 %vm766_vm1, %v5234_v52 }
 0x2cd   : > { %4244 = vmatpush3.bf16.msra.mxu1 %v5669_v44  ;;  %4277 = vmatpush3.bf16.msra.mxu0 %v5669_v44 }
 0x2ce   : > { %4245 = vmatprep.subr.bf16.mxu1 %v4956_v33  ;;  %4278 = vmatprep.subr.bf16.mxu0 %v4956_v33 }
 0x2cf   : > { %4193 = vmatmul.mubr.msk.f32.gmra.mrb[14].mxu0 %vm766_vm1, %v5247_v63 }
 0x2d0   : > { %4195 = vmatprep.mubr.msk.f32.mxu0 %vm766_vm1, %v5259_v20 }
 0x2d3   : > { %4196 = vmatmul.mubr.msk.f32.gmra.mrb[16].mxu0 %vm766_vm1, %v5268_v28 }
 0x2d4   : > { %4202 = vmatprep.mubr.msk.f32.mxu0 %vm4946_vm0, %v7079_v15 }
 0x365   : > { %v4160_v52 = vpop.f32.mrb[2].mxu0 }
 0x366   : > { %v1519_v63 = vpop.f32.mrb[3].mxu0  ;;  %v5678_v36 = vadd.f32 %v4160_v52, %v3995_v32 }
 0x367   : > { %v5680_v9 = vadd.f32 %v3995_v32, %v1519_v63 }
 0x368   : > { %v1582_v11 = vmul.f32 %v5678_v36, %v5678_v36  ;;  %v1561_v58 = vsel %vm1349_vm2, %v5678_v36, 0.0 }
 0x369   : > { %v1581_v18 = vmul.f32 %v5680_v9, %v5680_v9  ;;  %v1560_v25 = vsel %vm1349_vm2, %v5680_v9, 0.0 }
 0x36a   : > { %v1590_v27 = vsel %vm1349_vm2, %v1582_v11, 0.0  ;;  %v1562_v30 = vadd.f32 %v1561_v58, %v1560_v25 }
 0x36b   : > { %v1589_v42 = vsel %vm1349_vm2, %v1581_v18, 0.0 }
 0x36c   : > { %v1591_v49 = vadd.f32 %v1590_v27, %v1589_v42 }
 0x379   : > { %v4163_v20 = vpop.f32.mrb[4].mxu0 }
 0x37a   : > { %v1529_v28 = vpop.f32.mrb[5].mxu0  ;;  %v5696_v59 = vadd.f32 %v4163_v20, %v3995_v32 }
 0x37b   : > { %v5682_v51 = vadd.f32 %v3995_v32, %v1529_v28 }
 0x37c   : > { %v1584_v37 = vmul.f32 %v5696_v59, %v5696_v59  ;;  %v1565_v57 = vsel %vm1349_vm2, %v5696_v59, 0.0 }
 0x37d   : > { %v1583_v13 = vmul.f32 %v5682_v51, %v5682_v51  ;;  %v1563_v46 = vsel %vm1349_vm2, %v5682_v51, 0.0 }
 0x37e   : > { %v1564_v19 = vadd.f32 %v1563_v46, %v1562_v30  ;;  %v1594_v0 = vsel %vm1349_vm2, %v1584_v37, 0.0  ;;  %v2154_v37 = vld [vmem:[%s7116_s10] sm:$0xff] }
 0x37f   : > { %v1592_v17 = vsel %vm1349_vm2, %v1583_v13, 0.0 }
 0x380   : > { %v1593_v35 = vadd.f32 %v1592_v17, %v1591_v49  ;;  %v1566_v14 = vadd.f32 %v1565_v57, %v1564_v19 }
 0x382   : > { %v1595_v2 = vadd.f32 %v1594_v0, %v1593_v35  ;;  %v2155_v35 = vld [vmem:[%s7116_s10 + $0x8] sm:$0xff] }
 0x38d   : > { %v4166_v31 = vpop.f32.mrb[6].mxu0 }
 0x38e   : > { %v1539_v10 = vpop.f32.mrb[7].mxu0  ;;  %v5709_v61 = vadd.f32 %v4166_v31, %v3995_v32 }
 0x38f   : > { %v5701_v47 = vadd.f32 %v3995_v32, %v1539_v10 }
 0x390   : > { %v1586_v43 = vmul.f32 %v5709_v61, %v5709_v61  ;;  %v1569_v29 = vsel %vm1349_vm2, %v5709_v61, 0.0 }
 0x391   : > { %v1585_v22 = vmul.f32 %v5701_v47, %v5701_v47  ;;  %v1567_v16 = vsel %vm1349_vm2, %v5701_v47, 0.0 }
 0x392   : > { %v1568_v50 = vadd.f32 %v1567_v16, %v1566_v14  ;;  %v1598_v60 = vsel %vm1349_vm2, %v1586_v43, 0.0 }
 0x393   : > { %v1596_v21 = vsel %vm1349_vm2, %v1585_v22, 0.0  ;;  %v4249_v22 = vpack.c.bf16 %v2155_v35, %v2154_v37 }
 0x394   : > { %v1597_v38 = vadd.f32 %v1596_v21, %v1595_v2  ;;  %v1570_v1 = vadd.f32 %v1569_v29, %v1568_v50 }
 0x396   : > { %v4169_v23 = vpop.f32.mrb[8].mxu0  ;;  %v1599_v12 = vadd.f32 %v1598_v60, %v1597_v38 }
 0x397   : > { %v5717_v40 = vadd.f32 %v4169_v23, %v3995_v32  ;;  %v1549_v24 = vpop.f32.mrb[9].mxu0 }
 0x398   : > { %v5721_v62 = vadd.f32 %v3995_v32, %v1549_v24 }
 0x399   : > { %v1588_v8 = vmul.f32 %v5717_v40, %v5717_v40  ;;  %v1573_v41 = vsel %vm1349_vm2, %v5717_v40, 0.0 }
 0x39a   : > { %v1571_v45 = vsel %vm1349_vm2, %v5721_v62, 0.0  ;;  %v1587_v3 = vmul.f32 %v5721_v62, %v5721_v62  ;;  %v5730_v48 = vpop.f32.mrb[10].mxu0 }
 0x39b   : > { %v1572_v26 = vadd.f32 %v1571_v45, %v1570_v1  ;;  %v5732_v4 = vpop.f32.mrb[11].mxu0  ;;  %v1602_v39 = vsel %vm1349_vm2, %v1588_v8, 0.0 }
 0x39c   : > { %v1600_v7 = vsel %vm1349_vm2, %v1587_v3, 0.0 }
 0x39d   : > { %v1574_v5 = vadd.f32 %v1573_v41, %v1572_v26  ;;  %v1601_v34 = vadd.f32 %v1600_v7, %v1599_v12  ;;  %v4006_v26 = vld [vmem:[%s7117_s8] ss:$0 sm:$0xff] }
 0x39e   : > { %v5738_v52 = vpop.f32.mrb[12].mxu0 }
 0x39f   : > { %v1575_v63 = vrot.slane %v1574_v5, 4  ;;  %v1603_v20 = vadd.f32 %v1602_v39, %v1601_v34  ;;  %v5740_v28 = vpop.f32.mrb[13].mxu0 }
 0x3a1   : > { %v1576_v32 = vadd.f32 %v1575_v63, %v1574_v5  ;;  %v1604_v11 = vrot.slane %v1603_v20, 4 }
 0x3a2   : > { %v5742_v18 = vpop.f32.mrb[14].mxu0 }
 0x3a3   : > { %v1577_v58 = vrot.slane %v1576_v32, 2  ;;  %v1605_v25 = vadd.f32 %v1604_v11, %v1603_v20  ;;  %v5744_v13 = vpop.f32.mrb[15].mxu0 }
 0x3a5   : > { %v1578_v27 = vadd.f32 %v1577_v58, %v1576_v32  ;;  %v1606_v42 = vrot.slane %v1605_v25, 2 }
 0x3a6   : > { %v5746_v46 = vpop.f32.mrb[16].mxu0 }
 0x3a7   : > { %v5748_v30 = vpop.f32.mrb[17].mxu0  ;;  %v1579_v31 = vrot.slane %v1578_v27, 1  ;;  %v1607_v17 = vadd.f32 %v1606_v42, %v1605_v25 }
 0x3a9   : > { %v1580_v10 = vadd.f32 %v1579_v31, %v1578_v27  ;;  %v1608_v49 = vrot.slane %v1607_v17, 1 }
 0x3ab   : > { %4175 = vmatmul.mubr.msk.f32.vlgmr.msra.gmra.mrb[2].mxu1 %vm1349_vm2, %v1580_v10  ;;  %v1609_v19 = vadd.f32 %v1608_v49, %v1607_v17 }
 0x3ac   : > { %4247 = vmatpush3.bf16.msra.mxu1 %v5669_v44  ;;  %4181 = vmatprep.mubr.msk.f32.mxu1 %vm4946_vm0, %v7079_v15 }
 0x3ad   : > { %4248 = vmatprep.subr.bf16.mxu1 %v4956_v33 }
 0x3af   : > { %4182 = vmatmul.mubr.msk.f32.vlgmr.msra.gmra.mrb[4].mxu1 %vm1349_vm2, %v1609_v19 }
 0x3b0   : > { %4250 = vmatpush1.bf16.msra.mxu1 %v4249_v22 }
 0x3b1   : > { %4251 = vmatprep.subr.bf16.mxu1 %v4956_v33 }
 0x47e   : > { %v1679_v57 = vpop.f32.mrb[2].mxu1 }
 0x47f   : > { %v1756_v16 = vmul.f32 0.00390625, %v1679_v57  ;;  %v4176_v14 = vpop.f32.mrb[3].mxu1 }
 0x481   : > { %v1758_v21 = vmul.f32 %v1756_v16, %v1756_v16  ;;  %v1764_v24 = vrot.slane %v1756_v16, %v5296_v6 }
 0x482   : > { %v1752_v0 = vpop.f32.mrb[4].mxu1 }
 0x483   : > { %v1757_v50 = vmul.f32 0.00390625, %v1752_v0  ;;  %v4183_v2 = vpop.f32.mrb[5].mxu1  ;;  %v1765_v1 = vsub.f32 %v5680_v9, %v1764_v24  ;;  %v1766_v8 = vsub.f32 %v5678_v36, %v1764_v24  ;;  %v1767_v45 = vsub.f32 %v5682_v51, %v1764_v24  ;;  %v4007_v51 = vld [vmem:[%s7118_s9] ss:$0 sm:$0xff]  ;;  %s7122_s9 = smov 96  }
 0x484   : > { %v1768_v3 = vsub.f32 %v5696_v59, %v1764_v24  ;;  %v1769_v12 = vsub.f32 %v5701_v47, %v1764_v24  ;;  %v1770_v41 = vsub.f32 %v5709_v61, %v1764_v24  ;;  %v1771_v7 = vsub.f32 %v5721_v62, %v1764_v24 }
 0x485   : > { %v1759_v43 = vsub.f32 %v1757_v50, %v1758_v21  ;;  %v1772_v9 = vsub.f32 %v5717_v40, %v1764_v24 }
 0x487   : > { %v1760_v23 = vmax.f32 %v1759_v43, 0.0 }
 0x489   : > { %v1773_v38 = vadd.f32 1e-05, %v1760_v23 }
 0x48b   : > { %4778 = vrsqrt.f32 %v1773_v38 }
 0x495   : > { %v4779_v29 = vpop.eup %4778 }
 0x496   : > { %v1778_v60 = vrot.slane %v4779_v29, %v5296_v6 }
 0x498   : > { %v1779_v5 = vmul.f32 %v1778_v60, %v1765_v1  ;;  %v1780_v34 = vmul.f32 %v1778_v60, %v1766_v8  ;;  %v1781_v39 = vmul.f32 %v1778_v60, %v1767_v45  ;;  %v1782_v36 = vmul.f32 %v1778_v60, %v1768_v3 }
 0x499   : > { %v1783_v59 = vmul.f32 %v1778_v60, %v1769_v12  ;;  %v1784_v63 = vmul.f32 %v1778_v60, %v1770_v41  ;;  %v1785_v20 = vmul.f32 %v1778_v60, %v1771_v7  ;;  %v1786_v32 = vmul.f32 %v1778_v60, %v1772_v9 }
 0x49a   : > { %v1793_v11 = vmul.f32 %v4006_v26, %v1779_v5  ;;  %v1794_v47 = vmul.f32 %v4006_v26, %v1780_v34  ;;  %v1795_v58 = vmul.f32 %v4006_v26, %v1781_v39  ;;  %v1796_v61 = vmul.f32 %v4006_v26, %v1782_v36  ;;  %v2156_v5 = vld [vmem:[%s7116_s10 + $0x10] sm:$0xff]  ;;  %v2157_v34 = vld [vmem:[%s7116_s10 + $0x18] sm:$0xff] }
 0x49b   : > { %v1797_v25 = vmul.f32 %v4006_v26, %v1783_v59  ;;  %v1798_v62 = vmul.f32 %v4006_v26, %v1784_v63  ;;  %v1799_v27 = vmul.f32 %v4006_v26, %v1785_v20  ;;  %v1800_v40 = vmul.f32 %v4006_v26, %v1786_v32  ;;  %v2159_v59 = vld [vmem:[%s7116_s10 + $0x28] sm:$0xff] }
 0x49c   : > { %v1807_v42 = vadd.f32 %v4007_v51, %v1793_v11  ;;  %v1808_v31 = vadd.f32 %v4007_v51, %v1794_v47  ;;  %v5779_v17 = vadd.f32 %v4007_v51, %v1795_v58  ;;  %v5781_v10 = vadd.f32 %v4007_v51, %v1796_v61  ;;  %v2160_v47 = vld [vmem:[%s7116_s10 + $0x30] sm:$0xff]  ;;  %v2161_v58 = vld [vmem:[%s7116_s10 + $0x38] sm:$0xff] }
 0x49d   : > { %v5783_v49 = vadd.f32 %v4007_v51, %v1797_v25  ;;  %v5785_v19 = vadd.f32 %v4007_v51, %v1798_v62  ;;  %v5788_v57 = vadd.f32 %v4007_v51, %v1799_v27  ;;  %v5791_v14 = vadd.f32 %v4007_v51, %v1800_v40  ;;  %v2158_v51 = vld [vmem:[%s7116_s10 + $0x20] sm:$0xff] }
 0x49e   : > { %v4008_v37 = vmul.f32 -1.442695, %v1807_v42  ;;  %v4009_v35 = vmul.f32 -1.442695, %v1808_v31  ;;  %v4010_v22 = vmul.f32 -1.442695, %v5779_v17  ;;  %v4252_v36 = vpack.c.bf16 %v2157_v34, %v2156_v5 }
 0x49f   : > { %v4011_v16 = vmul.f32 -1.442695, %v5781_v10  ;;  %v4012_v0 = vmul.f32 -1.442695, %v5783_v49  ;;  %v4013_v21 = vmul.f32 -1.442695, %v5785_v19  ;;  %v4255_v20 = vpack.c.bf16 %v2159_v59, %v2158_v51 }
 0x4a0   : > { %4780 = vpow2.f32 %v4008_v37  ;;  %v4014_v50 = vmul.f32 -1.442695, %v5788_v57  ;;  %v4015_v2 = vmul.f32 -1.442695, %v5791_v14  ;;  %4253 = vmatpush1.bf16.msra.mxu1 %v4252_v36  ;;  %v4258_v62 = vpack.c.bf16 %v2161_v58, %v2160_v47  ;;  %v2166_v5 = vld [vmem:[%s7116_s10 + $0x60] sm:$0xff]  ;;  %v2167_v34 = vld [vmem:[%s7116_s10 + $0x68] sm:$0xff] }
 0x4a1   : > { %4782 = vpow2.f32 %v4009_v35  ;;  %4254 = vmatprep.subr.bf16.mxu1 %v4956_v33  ;;  %v4267_v51 = vpack.c.bf16 %v2167_v34, %v2166_v5 }
 0x4a2   : > { %4784 = vpow2.f32 %v4010_v22 }
 0x4a3   : > { %4786 = vpow2.f32 %v4011_v16 }
 0x4a4   : > { %4788 = vpow2.f32 %v4012_v0  ;;  %4256 = vmatpush1.bf16.msra.mxu1 %v4255_v20 }
 0x4a5   : > { %4790 = vpow2.f32 %v4013_v21  ;;  %4257 = vmatprep.subr.bf16.mxu1 %v4956_v33 }
 0x4a6   : > { %4792 = vpow2.f32 %v4014_v50 }
 0x4a7   : > { %4794 = vpow2.f32 %v4015_v2 }
 0x4a8   : > { %4259 = vmatpush1.bf16.msra.mxu1 %v4258_v62 }
 0x4a9   : > { %4260 = vmatprep.subr.bf16.mxu1 %v4956_v33 }
 0x4aa   : > { %v4781_v43 = vpop.eup %4780 }
 0x4ab   : > { %v4783_v23 = vpop.eup %4782  ;;  %v1839_v38 = vadd.f32 1.0, %v4781_v43 }
 0x4ac   : > { %v4785_v24 = vpop.eup %4784  ;;  %v1840_v29 = vadd.f32 1.0, %v4783_v23 }
 0x4ad   : > { %v4787_v1 = vpop.eup %4786  ;;  %4796 = vrcp.f32 %v1839_v38  ;;  %v1841_v60 = vadd.f32 1.0, %v4785_v24 }
 0x4ae   : > { %v4789_v8 = vpop.eup %4788  ;;  %4798 = vrcp.f32 %v1840_v29  ;;  %v1842_v45 = vadd.f32 1.0, %v4787_v1 }
 0x4af   : > { %v4791_v3 = vpop.eup %4790  ;;  %4800 = vrcp.f32 %v1841_v60  ;;  %v1843_v26 = vadd.f32 1.0, %v4789_v8  ;;  %v2163_v8 = vld [vmem:[%s7116_s10 + $0x48] sm:$0xff] }
 0x4b0   : > { %v4793_v12 = vpop.eup %4792  ;;  %4802 = vrcp.f32 %v1842_v45  ;;  %v1844_v41 = vadd.f32 1.0, %v4791_v3  ;;  %v2164_v45 = vld [vmem:[%s7116_s10 + $0x50] sm:$0xff]  ;;  %v2165_v3 = vld [vmem:[%s7116_s10 + $0x58] sm:$0xff] }
 0x4b1   : > { %v4795_v7 = vpop.eup %4794  ;;  %4804 = vrcp.f32 %v1843_v26  ;;  %v1845_v9 = vadd.f32 1.0, %v4793_v12 }
 0x4b2   : > { %4806 = vrcp.f32 %v1844_v41  ;;  %v1846_v39 = vadd.f32 1.0, %v4795_v7  ;;  %v4264_v7 = vpack.c.bf16 %v2165_v3, %v2164_v45 }
 0x4b3   : > { %4808 = vrcp.f32 %v1845_v9 }
 0x4b4   : > { %4810 = vrcp.f32 %v1846_v39 }
 0x4b7   : > { %v4797_v63 = vpop.eup %4796 }
 0x4b8   : > { %v4799_v32 = vpop.eup %4798  ;;  %v1863_v11 = vmul.f32 %v4797_v63, %v1807_v42 }
 0x4b9   : > { %v4801_v61 = vpop.eup %4800  ;;  %v1864_v25 = vmul.f32 %v4799_v32, %v1808_v31  ;;  %v2168_v32 = vld [vmem:[%s7116_s10 + $0x70] sm:$0xff] }
 0x4ba   : > { %v4803_v27 = vpop.eup %4802  ;;  %v4399_v40 = vpack.i.bf16 %v1863_v11, %v7079_v15  ;;  %v5818_v37 = vmul.f32 %v4801_v61, %v5779_v17  ;;  %v1885_v35 = vrot.slane %v1863_v11, 1  ;;  %v1871_v41 = vrot.slane %v1863_v11, 7 }
 0x4bb   : > { %v4805_v42 = vpop.eup %4804  ;;  %v4404_v22 = vpack.i.bf16 %v1864_v25, %v1863_v11  ;;  %v1886_v16 = vrot.slane %v1864_v25, 1  ;;  %v5822_v0 = vmul.f32 %v4803_v27, %v5781_v10  ;;  %v1872_v12 = vrot.slane %v1864_v25, 7  ;;  %v2169_v11 = vld [vmem:[%s7116_s10 + $0x78] sm:$0xff] }
 0x4bc   : > { %v4807_v21 = vpop.eup %4806  ;;  %4400 = vrot.lane.b32.xlu1 %v4399_v40, %s7110_s0  ;;  %v4414_v31 = vpack.i.bf16 %v5818_v37, %v1864_v25  ;;  %v5827_v50 = vmul.f32 %v4805_v42, %v5783_v49  ;;  %v5830_v17 = vmul.f32 %v1885_v35, %v5278_v53  ;;  %v1873_v9 = vrot.slane %v5818_v37, 7  ;;  %v2170_v40 = vld [vmem:[%s7116_s10 + $0x80] sm:$0xff] }
 0x4bd   : > { %v4809_v2 = vpop.eup %4808  ;;  %4405 = vrot.lane.b32.xlu0 %v4404_v22, %s7119_s6  ;;  %v5834_v43 = vmul.f32 %v1886_v16, %v5278_v53  ;;  %v4419_v10 = vpack.i.bf16 %v5822_v0, %v5818_v37  ;;  %v5839_v23 = vmul.f32 %v4807_v21, %v5785_v19  ;;  %v5889_v39 = vmul.f32 %v1872_v12, %v5287_v55 }
 0x4be   : > { %v4811_v38 = vpop.eup %4810  ;;  %v4424_v49 = vpack.i.bf16 %v5827_v50, %v5822_v0  ;;  %v5844_v24 = vmul.f32 %v4809_v2, %v5788_v57  ;;  %v5892_v36 = vmul.f32 %v1871_v41, %v5287_v55  ;;  %v4454_v59 = vpack.i.bf16 %v5830_v17, %v5283_v54 }
 0x4bf   : > { %4017 = vmatprep.mubr.msk.f32.mxu1 %vm1349_vm2, %v5834_v43  ;;  %v4434_v29 = vpack.i.bf16 %v5839_v23, %v5827_v50  ;;  %v5852_v1 = vmul.f32 %v4811_v38, %v5791_v14  ;;  %v4464_v60 = vpack.i.bf16 %v5834_v43, %v5830_v17  ;;  %v2162_v14 = vld [vmem:[%s7116_s10 + $0x40] sm:$0xff]  ;;  %v5897_v63 = vmul.f32 %v1873_v9, %v5287_v55 }
 0x4c0   : > { %4410 = vrot.lane.b32.xlu1 %v4414_v31, %s7081_s7  ;;  %v4444_v19 = vpack.i.bf16 %v5844_v24, %v5839_v23  ;;  %v4261_v26 = vpack.c.bf16 %v2163_v8, %v2162_v14  ;;  %v1874_v20 = vrot.slane %v5822_v0, 7  ;;  %v4459_v47 = vpack.i.bf16 %v5889_v39, %v5892_v36 }
 0x4c1   : > { %4415 = vrot.lane.b32.xlu0 %v4414_v31, %s7110_s0  ;;  %v4449_v57 = vpack.i.bf16 %v5852_v1, %v5844_v24  ;;  %v1887_v58 = vrot.slane %v5818_v37, 1  ;;  %v4270_v61 = vpack.c.bf16 %v2169_v11, %v2168_v32  ;;  %v4469_v25 = vpack.i.bf16 %v5897_v63, %v5889_v39  ;;  %v2171_v37 = vld [vmem:[%s7116_s10 + $0x88] sm:$0xff]  ;;  %s7124_s10 = smov 112  }
 0x4c2   : > { %4262 = vmatpush1.bf16.msra.mxu1 %v4261_v26  ;;  %v5915_v62 = vmul.f32 %v1874_v20, %v5287_v55  ;;  %v1888_v27 = vrot.slane %v5822_v0, 1  ;;  %v1875_v42 = vrot.slane %v5827_v50, 7  ;;  %v4273_v22 = vpack.c.bf16 %v2171_v37, %v2170_v40 }
 0x4c3   : > { %4263 = vmatprep.subr.bf16.mxu1 %v4956_v33  ;;  %v5928_v35 = vmul.f32 %v1887_v58, %v5278_v53  ;;  %v1889_v21 = vrot.slane %v5827_v50, 1  ;;  %v1876_v2 = vrot.slane %v5839_v23, 7  ;;  %v1877_v38 = vrot.slane %v5844_v24, 7 }
 0x4c4   : > { %4420 = vrot.lane.b32.xlu1 %v4419_v10, %s7119_s6  ;;  %v4479_v16 = vpack.i.bf16 %v5915_v62, %v5897_v63  ;;  %v5934_v0 = vmul.f32 %v1888_v27, %v5278_v53  ;;  %v5943_v17 = vmul.f32 %v1875_v42, %v5287_v55 }
 0x4c5   : > { %4425 = vrot.lane.b32.xlu0 %v4424_v49, %s7081_s7  ;;  %v4474_v31 = vpack.i.bf16 %v5928_v35, %v5834_v43  ;;  %v5949_v50 = vmul.f32 %v1889_v21, %v5278_v53 }
 0x4c6   : > { %4265 = vmatpush1.bf16.msra.mxu1 %v4264_v7  ;;  %v4484_v10 = vpack.i.bf16 %v5934_v0, %v5928_v35  ;;  %v4489_v43 = vpack.i.bf16 %v5943_v17, %v5915_v62  ;;  %v1901_v7 = vrot.slane %v5852_v1, 1 }
 0x4c7   : > { %4266 = vmatprep.subr.bf16.mxu1 %v4956_v33 }
 0x4c8   : > { %4430 = vrot.lane.b32.xlu1 %v4424_v49, %s7110_s0  ;;  %v5958_v49 = vmul.f32 %v1876_v2, %v5287_v55  ;;  %v5998_v9 = vmul.f32 %v1901_v7, %v5278_v53 }
 0x4c9   : > { %4435 = vrot.lane.b32.xlu0 %v4434_v29, %s7119_s6  ;;  %v1890_v29 = vrot.slane %v5839_v23, 1  ;;  %v1891_v23 = vrot.slane %v5844_v24, 1 }
 0x4ca   : > { %4268 = vmatpush1.bf16.msra.mxu1 %v4267_v51  ;;  %v4499_v14 = vpack.i.bf16 %v5958_v49, %v5943_v17 }
 0x4cb   : > { %4269 = vmatprep.subr.bf16.mxu1 %v4956_v33  ;;  %v5972_v8 = vmul.f32 %v1890_v29, %v5278_v53  ;;  %v5983_v12 = vmul.f32 %v1891_v23, %v5278_v53 }
 0x4cc   : > { %4440 = vrot.lane.b32.xlu1 %v4444_v19, %s7081_s7 }
 0x4cd   : > { %4445 = vrot.lane.b32.xlu0 %v4444_v19, %s7110_s0  ;;  %v4494_v19 = vpack.i.bf16 %v5949_v50, %v5934_v0  ;;  %v4504_v26 = vpack.i.bf16 %v5972_v8, %v5949_v50  ;;  %v4514_v24 = vpack.i.bf16 %v5983_v12, %v5972_v8 }
 0x4ce   : > { %4271 = vmatpush1.bf16.msra.mxu1 %v4270_v61 }
 0x4cf   : > { %4272 = vmatprep.subr.bf16.mxu1 %v4956_v33 }
 0x4d0   : > { %4450 = vrot.lane.b32.xlu1 %v4449_v57, %s7119_s6  ;;  %v5964_v57 = vmul.f32 %v1877_v38, %v5287_v55 }
 0x4d1   : > { %4455 = vrot.lane.b32.xlu0 %v4454_v59, %s7111_s1 }
 0x4d2   : > { %4274 = vmatpush1.bf16.msra.mxu1 %v4273_v22  ;;  %v4509_v45 = vpack.i.bf16 %v5964_v57, %v5958_v49 }
 0x4d3   : > { %4281 = vmatprep.subr.bf16.mxu1 %v4956_v33 }
 0x4d4   : > { %4460 = vrot.lane.b32.xlu1 %v4459_v47, %s7112_s26 }
 0x4d5   : > { %4470 = vrot.lane.b32.xlu0 %v4469_v25, %s7075_s12 }
 0x4d8   : > { %4465 = vrot.lane.b32.xlu1 %v4464_v60, %s7077_s28  ;;  %v1899_v60 = vrot.slane %v5852_v1, 7 }
 0x4d9   : > { %4480 = vrot.lane.b32.xlu0 %v4479_v16, %s7112_s26 }
 0x4da   : > { %v1900_v3 = vmul.f32 %v1899_v60, %v5287_v55 }
 0x4dc   : > { %4475 = vrot.lane.b32.xlu1 %v4474_v31, %s7111_s1  ;;  %v4519_v41 = vpack.i.bf16 %v1900_v3, %v5964_v57 }
 0x4dd   : > { %4485 = vrot.lane.b32.xlu0 %v4484_v10, %s7077_s28 }
 0x4e0   : > { %4490 = vrot.lane.b32.xlu1 %v4489_v43, %s7075_s12 }
 0x4e1   : > { %4495 = vrot.lane.b32.xlu0 %v4494_v19, %s7111_s1 }
 0x4e4   : > { %4500 = vrot.lane.b32.xlu1 %v4499_v14, %s7112_s26 }
 0x4e5   : > { %4510 = vrot.lane.b32.xlu0 %v4509_v45, %s7075_s12 }
 0x4e8   : > { %4505 = vrot.lane.b32.xlu1 %v4504_v26, %s7077_s28 }
 0x4e9   : > { %4520 = vrot.lane.b32.xlu0 %v4519_v41, %s7112_s26 }
 0x4ec   : > { %4515 = vrot.lane.b32.xlu1 %v4514_v24, %s7111_s1 }
 0x4ed   : > { %2035 = vrot.lane.b32.xlu0 %v5983_v12, %s7077_s28 }
 0x4f0   : > { %2059 = vrot.lane.b32.xlu1 %v1900_v3, %s7075_s12 }
 0x4f1   : > { %2083 = vrot.lane.b32.xlu0 %v5852_v1, %s7081_s7 }
 0x4f4   : > { %2037 = vrot.lane.b32.xlu1 %v5998_v9, %s7077_s28  ;;  %s4081_s28 = sshll.u32 %s5093_s3, 10 }
 0x4f5   : > { %2061 = vrot.lane.b32.xlu0 %v5292_v56, %s7075_s12 }
 0x4f8   : > { %2085 = vrot.lane.b32.xlu1 %v7079_v15, %s7081_s7 }
 0x52e   : > { %v4401_v5 = vpop.permute.xlu1 %4400 }
 0x52f   : > { %v4406_v34 = vpop.permute.xlu0 %4405  ;;  %v4403_v25 = vunpack.i.h.bf16 %v4401_v5  ;;  %v4402_v27 = vunpack.i.l.bf16 %v4401_v5 }
 0x530   : > { %v4408_v60 = vunpack.i.h.bf16 %v4406_v34  ;;  %v4407_v14 = vunpack.i.l.bf16 %v4406_v34 }
 0x531   : > { %v2095_v16 = vsel %vm1349_vm2, %v5292_v56, %v4402_v27  ;;  %v2096_v21 = vsel %vm1349_vm2, %v5892_v36, %v4403_v25 }
 0x532   : > { %v6006_v51 = vpop.permute.xlu1 %4410 }
 0x533   : > { %v4416_v59 = vpop.permute.xlu0 %4415  ;;  %v4413_v41 = vunpack.i.h.bf16 %v6006_v51  ;;  %v4412_v25 = vunpack.i.l.bf16 %v6006_v51 }
 0x534   : > { %v4418_v56 = vunpack.i.h.bf16 %v4416_v59  ;;  %v4417_v23 = vunpack.i.l.bf16 %v4416_v59 }
 0x536   : > { %v6008_v20 = vpop.permute.xlu1 %4420 }
 0x537   : > { %v6010_v1 = vpop.permute.xlu0 %4425 }
 0x53a   : > { %v6012_v32 = vpop.permute.xlu1 %4430 }
 0x53b   : > { %v6014_v11 = vpop.permute.xlu0 %4435 }
 0x53e   : > { %v6016_v47 = vpop.permute.xlu1 %4440 }
 0x53f   : > { %v6018_v58 = vpop.permute.xlu0 %4445 }
 0x542   : > { %v6020_v61 = vpop.permute.xlu1 %4450 }
 0x543   : > { %v4456_v40 = vpop.permute.xlu0 %4455 }
 0x544   : > { %v4458_v37 = vunpack.i.h.bf16 %v4456_v40  ;;  %v4457_v42 = vunpack.i.l.bf16 %v4456_v40  ;;  %v2098_v40 = vsel %vm1349_vm2, %v5897_v63, %v4418_v56 }
 0x546   : > { %v4461_v22 = vpop.permute.xlu1 %4460  ;;  %v6027_v38 = vsel %vm1367_vm4, %v2095_v16, %v4457_v42  ;;  %v2104_v43 = vsel %vm1367_vm4, %v2096_v21, %v4458_v37  ;;  %v2097_v37 = vsel %vm1349_vm2, %v5889_v39, %v4417_v23  ;;  %v4423_v42 = vunpack.i.h.bf16 %v6008_v20 }
 0x547   : > { %v4471_v31 = vpop.permute.xlu0 %4470  ;;  %v4463_v2 = vunpack.i.h.bf16 %v4461_v22  ;;  %v4462_v10 = vunpack.i.l.bf16 %v4461_v22  ;;  %v4433_v39 = vunpack.i.h.bf16 %v6012_v32 }
 0x548   : > { %v4472_v24 = vunpack.i.l.bf16 %v4471_v31  ;;  %v4473_v27 = vunpack.i.h.bf16 %v4471_v31 }
 0x549   : > { %v2111_v29 = vsel %vm1385_vm6, %v6027_v38, %v4462_v10  ;;  %v2112_v19 = vsel %vm1385_vm6, %v2104_v43, %v4463_v2  ;;  %v4427_v43 = vunpack.i.l.bf16 %v6010_v1 }
 0x54a   : > { %v4466_v45 = vpop.permute.xlu1 %4465  ;;  %v2119_v7 = vsel %vm1403_vm8, %v2111_v29, %v4407_v14  ;;  %v2120_v5 = vsel %vm1403_vm8, %v2112_v19, %v4408_v60  ;;  %v4422_v29 = vunpack.i.l.bf16 %v6008_v20  ;;  %v4432_v60 = vunpack.i.l.bf16 %v6012_v32 }
 0x54b   : > { %v4481_v36 = vpop.permute.xlu0 %4480  ;;  %v4468_v3 = vunpack.i.h.bf16 %v4466_v45  ;;  %v4467_v26 = vunpack.i.l.bf16 %v4466_v45 }
 0x54c   : > { %v4483_v63 = vunpack.i.h.bf16 %v4481_v36  ;;  %v4482_v19 = vunpack.i.l.bf16 %v4481_v36 }
 0x54d   : > { %v2128_v34 = vsel %vm2127_vm10, %v2119_v7, %v4467_v26  ;;  %v2129_v59 = vsel %vm2127_vm10, %v2120_v5, %v4468_v3 }
 0x54e   : > { %v4476_v22 = vpop.permute.xlu1 %4475  ;;  %v2137_v16 = vsel %vm2136_vm11, %v2128_v34, %v4472_v24  ;;  %v2138_v31 = vsel %vm2136_vm11, %v2129_v59, %v4473_v27 }
 0x54f   : > { %v4486_v21 = vpop.permute.xlu0 %4485  ;;  %v4478_v2 = vunpack.i.h.bf16 %v4476_v22  ;;  %v4477_v10 = vunpack.i.l.bf16 %v4476_v22  ;;  %v2146_v51 = vsel %vm2145_vm12, %v2137_v16, %v4412_v25  ;;  %v2147_v36 = vsel %vm2145_vm12, %v2138_v31, %v4413_v41 }
 0x550   : > { %2260 = vmatmul.mubr.f32.vlgmr.msra.gmra.mrb[6].mxu1 %v2146_v51  ;;  %v4487_v23 = vunpack.i.l.bf16 %v4486_v21  ;;  %v4488_v26 = vunpack.i.h.bf16 %v4486_v21  ;;  %v2100_v22 = vsel %vm1349_vm2, %v5943_v17, %v4433_v39  ;;  %v4428_v31 = vunpack.i.h.bf16 %v6010_v1 }
 0x551   : > { %v2106_v14 = vsel %vm1367_vm4, %v2098_v40, %v4478_v2  ;;  %v2105_v56 = vsel %vm1367_vm4, %v2097_v37, %v4477_v10  ;;  %4018 = vmatprep.mubr.msk.f32.mxu1 %vm1349_vm2, %v5928_v35  ;;  %v4437_v17 = vunpack.i.l.bf16 %v6014_v11  ;;  %v4447_v1 = vunpack.i.l.bf16 %v6018_v58 }
 0x552   : > { %v2114_v45 = vsel %vm1385_vm6, %v2106_v14, %v4483_v63  ;;  %v2113_v3 = vsel %vm1385_vm6, %v2105_v56, %v4482_v19  ;;  %v4491_v20 = vpop.permute.xlu1 %4490  ;;  %v4448_v19 = vunpack.i.h.bf16 %v6018_v58  ;;  %v4443_v58 = vunpack.i.h.bf16 %v6016_v47 }
 0x553   : > { %v4496_v24 = vpop.permute.xlu0 %4495  ;;  %v4492_v7 = vunpack.i.l.bf16 %v4491_v20  ;;  %v2121_v32 = vsel %vm1403_vm8, %v2113_v3, %v4422_v29  ;;  %v2122_v5 = vsel %vm1403_vm8, %v2114_v45, %v4423_v42  ;;  %v4493_v34 = vunpack.i.h.bf16 %v4491_v20 }
 0x554   : > { %v4498_v25 = vunpack.i.h.bf16 %v4496_v24  ;;  %v4497_v27 = vunpack.i.l.bf16 %v4496_v24  ;;  %2265 = vmatmul.mubr.f32.gmra.mrb[8].mxu1 %v2147_v36  ;;  %v2130_v35 = vsel %vm2127_vm10, %v2121_v32, %v4487_v23  ;;  %v2131_v41 = vsel %vm2127_vm10, %v2122_v5, %v4488_v26 }
 0x555   : > { %4019 = vmatprep.mubr.msk.f32.mxu1 %vm1349_vm2, %v5934_v0  ;;  %v2139_v59 = vsel %vm2136_vm11, %v2130_v35, %v4492_v7  ;;  %v2099_v42 = vsel %vm1349_vm2, %v5915_v62, %v4432_v60  ;;  %v2140_v51 = vsel %vm2136_vm11, %v2131_v41, %v4493_v34  ;;  %v4438_v62 = vunpack.i.h.bf16 %v6014_v11 }
 0x556   : > { %v4501_v40 = vpop.permute.xlu1 %4500  ;;  %v2148_v37 = vsel %vm2145_vm12, %v2139_v59, %v4427_v43  ;;  %v2108_v10 = vsel %vm1367_vm4, %v2100_v22, %v4498_v25  ;;  %v2107_v0 = vsel %vm1367_vm4, %v2099_v42, %v4497_v27  ;;  %v2149_v56 = vsel %vm2145_vm12, %v2140_v51, %v4428_v31 }
 0x557   : > { %v4511_v16 = vpop.permute.xlu0 %4510  ;;  %v4503_v21 = vunpack.i.h.bf16 %v4501_v40  ;;  %v4502_v2 = vunpack.i.l.bf16 %v4501_v40  ;;  %v4442_v3 = vunpack.i.l.bf16 %v6016_v47  ;;  %v2102_v27 = vsel %vm1349_vm2, %v5964_v57, %v4448_v19 }
 0x558   : > { %2270 = vmatmul.mubr.f32.gmra.mrb[10].mxu1 %v2148_v37  ;;  %v4512_v23 = vunpack.i.l.bf16 %v4511_v16  ;;  %v4513_v36 = vunpack.i.h.bf16 %v4511_v16  ;;  %v4452_v59 = vunpack.i.l.bf16 %v6020_v61 }
 0x559   : > { %v2116_v43 = vsel %vm1385_vm6, %v2108_v10, %v4503_v21  ;;  %v2115_v29 = vsel %vm1385_vm6, %v2107_v0, %v4502_v2  ;;  %4020 = vmatprep.mubr.msk.f32.mxu1 %vm1349_vm2, %v5949_v50  ;;  %v4453_v21 = vunpack.i.h.bf16 %v6020_v61 }
 0x55a   : > { %v4506_v63 = vpop.permute.xlu1 %4505  ;;  %v2123_v45 = vsel %vm1403_vm8, %v2115_v29, %v4437_v17  ;;  %v2124_v50 = vsel %vm1403_vm8, %v2116_v43, %v4438_v62  ;;  %v4016_v62 = vld [vmem:[%s7120_s11] ss:$0 sm:$0xff] }
 0x55b   : > { %v4521_v39 = vpop.permute.xlu0 %4520  ;;  %v4508_v60 = vunpack.i.h.bf16 %v4506_v63  ;;  %v4507_v14 = vunpack.i.l.bf16 %v4506_v63 }
 0x55c   : > { %2275 = vmatmul.mubr.f32.gmra.mrb[12].mxu1 %v2149_v56  ;;  %v4522_v34 = vunpack.i.l.bf16 %v4521_v39  ;;  %v4523_v41 = vunpack.i.h.bf16 %v4521_v39 }
 0x55d   : > { %4021 = vmatprep.mubr.msk.f32.mxu1 %vm1349_vm2, %v5972_v8  ;;  %v2132_v11 = vsel %vm2127_vm10, %v2123_v45, %v4507_v14  ;;  %v2133_v20 = vsel %vm2127_vm10, %v2124_v50, %v4508_v60  ;;  %v2101_v8 = vsel %vm1349_vm2, %v5958_v49, %v4447_v1 }
 0x55e   : > { %v4516_v26 = vpop.permute.xlu1 %4515  ;;  %v2141_v24 = vsel %vm2136_vm11, %v2132_v11, %v4512_v23  ;;  %v2142_v35 = vsel %vm2136_vm11, %v2133_v20, %v4513_v36 }
 0x55f   : > { %v2036_v7 = vpop.permute.xlu0 %2035  ;;  %v4518_v32 = vunpack.i.h.bf16 %v4516_v26  ;;  %v4517_v5 = vunpack.i.l.bf16 %v4516_v26  ;;  %v2150_v25 = vsel %vm2145_vm12, %v2141_v24, %v4442_v3  ;;  %v2151_v42 = vsel %vm2145_vm12, %v2142_v35, %v4443_v58 }
 0x560   : > { %2280 = vmatmul.mubr.f32.gmra.mrb[14].mxu1 %v2150_v25 }
 0x561   : > { %v2110_v47 = vsel %vm1367_vm4, %v2102_v27, %v4518_v32  ;;  %v2109_v40 = vsel %vm1367_vm4, %v2101_v8, %v4517_v5  ;;  %4022 = vmatprep.mubr.msk.f32.mxu1 %vm1349_vm2, %v5983_v12 }
 0x562   : > { %v2060_v37 = vpop.permute.xlu1 %2059  ;;  %v2117_v57 = vsel %vm1385_vm6, %v2109_v40, %v4522_v34  ;;  %v2118_v16 = vsel %vm1385_vm6, %v2110_v47, %v4523_v41 }
 0x563   : > { %v2084_v22 = vpop.permute.xlu0 %2083  ;;  %v2125_v49 = vsel %vm1403_vm8, %v2117_v57, %v4452_v59  ;;  %v2126_v0 = vsel %vm1403_vm8, %v2118_v16, %v4453_v21 }
 0x564   : > { %v2134_v2 = vsel %vm2127_vm10, %v2125_v49, %v2036_v7  ;;  %2285 = vmatmul.mubr.f32.gmra.mrb[16].mxu1 %v2151_v42 }
 0x565   : > { %v2143_v10 = vsel %vm2136_vm11, %v2134_v2, %v2060_v37  ;;  %4023 = vmatprep.mubr.msk.f32.mxu1 %vm1349_vm2, %v5998_v9 }
 0x566   : > { %v2038_v12 = vpop.permute.xlu1 %2037  ;;  %v2152_v51 = vsel %vm2145_vm12, %v2143_v10, %v2084_v22 }
 0x567   : > { %v6114_v31 = vpop.permute.xlu0 %2061  ;;  %v2135_v43 = vsel %vm2127_vm10, %v2126_v0, %v2038_v12 }
 0x568   : > { %2290 = vmatmul.mubr.f32.gmra.mrb[18].mxu1 %v2152_v51  ;;  %v2144_v29 = vsel %vm2136_vm11, %v2135_v43, %v6114_v31 }
 0x569   : > { %4024 = vmatprep.mubr.msk.f32.mxu1 %vm1349_vm2, %v5283_v54 }
 0x56a   : > { %v6119_v61 = vpop.permute.xlu1 %2085 }
 0x56b   : > { %v2153_v9 = vsel %vm2145_vm12, %v2144_v29, %v6119_v61 }
 0x56c   : > { %2295 = vmatmul.mubr.f32.gmra.mrb[20].mxu1 %v2153_v9 }
 0x623   : > { %v2261_v17 = vpop.f32.mrb[6].mxu1 }
 0x624   : > { %v2262_v63 = vadd.f32 %v4016_v62, %v2261_v17  ;;  %v2263_v19 = vpop.f32.mrb[7].mxu1 }
 0x626   : > { %v6129_v39 = vadd.f32 %v5732_v4, %v2262_v63 }
 0x627   : > { %v2266_v60 = vpop.f32.mrb[8].mxu1 }
 0x628   : > { %v2267_v14 = vadd.f32 %v4016_v62, %v2266_v60  ;;  %v2268_v56 = vpop.f32.mrb[9].mxu1 }
 0x62a   : > { %v6132_v1 = vadd.f32 %v5730_v48, %v2267_v14  ;;  %v2461_v48 = vmul.f32 %v6129_v39, %v6129_v39 }
 0x62b   : > { %v2271_v23 = vpop.f32.mrb[10].mxu1 }
 0x62c   : > { %v2272_v45 = vadd.f32 %v4016_v62, %v2271_v23  ;;  %v2273_v50 = vpop.f32.mrb[11].mxu1  ;;  %v2462_v24 = vmul.f32 %v6132_v1, %v6132_v1  ;;  %v2441_v32 = vsel %vm1349_vm2, %v6132_v1, 0.0  ;;  %v2469_v41 = vsel %vm1349_vm2, %v2461_v48, 0.0 }
 0x62e   : > { %v6135_v3 = vadd.f32 %v5740_v28, %v2272_v45  ;;  %v2470_v27 = vsel %vm1349_vm2, %v2462_v24, 0.0 }
 0x62f   : > { %v2276_v11 = vpop.f32.mrb[12].mxu1  ;;  %v2471_v22 = vadd.f32 %v2470_v27, %v2469_v41 }
 0x630   : > { %v2277_v20 = vadd.f32 %v4016_v62, %v2276_v11  ;;  %v2278_v36 = vpop.f32.mrb[13].mxu1  ;;  %v2463_v28 = vmul.f32 %v6135_v3, %v6135_v3  ;;  %v2443_v8 = vsel %vm1349_vm2, %v6135_v3, 0.0 }
 0x632   : > { %v6138_v26 = vadd.f32 %v5738_v52, %v2277_v20  ;;  %v2440_v52 = vsel %vm1349_vm2, %v6129_v39, 0.0 }
 0x633   : > { %v2281_v4 = vpop.f32.mrb[14].mxu1  ;;  %v2442_v47 = vadd.f32 %v2441_v32, %v2440_v52 }
 0x634   : > { %v2282_v58 = vadd.f32 %v4016_v62, %v2281_v4  ;;  %v2283_v7 = vpop.f32.mrb[15].mxu1  ;;  %v2464_v34 = vmul.f32 %v6138_v26, %v6138_v26  ;;  %v2445_v40 = vsel %vm1349_vm2, %v6138_v26, 0.0 }
 0x635   : > { %v2444_v49 = vadd.f32 %v2443_v8, %v2442_v47 }
 0x636   : > { %v6149_v5 = vadd.f32 %v5744_v13, %v2282_v58  ;;  %v2472_v13 = vsel %vm1349_vm2, %v2463_v28, 0.0  ;;  %v2474_v16 = vsel %vm1349_vm2, %v2464_v34, 0.0 }
 0x637   : > { %v2286_v25 = vpop.f32.mrb[16].mxu1  ;;  %v2473_v0 = vadd.f32 %v2472_v13, %v2471_v22  ;;  %v2446_v51 = vadd.f32 %v2445_v40, %v2444_v49  ;;  %v3017_v13 = vld [vmem:[%s7049_s15] sm:$0xff]  ;;  %v3018_v40 = vld [vmem:[%s7049_s15 + $0x8] sm:$0xff] }
 0x638   : > { %v2287_v35 = vadd.f32 %v4016_v62, %v2286_v25  ;;  %v2288_v59 = vpop.f32.mrb[17].mxu1  ;;  %v2465_v37 = vmul.f32 %v6149_v5, %v6149_v5  ;;  %v2447_v21 = vsel %vm1349_vm2, %v6149_v5, 0.0 }
 0x639   : > { %v2475_v9 = vadd.f32 %v2474_v16, %v2473_v0  ;;  %v2448_v17 = vadd.f32 %v2447_v21, %v2446_v51 }
 0x63a   : > { %v6165_v57 = vadd.f32 %v5742_v18, %v2287_v35  ;;  %v2476_v43 = vsel %vm1349_vm2, %v2465_v37, 0.0  ;;  %v4282_v37 = vpack.c.bf16 %v3018_v40, %v3017_v13 }
 0x63b   : > { %v2291_v42 = vpop.f32.mrb[18].mxu1  ;;  %v2477_v45 = vadd.f32 %v2476_v43, %v2475_v9 }
 0x63c   : > { %v2466_v2 = vmul.f32 %v6165_v57, %v6165_v57  ;;  %v2292_v10 = vadd.f32 %v4016_v62, %v2291_v42  ;;  %v2293_v12 = vpop.f32.mrb[19].mxu1  ;;  %v2449_v18 = vsel %vm1349_vm2, %v6165_v57, 0.0  ;;  %4283 = vmatpush1.bf16.msra.mxu1 %v4282_v37 }
 0x63d   : > { %v2450_v50 = vadd.f32 %v2449_v18, %v2448_v17  ;;  %4284 = vmatprep.subr.bf16.mxu1 %v4956_v33 }
 0x63e   : > { %v6176_v29 = vadd.f32 %v5748_v30, %v2292_v10  ;;  %v2478_v19 = vsel %vm1349_vm2, %v2466_v2, 0.0 }
 0x63f   : > { %v2296_v63 = vpop.f32.mrb[20].mxu1  ;;  %v2479_v20 = vadd.f32 %v2478_v19, %v2477_v45 }
 0x640   : > { %v2451_v60 = vsel %vm1349_vm2, %v6176_v29, 0.0  ;;  %v2467_v14 = vmul.f32 %v6176_v29, %v6176_v29  ;;  %v2297_v56 = vadd.f32 %v4016_v62, %v2296_v63  ;;  %v2298_v23 = vpop.f32.mrb[21].mxu1 }
 0x641   : > { %v2452_v36 = vadd.f32 %v2451_v60, %v2450_v50 }
 0x642   : > { %v2480_v11 = vsel %vm1349_vm2, %v2467_v14, 0.0  ;;  %v6185_v30 = vadd.f32 %v5746_v46, %v2297_v56  ;;  %v4035_v14 = vld [vmem:[%s7047_s13] ss:$0 sm:$0xff] }
 0x643   : > { %v2481_v58 = vadd.f32 %v2480_v11, %v2479_v20 }
 0x644   : > { %v2453_v4 = vsel %vm1349_vm2, %v6185_v30, 0.0  ;;  %v2468_v24 = vmul.f32 %v6185_v30, %v6185_v30 }
 0x645   : > { %v2454_v7 = vadd.f32 %v2453_v4, %v2452_v36 }
 0x646   : > { %v2482_v62 = vsel %vm1349_vm2, %v2468_v24, 0.0  ;;  %v4036_v24 = vld [vmem:[%s7048_s14] ss:$0 sm:$0xff] }
 0x647   : > { %v2455_v48 = vrot.slane %v2454_v7, 4  ;;  %v2483_v32 = vadd.f32 %v2482_v62, %v2481_v58 }
 0x649   : > { %v2456_v28 = vadd.f32 %v2455_v48, %v2454_v7  ;;  %v2484_v52 = vrot.slane %v2483_v32, 4 }
 0x64b   : > { %v2457_v25 = vrot.slane %v2456_v28, 2  ;;  %v2485_v27 = vadd.f32 %v2484_v52, %v2483_v32 }
 0x64d   : > { %v2458_v46 = vadd.f32 %v2457_v25, %v2456_v28  ;;  %v2486_v8 = vrot.slane %v2485_v27, 2 }
 0x64f   : > { %v2459_v34 = vrot.slane %v2458_v46, 1  ;;  %v2487_v35 = vadd.f32 %v2486_v8, %v2485_v27 }
 0x651   : > { %v2460_v59 = vadd.f32 %v2459_v34, %v2458_v46  ;;  %v2488_v41 = vrot.slane %v2487_v35, 1 }
 0x653   : > { %4203 = vmatmul.mubr.msk.f32.vlgmr.msra.gmra.mrb[18].mxu0 %vm1349_vm2, %v2460_v59  ;;  %v2489_v47 = vadd.f32 %v2488_v41, %v2487_v35 }
 0x654   : > { %4280 = vmatpush3.bf16.msra.mxu0 %v5669_v44  ;;  %4209 = vmatprep.mubr.msk.f32.mxu0 %vm4946_vm0, %v7079_v15 }
 0x655   : > { %4314 = vmatprep.subr.bf16.mxu0 %v4956_v33 }
 0x657   : > { %4210 = vmatmul.mubr.msk.f32.vlgmr.msra.gmra.mrb[20].mxu0 %vm1349_vm2, %v2489_v47 }
 0x726   : > { %v2559_v22 = vpop.f32.mrb[18].mxu0 }
 0x727   : > { %v2636_v49 = vmul.f32 0.00390625, %v2559_v22  ;;  %v4204_v42 = vpop.f32.mrb[19].mxu0 }
 0x729   : > { %v2638_v21 = vmul.f32 %v2636_v49, %v2636_v49  ;;  %v2644_v43 = vrot.slane %v2636_v49, %v5296_v6 }
 0x72a   : > { %v2632_v16 = vpop.f32.mrb[20].mxu0 }
 0x72b   : > { %v2637_v2 = vmul.f32 0.00390625, %v2632_v16  ;;  %v4211_v10 = vpop.f32.mrb[21].mxu0  ;;  %v2645_v9 = vsub.f32 %v6129_v39, %v2644_v43  ;;  %v2646_v63 = vsub.f32 %v6132_v1, %v2644_v43  ;;  %v2647_v19 = vsub.f32 %v6135_v3, %v2644_v43 }
 0x72c   : > { %v2648_v60 = vsub.f32 %v6138_v26, %v2644_v43  ;;  %v2649_v56 = vsub.f32 %v6149_v5, %v2644_v43  ;;  %v2650_v23 = vsub.f32 %v6165_v57, %v2644_v43  ;;  %v2651_v45 = vsub.f32 %v6176_v29, %v2644_v43 }
 0x72d   : > { %v2639_v12 = vsub.f32 %v2637_v2, %v2638_v21  ;;  %v2652_v50 = vsub.f32 %v6185_v30, %v2644_v43 }
 0x72f   : > { %v2640_v0 = vmax.f32 %v2639_v12, 0.0 }
 0x731   : > { %v2653_v51 = vadd.f32 1e-05, %v2640_v0 }
 0x733   : > { %4812 = vrsqrt.f32 %v2653_v51 }
 0x73d   : > { %v4813_v18 = vpop.eup %4812 }
 0x73e   : > { %v2658_v17 = vrot.slane %v4813_v18, %v5296_v6 }
 0x740   : > { %v2659_v11 = vmul.f32 %v2658_v17, %v2645_v9  ;;  %v2660_v20 = vmul.f32 %v2658_v17, %v2646_v63  ;;  %v2661_v36 = vmul.f32 %v2658_v17, %v2647_v19  ;;  %v2662_v4 = vmul.f32 %v2658_v17, %v2648_v60 }
 0x741   : > { %v2663_v58 = vmul.f32 %v2658_v17, %v2649_v56  ;;  %v2664_v7 = vmul.f32 %v2658_v17, %v2650_v23  ;;  %v2665_v62 = vmul.f32 %v2658_v17, %v2651_v45  ;;  %v2666_v48 = vmul.f32 %v2658_v17, %v2652_v50 }
 0x742   : > { %v2673_v32 = vmul.f32 %v4035_v14, %v2659_v11  ;;  %v2674_v28 = vmul.f32 %v4035_v14, %v2660_v20  ;;  %v2675_v52 = vmul.f32 %v4035_v14, %v2661_v36  ;;  %v2676_v25 = vmul.f32 %v4035_v14, %v2662_v4  ;;  %v3019_v20 = vld [vmem:[%s7049_s15 + $0x10] sm:$0xff]  ;;  %v3020_v36 = vld [vmem:[%s7049_s15 + $0x18] sm:$0xff] }
 0x743   : > { %v2677_v27 = vmul.f32 %v4035_v14, %v2663_v58  ;;  %v2678_v46 = vmul.f32 %v4035_v14, %v2664_v7  ;;  %v2679_v8 = vmul.f32 %v4035_v14, %v2665_v62  ;;  %v2680_v21 = vmul.f32 %v4035_v14, %v2666_v48  ;;  %v3021_v58 = vld [vmem:[%s7049_s15 + $0x20] sm:$0xff]  ;;  %v3022_v7 = vld [vmem:[%s7049_s15 + $0x28] sm:$0xff] }
 0x744   : > { %v2687_v34 = vadd.f32 %v4036_v24, %v2673_v32  ;;  %v2688_v35 = vadd.f32 %v4036_v24, %v2674_v28  ;;  %v2689_v59 = vadd.f32 %v4036_v24, %v2675_v52  ;;  %v6221_v41 = vadd.f32 %v4036_v24, %v2676_v25  ;;  %v3023_v52 = vld [vmem:[%s7049_s15 + $0x30] sm:$0xff]  ;;  %v3024_v25 = vld [vmem:[%s7049_s15 + $0x38] sm:$0xff] }
 0x745   : > { %v6223_v47 = vadd.f32 %v4036_v24, %v2677_v27  ;;  %v6225_v13 = vadd.f32 %v4036_v24, %v2678_v46  ;;  %v6227_v49 = vadd.f32 %v4036_v24, %v2679_v8  ;;  %v6233_v12 = vadd.f32 %v4036_v24, %v2680_v21 }
 0x746   : > { %v4037_v40 = vmul.f32 -1.442695, %v2687_v34  ;;  %v4038_v37 = vmul.f32 -1.442695, %v2688_v35  ;;  %v4039_v22 = vmul.f32 -1.442695, %v2689_v59  ;;  %v4285_v4 = vpack.c.bf16 %v3020_v36, %v3019_v20 }
 0x747   : > { %v4040_v42 = vmul.f32 -1.442695, %v6221_v41  ;;  %v4041_v16 = vmul.f32 -1.442695, %v6223_v47  ;;  %v4042_v2 = vmul.f32 -1.442695, %v6225_v13  ;;  %v4288_v48 = vpack.c.bf16 %v3022_v7, %v3021_v58 }
 0x748   : > { %4814 = vpow2.f32 %v4037_v40  ;;  %v4043_v10 = vmul.f32 -1.442695, %v6227_v49  ;;  %v4044_v0 = vmul.f32 -1.442695, %v6233_v12  ;;  %4286 = vmatpush1.bf16.msra.mxu1 %v4285_v4  ;;  %v3030_v20 = vld [vmem:[%s7049_s15 + $0x68] sm:$0xff] }
 0x749   : > { %4816 = vpow2.f32 %v4038_v37  ;;  %4287 = vmatprep.subr.bf16.mxu1 %v4956_v33 }
 0x74a   : > { %4818 = vpow2.f32 %v4039_v22  ;;  %v4291_v22 = vpack.c.bf16 %v3024_v25, %v3023_v52 }
 0x74b   : > { %4820 = vpow2.f32 %v4040_v42 }
 0x74c   : > { %4822 = vpow2.f32 %v4041_v16  ;;  %4289 = vmatpush1.bf16.msra.mxu1 %v4288_v48  ;;  %v3031_v48 = vld [vmem:[%s7049_s15 + $0x70] sm:$0xff] }
 0x74d   : > { %4824 = vpow2.f32 %v4042_v2  ;;  %4290 = vmatprep.subr.bf16.mxu1 %v4956_v33 }
 0x74e   : > { %4826 = vpow2.f32 %v4043_v10 }
 0x74f   : > { %4828 = vpow2.f32 %v4044_v0 }
 0x750   : > { %4292 = vmatpush1.bf16.msra.mxu1 %v4291_v22 }
 0x751   : > { %4293 = vmatprep.subr.bf16.mxu1 %v4956_v33 }
 0x752   : > { %v4815_v51 = vpop.eup %4814 }
 0x753   : > { %v4817_v43 = vpop.eup %4816  ;;  %v2719_v18 = vadd.f32 1.0, %v4815_v51 }
 0x754   : > { %v4819_v9 = vpop.eup %4818  ;;  %v2720_v17 = vadd.f32 1.0, %v4817_v43 }
 0x755   : > { %v4821_v63 = vpop.eup %4820  ;;  %4830 = vrcp.f32 %v2719_v18  ;;  %v2721_v19 = vadd.f32 1.0, %v4819_v9 }
 0x756   : > { %v4823_v60 = vpop.eup %4822  ;;  %4832 = vrcp.f32 %v2720_v17  ;;  %v2722_v14 = vadd.f32 1.0, %v4821_v63 }
 0x757   : > { %v4825_v56 = vpop.eup %4824  ;;  %4834 = vrcp.f32 %v2721_v19  ;;  %v2723_v23 = vadd.f32 1.0, %v4823_v60  ;;  %v3027_v60 = vld [vmem:[%s7049_s15 + $0x50] sm:$0xff] }
 0x758   : > { %v4827_v45 = vpop.eup %4826  ;;  %4836 = vrcp.f32 %v2722_v14  ;;  %v2724_v50 = vadd.f32 1.0, %v4825_v56  ;;  %v3028_v14 = vld [vmem:[%s7049_s15 + $0x58] sm:$0xff] }
 0x759   : > { %4838 = vrcp.f32 %v2723_v23  ;;  %v2725_v11 = vadd.f32 1.0, %v4827_v45  ;;  %v4829_v24 = vpop.eup %4828  ;;  %v4297_v23 = vpack.c.bf16 %v3028_v14, %v3027_v60 }
 0x75a   : > { %4840 = vrcp.f32 %v2724_v50  ;;  %v2726_v9 = vadd.f32 1.0, %v4829_v24 }
 0x75b   : > { %4842 = vrcp.f32 %v2725_v11  ;;  %v3029_v11 = vld [vmem:[%s7049_s15 + $0x60] sm:$0xff] }
 0x75c   : > { %4844 = vrcp.f32 %v2726_v9  ;;  %v4300_v24 = vpack.c.bf16 %v3030_v20, %v3029_v11 }
 0x75f   : > { %v4831_v62 = vpop.eup %4830 }
 0x760   : > { %v4833_v32 = vpop.eup %4832  ;;  %v2743_v28 = vmul.f32 %v4831_v62, %v2687_v34 }
 0x761   : > { %v4835_v27 = vpop.eup %4834  ;;  %v2744_v46 = vmul.f32 %v4833_v32, %v2688_v35  ;;  %v3032_v32 = vld [vmem:[%s7049_s15 + $0x78] sm:$0xff] }
 0x762   : > { %v4837_v8 = vpop.eup %4836  ;;  %v6255_v40 = vmul.f32 %v4835_v27, %v2689_v59  ;;  %v2765_v37 = vrot.slane %v2743_v28, 1  ;;  %v2751_v45 = vrot.slane %v2743_v28, 7 }
 0x763   : > { %v4839_v42 = vpop.eup %4838  ;;  %v4529_v34 = vpack.i.bf16 %v2744_v46, %v2743_v28  ;;  %v2766_v16 = vrot.slane %v2744_v46, 1  ;;  %v6259_v21 = vmul.f32 %v4837_v8, %v6221_v41  ;;  %v2752_v50 = vrot.slane %v2744_v46, 7  ;;  %v3033_v8 = vld [vmem:[%s7049_s15 + $0x80] sm:$0xff] }
 0x764   : > { %v4841_v2 = vpop.eup %4840  ;;  %v4534_v10 = vpack.i.bf16 %v6255_v40, %v2744_v46  ;;  %v6263_v0 = vmul.f32 %v4839_v42, %v6223_v47  ;;  %v2772_v35 = vmul.f32 %v2765_v37, %v5278_v53  ;;  %v2753_v4 = vrot.slane %v6255_v40, 7  ;;  %v3034_v37 = vld [vmem:[%s7049_s15 + $0x88] sm:$0xff] }
 0x765   : > { %v4843_v59 = vpop.eup %4842  ;;  %4530 = vrot.lane.b32.xlu0 %v4529_v34, %s7110_s0  ;;  %4525 = vrot.lane.b32.xlu1 %v4529_v34, %s7119_s6  ;;  %v2773_v51 = vmul.f32 %v2766_v16, %v5278_v53  ;;  %v4544_v43 = vpack.i.bf16 %v6259_v21, %v6255_v40  ;;  %v6274_v18 = vmul.f32 %v4841_v2, %v6225_v13  ;;  %v3025_v13 = vld [vmem:[%s7049_s15 + $0x40] sm:$0xff]  ;;  %v2754_v25 = vrot.slane %v6259_v21, 7 }
 0x766   : > { %v4549_v41 = vpack.i.bf16 %v6263_v0, %v6259_v21  ;;  %v6277_v47 = vmul.f32 %v4843_v59, %v6227_v49  ;;  %v3026_v49 = vld [vmem:[%s7049_s15 + $0x48] sm:$0xff]  ;;  %v4845_v36 = vpop.eup %4844  ;;  %v6318_v7 = vmul.f32 %v2751_v45, %v5287_v55  ;;  %v6321_v62 = vmul.f32 %v2752_v50, %v5287_v55 }
 0x767   : > { %4046 = vmatprep.mubr.msk.f32.mxu1 %vm1349_vm2, %v2773_v51  ;;  %v4574_v17 = vpack.i.bf16 %v2773_v51, %v2772_v35  ;;  %v4559_v63 = vpack.i.bf16 %v6274_v18, %v6263_v0  ;;  %v4294_v56 = vpack.c.bf16 %v3026_v49, %v3025_v13  ;;  %v6315_v58 = vmul.f32 %v4845_v36, %v6233_v12 }
 0x768   : > { %v4564_v19 = vpack.i.bf16 %v6277_v47, %v6274_v18  ;;  %v6335_v12 = vmul.f32 %v2753_v4, %v5287_v55  ;;  %v4303_v28 = vpack.c.bf16 %v3032_v32, %v3031_v48  ;;  %v4569_v52 = vpack.i.bf16 %v6321_v62, %v6318_v7 }
 0x769   : > { %4535 = vrot.lane.b32.xlu0 %v4534_v10, %s7081_s7  ;;  %4545 = vrot.lane.b32.xlu1 %v4544_v43, %s7110_s0  ;;  %v2767_v27 = vrot.slane %v6255_v40, 1  ;;  %v2768_v46 = vrot.slane %v6259_v21, 1  ;;  %v4306_v40 = vpack.c.bf16 %v3034_v37, %v3033_v8  ;;  %v6354_v42 = vmul.f32 %v2754_v25, %v5287_v55 }
 0x76a   : > { %4295 = vmatpush1.bf16.msra.mxu1 %v4294_v56  ;;  %v4584_v22 = vpack.i.bf16 %v6335_v12, %v6321_v62  ;;  %v2755_v21 = vrot.slane %v6263_v0, 7  ;;  %v2769_v2 = vrot.slane %v6263_v0, 1  ;;  %v2770_v10 = vrot.slane %v6274_v18, 1 }
 0x76b   : > { %4296 = vmatprep.subr.bf16.mxu1 %v4956_v33  ;;  %v6357_v34 = vmul.f32 %v2767_v27, %v5278_v53  ;;  %v6360_v16 = vmul.f32 %v2768_v46, %v5278_v53  ;;  %v4589_v35 = vpack.i.bf16 %v6354_v42, %v6335_v12  ;;  %v2779_v49 = vrot.slane %v6315_v58, 7 }
 0x76c   : > { %v6373_v51 = vmul.f32 %v2755_v21, %v5287_v55  ;;  %v6380_v0 = vmul.f32 %v2769_v2, %v5278_v53  ;;  %v2771_v56 = vrot.slane %v6277_v47, 1  ;;  %v2781_v50 = vrot.slane %v6315_v58, 1 }
 0x76d   : > { %4540 = vrot.lane.b32.xlu0 %v4544_v43, %s7119_s6  ;;  %4550 = vrot.lane.b32.xlu1 %v4549_v41, %s7081_s7  ;;  %v4594_v59 = vpack.i.bf16 %v6360_v16, %v6357_v34  ;;  %v2756_v43 = vrot.slane %v6274_v18, 7  ;;  %v2757_v41 = vrot.slane %v6277_v47, 7  ;;  %v2780_v14 = vmul.f32 %v2779_v49, %v5287_v55 }
 0x76e   : > { %4298 = vmatpush1.bf16.msra.mxu1 %v4297_v23  ;;  %v4604_v9 = vpack.i.bf16 %v6373_v51, %v6354_v42  ;;  %v6411_v45 = vmul.f32 %v2771_v56, %v5278_v53 }
 0x76f   : > { %4299 = vmatprep.subr.bf16.mxu1 %v4956_v33  ;;  %v6398_v13 = vmul.f32 %v2757_v41, %v5287_v55 }
 0x771   : > { %4560 = vrot.lane.b32.xlu0 %v4559_v63, %s7110_s0  ;;  %4555 = vrot.lane.b32.xlu1 %v4559_v63, %s7119_s6  ;;  %v6389_v63 = vmul.f32 %v2756_v43, %v5287_v55  ;;  %v4629_v23 = vpack.i.bf16 %v2780_v14, %v6398_v13 }
 0x772   : > { %4301 = vmatpush1.bf16.msra.mxu1 %v4300_v24 }
 0x773   : > { %4302 = vmatprep.subr.bf16.mxu1 %v4956_v33  ;;  %v4624_v60 = vpack.i.bf16 %v6398_v13, %v6389_v63 }
 0x775   : > { %4565 = vrot.lane.b32.xlu0 %v4564_v19, %s7081_s7  ;;  %2802 = vrot.lane.b32.xlu1 %v6277_v47, %s7110_s0  ;;  %v4609_v19 = vpack.i.bf16 %v6389_v63, %v6373_v51 }
 0x776   : > { %4304 = vmatpush1.bf16.msra.mxu1 %v4303_v28 }
 0x777   : > { %4305 = vmatprep.subr.bf16.mxu1 %v4956_v33 }
 0x779   : > { %2884 = vrot.lane.b32.xlu0 %v6277_v47, %s7119_s6  ;;  %2954 = vrot.lane.b32.xlu1 %v6315_v58, %s7081_s7  ;;  %v6421_v47 = vmul.f32 %v2781_v50, %v5278_v53  ;;  %s4884_s7 = sshll.u32 %s4960_s22, 4  ;;  %s4885_s7 = int_to_ptr.vmem [resolvable:$false] %s4884_s7 }
 0x77a   : > { %4307 = vmatpush1.bf16.msra.mxu1 %v4306_v40 }
 0x77b   : > { %4308 = vmatprep.subr.bf16.mxu1 %v4956_v33 }
 0x77d   : > { %4575 = vrot.lane.b32.xlu1 %v4574_v17, %s7121_s29  ;;  %4570 = vrot.lane.b32.xlu0 %v4569_v52, %s7112_s26 }
 0x781   : > { %4585 = vrot.lane.b32.xlu1 %v4584_v22, %s7122_s9  ;;  %4580 = vrot.lane.b32.xlu0 %v4574_v17, %s7111_s1  ;;  %v6386_v17 = vmul.f32 %v2770_v10, %v5278_v53 }
 0x783   : > { %v4614_v18 = vpack.i.bf16 %v6386_v17, %v6380_v0 }
 0x785   : > { %4590 = vrot.lane.b32.xlu1 %v4589_v35, %s7112_s26  ;;  %4595 = vrot.lane.b32.xlu0 %v4594_v59, %s7121_s29 }
 0x789   : > { %4600 = vrot.lane.b32.xlu1 %v4594_v59, %s7111_s1  ;;  %4605 = vrot.lane.b32.xlu0 %v4604_v9, %s7122_s9 }
 0x78d   : > { %4615 = vrot.lane.b32.xlu1 %v4614_v18, %s7121_s29  ;;  %4610 = vrot.lane.b32.xlu0 %v4609_v19, %s7112_s26 }
 0x791   : > { %4625 = vrot.lane.b32.xlu1 %v4624_v60, %s7122_s9  ;;  %4620 = vrot.lane.b32.xlu0 %v4614_v18, %s7111_s1 }
 0x795   : > { %4630 = vrot.lane.b32.xlu1 %v4629_v23, %s7112_s26  ;;  %2909 = vrot.lane.b32.xlu0 %v6411_v45, %s7121_s29 }
 0x799   : > { %2830 = vrot.lane.b32.xlu1 %v6411_v45, %s7111_s1  ;;  %2933 = vrot.lane.b32.xlu0 %v2780_v14, %s7122_s9 }
 0x79d   : > { %2911 = vrot.lane.b32.xlu1 %v6421_v47, %s7121_s29  ;;  %2886 = vrot.lane.b32.xlu0 %v6315_v58, %s7119_s6 }
 0x7d7   : > { %v4531_v11 = vpop.permute.xlu0 %4530  ;;  %v4526_v20 = vpop.permute.xlu1 %4525 }
 0x7d8   : > { %v4527_v22 = vunpack.i.l.bf16 %v4526_v20  ;;  %v4532_v40 = vunpack.i.l.bf16 %v4531_v11  ;;  %v4533_v10 = vunpack.i.h.bf16 %v4531_v11  ;;  %v4528_v50 = vunpack.i.h.bf16 %v4526_v20 }
 0x7da   : > { %v2963_v60 = vsel %vm1349_vm2, %v6318_v7, %v4532_v40  ;;  %v2964_v23 = vsel %vm1349_vm2, %v6321_v62, %v4533_v10 }
 0x7db   : > { %v6427_v36 = vpop.permute.xlu0 %4535  ;;  %v6429_v4 = vpop.permute.xlu1 %4545 }
 0x7dc   : > { %v4537_v18 = vunpack.i.l.bf16 %v6427_v36  ;;  %v4538_v20 = vunpack.i.h.bf16 %v6427_v36 }
 0x7df   : > { %v6431_v24 = vpop.permute.xlu0 %4540  ;;  %v6433_v48 = vpop.permute.xlu1 %4550 }
 0x7e0   : > { %v4542_v7 = vunpack.i.l.bf16 %v6431_v24  ;;  %v4552_v36 = vunpack.i.l.bf16 %v6433_v48 }
 0x7e3   : > { %v6435_v32 = vpop.permute.xlu0 %4560  ;;  %v6437_v28 = vpop.permute.xlu1 %4555 }
 0x7e7   : > { %v6439_v52 = vpop.permute.xlu0 %4565  ;;  %v6441_v25 = vpop.permute.xlu1 %2802 }
 0x7eb   : > { %v6443_v27 = vpop.permute.xlu0 %2884  ;;  %v6445_v58 = vpop.permute.xlu1 %2954 }
 0x7ef   : > { %v4576_v46 = vpop.permute.xlu1 %4575  ;;  %v4571_v8 = vpop.permute.xlu0 %4570 }
 0x7f0   : > { %v4572_v37 = vunpack.i.l.bf16 %v4571_v8  ;;  %v4577_v21 = vunpack.i.l.bf16 %v4576_v46  ;;  %v4573_v14 = vunpack.i.h.bf16 %v4571_v8 }
 0x7f2   : > { %v2977_v2 = vsel %vm1385_vm6, %v6027_v38, %v4572_v37 }
 0x7f3   : > { %v2985_v35 = vsel %vm1403_vm8, %v2977_v2, %v4527_v22  ;;  %v4586_v59 = vpop.permute.xlu1 %4585  ;;  %v4581_v43 = vpop.permute.xlu0 %4580  ;;  %v4547_v2 = vunpack.i.l.bf16 %v6429_v4 }
 0x7f4   : > { %v4587_v41 = vunpack.i.l.bf16 %v4586_v59  ;;  %v2993_v9 = vsel %vm2127_vm10, %v2985_v35, %v4577_v21  ;;  %v4583_v19 = vunpack.i.h.bf16 %v4581_v43  ;;  %v4582_v49 = vunpack.i.l.bf16 %v4581_v43 }
 0x7f5   : > { %v4578_v35 = vunpack.i.h.bf16 %v4576_v46  ;;  %v4588_v8 = vunpack.i.h.bf16 %v4586_v59 }
 0x7f6   : > { %v3001_v56 = vsel %vm2136_vm11, %v2993_v9, %v4587_v41  ;;  %v2970_v11 = vsel %vm1367_vm4, %v2963_v60, %v4582_v49  ;;  %v2971_v40 = vsel %vm1367_vm4, %v2964_v23, %v4583_v19  ;;  %v4548_v41 = vunpack.i.h.bf16 %v6429_v4 }
 0x7f7   : > { %v4591_v37 = vpop.permute.xlu1 %4590  ;;  %v4596_v22 = vpop.permute.xlu0 %4595  ;;  %v3009_v21 = vsel %vm2145_vm12, %v3001_v56, %v4537_v18  ;;  %v2978_v43 = vsel %vm1385_vm6, %v2970_v11, %v4573_v14  ;;  %v2965_v49 = vsel %vm1349_vm2, %v6335_v12, %v4547_v2 }
 0x7f8   : > { %v4592_v15 = vunpack.i.l.bf16 %v4591_v37  ;;  %3121 = vmatmul.mubr.f32.vlgmr.msra.gmra.mrb[22].mxu1 %v3009_v21  ;;  %v2986_v62 = vsel %vm1403_vm8, %v2978_v43, %v4528_v50  ;;  %v4597_v59 = vunpack.i.l.bf16 %v4596_v22  ;;  %v4593_v14 = vunpack.i.h.bf16 %v4591_v37 }
 0x7f9   : > { %4047 = vmatprep.mubr.msk.f32.mxu1 %vm1349_vm2, %v6357_v34  ;;  %4310 = vmatpush3.bf16.msra.mxu1 %v5669_v44  ;;  %v2994_v10 = vsel %vm2127_vm10, %v2986_v62, %v4578_v35  ;;  %v4543_v21 = vunpack.i.h.bf16 %v6431_v24  ;;  %v2966_v43 = vsel %vm1349_vm2, %v6354_v42, %v4548_v41  ;;  %v4557_v62 = vunpack.i.l.bf16 %v6437_v28 }
 0x7fa   : > { %v2979_v46 = vsel %vm1385_vm6, %v2971_v40, %v4592_v15  ;;  %4311 = vmatprep.subr.bf16.mxu1 %v4956_v33  ;;  %v3002_v19 = vsel %vm2136_vm11, %v2994_v10, %v4588_v8  ;;  %v4598_v8 = vunpack.i.h.bf16 %v4596_v22  ;;  %v4563_v42 = vunpack.i.h.bf16 %v6435_v32 }
 0x7fb   : > { %v4601_v9 = vpop.permute.xlu1 %4600  ;;  %v4606_v18 = vpop.permute.xlu0 %4605  ;;  %v2987_v34 = vsel %vm1403_vm8, %v2979_v46, %v4542_v7  ;;  %v3010_v23 = vsel %vm2145_vm12, %v3002_v19, %v4538_v20  ;;  %v4562_v7 = vunpack.i.l.bf16 %v6435_v32 }
 0x7fc   : > { %v4602_v60 = vunpack.i.l.bf16 %v4601_v9  ;;  %v4607_v15 = vunpack.i.l.bf16 %v4606_v18  ;;  %v4603_v56 = vunpack.i.h.bf16 %v4601_v9  ;;  %v2995_v4 = vsel %vm2127_vm10, %v2987_v34, %v4597_v59  ;;  %3126 = vmatmul.mubr.f32.gmra.mrb[24].mxu1 %v3010_v23 }
 0x7fd   : > { %4048 = vmatprep.mubr.msk.f32.mxu1 %vm1349_vm2, %v6360_v16  ;;  %v4608_v20 = vunpack.i.h.bf16 %v4606_v18  ;;  %v4553_v16 = vunpack.i.h.bf16 %v6433_v48  ;;  %v2967_v48 = vsel %vm1349_vm2, %v6373_v51, %v4562_v7  ;;  %v4567_v34 = vunpack.i.l.bf16 %v6439_v52 }
 0x7fe   : > { %v2972_v50 = vsel %vm1367_vm4, %v2965_v49, %v4602_v60  ;;  %v3003_v11 = vsel %vm2136_vm11, %v2995_v4, %v4607_v15  ;;  %v2973_v24 = vsel %vm1367_vm4, %v2966_v43, %v4603_v56  ;;  %v4568_v43 = vunpack.i.h.bf16 %v6439_v52 }
 0x7ff   : > { %v2980_v35 = vsel %vm1385_vm6, %v2972_v50, %v4593_v14  ;;  %v4616_v12 = vpop.permute.xlu1 %4615  ;;  %v4611_v2 = vpop.permute.xlu0 %4610  ;;  %v3011_v37 = vsel %vm2145_vm12, %v3003_v11, %v4552_v36 }
 0x800   : > { %v4612_v40 = vunpack.i.l.bf16 %v4611_v2  ;;  %v2988_v46 = vsel %vm1403_vm8, %v2980_v35, %v4543_v21  ;;  %3131 = vmatmul.mubr.f32.gmra.mrb[26].mxu1 %v3011_v37  ;;  %v4617_v41 = vunpack.i.l.bf16 %v4616_v12  ;;  %v4613_v60 = vunpack.i.h.bf16 %v4611_v2 }
 0x801   : > { %v2996_v59 = vsel %vm2127_vm10, %v2988_v46, %v4598_v8  ;;  %4049 = vmatprep.mubr.msk.f32.mxu1 %vm1349_vm2, %v6380_v0  ;;  %v4558_v0 = vunpack.i.h.bf16 %v6437_v28  ;;  %v4618_v4 = vunpack.i.h.bf16 %v4616_v12  ;;  %v2968_v35 = vsel %vm1349_vm2, %v6389_v63, %v4563_v42 }
 0x802   : > { %v2981_v10 = vsel %vm1385_vm6, %v2973_v24, %v4612_v40  ;;  %v3004_v19 = vsel %vm2136_vm11, %v2996_v59, %v4608_v20  ;;  %v2969_v40 = vsel %vm1349_vm2, %v6398_v13, %v6441_v25 }
 0x803   : > { %v4626_v22 = vpop.permute.xlu1 %4625  ;;  %v4621_v9 = vpop.permute.xlu0 %4620  ;;  %v2989_v18 = vsel %vm1403_vm8, %v2981_v10, %v4557_v62  ;;  %v3012_v32 = vsel %vm2145_vm12, %v3004_v19, %v4553_v16 }
 0x804   : > { %v4627_v49 = vunpack.i.l.bf16 %v4626_v22  ;;  %v4622_v36 = vunpack.i.l.bf16 %v4621_v9  ;;  %v4623_v15 = vunpack.i.h.bf16 %v4621_v9  ;;  %v2997_v14 = vsel %vm2127_vm10, %v2989_v18, %v4617_v41  ;;  %3136 = vmatmul.mubr.f32.gmra.mrb[28].mxu1 %v3012_v32 }
 0x805   : > { %4050 = vmatprep.mubr.msk.f32.mxu1 %vm1349_vm2, %v6386_v17  ;;  %v4628_v2 = vunpack.i.h.bf16 %v4626_v22  ;;  %v7123_v22 = vmov 0.0  }
 0x806   : > { %v2974_v56 = vsel %vm1367_vm4, %v2967_v48, %v4622_v36  ;;  %v3005_v23 = vsel %vm2136_vm11, %v2997_v14, %v4627_v49  ;;  %v2975_v12 = vsel %vm1367_vm4, %v2968_v35, %v4623_v15 }
 0x807   : > { %v2982_v51 = vsel %vm1385_vm6, %v2974_v56, %v4613_v60  ;;  %v4631_v50 = vpop.permute.xlu1 %4630  ;;  %v2910_v11 = vpop.permute.xlu0 %2909  ;;  %v3013_v21 = vsel %vm2145_vm12, %v3005_v23, %v4567_v34  ;;  %v4045_v34 = vld [vmem:[%s7050_s16] ss:$0 sm:$0xff] }
 0x808   : > { %v4632_v28 = vunpack.i.l.bf16 %v4631_v50  ;;  %v2990_v37 = vsel %vm1403_vm8, %v2982_v51, %v4558_v0  ;;  %3141 = vmatmul.mubr.f32.gmra.mrb[30].mxu1 %v3013_v21  ;;  %v4633_v16 = vunpack.i.h.bf16 %v4631_v50 }
 0x809   : > { %v2998_v7 = vsel %vm2127_vm10, %v2990_v37, %v4618_v4  ;;  %4051 = vmatprep.mubr.msk.f32.mxu1 %vm1349_vm2, %v6411_v45 }
 0x80a   : > { %v2983_v8 = vsel %vm1385_vm6, %v2975_v12, %v4632_v28  ;;  %v3006_v17 = vsel %vm2136_vm11, %v2998_v7, %v4628_v2 }
 0x80b   : > { %v2991_v63 = vsel %vm1403_vm8, %v2983_v8, %v6443_v27  ;;  %v2831_v52 = vpop.permute.xlu1 %2830  ;;  %v2934_v62 = vpop.permute.xlu0 %2933  ;;  %v3014_v24 = vsel %vm2145_vm12, %v3006_v17, %v4568_v43 }
 0x80c   : > { %v2999_v20 = vsel %vm2127_vm10, %v2991_v63, %v2910_v11  ;;  %v2976_v46 = vsel %vm1367_vm4, %v2969_v40, %v2831_v52  ;;  %3146 = vmatmul.mubr.f32.gmra.mrb[32].mxu1 %v3014_v24 }
 0x80d   : > { %v3007_v10 = vsel %vm2136_vm11, %v2999_v20, %v2934_v62  ;;  %4052 = vmatprep.mubr.msk.f32.mxu1 %vm1349_vm2, %v6421_v47  ;;  %v2984_v25 = vsel %vm1385_vm6, %v2976_v46, %v4633_v16 }
 0x80e   : > { %v3015_v45 = vsel %vm2145_vm12, %v3007_v10, %v6445_v58 }
 0x80f   : > { %v2912_v13 = vpop.permute.xlu1 %2911  ;;  %v2887_v27 = vpop.permute.xlu0 %2886 }
 0x810   : > { %v2992_v59 = vsel %vm1403_vm8, %v2984_v25, %v2887_v27  ;;  %3151 = vmatmul.mubr.f32.gmra.mrb[34].mxu1 %v3015_v45 }
 0x811   : > { %v3000_v42 = vsel %vm2127_vm10, %v2992_v59, %v2912_v13  ;;  %4053 = vmatprep.mubr.msk.f32.mxu1 %vm1349_vm2, %v5283_v54 }
 0x812   : > { %v3008_v41 = vsel %vm2136_vm11, %v3000_v42, %v6114_v31 }
 0x813   : > { %v3016_v47 = vsel %vm2145_vm12, %v3008_v41, %v6119_v61 }
 0x814   : > { %3156 = vmatmul.mubr.f32.gmra.mrb[36].mxu1 %v3016_v47 }
 0x815   : > { %4216 = vmatprep.mubr.msk.f32.mxu1 %vm4946_vm0, %v7123_v22 }
 0x8cb   : > { %v3122_v9 = vpop.f32.mrb[22].mxu1 }
 0x8cc   : > { %v3124_v58 = vpop.f32.mrb[23].mxu1  ;;  %v6551_v60 = vadd.f32 %v4045_v34, %v3122_v9 }
 0x8ce   : > { %v3184_v23 = vmul.f32 %v6551_v60, %v6551_v60  ;;  %v3163_v35 = vsel %vm1349_vm2, %v6551_v60, 0.0 }
 0x8cf   : > { %v3127_v19 = vpop.f32.mrb[24].mxu1 }
 0x8d0   : > { %v3129_v18 = vpop.f32.mrb[25].mxu1  ;;  %v6549_v36 = vadd.f32 %v4045_v34, %v3127_v19  ;;  %v3192_v43 = vsel %vm1349_vm2, %v3184_v23, 0.0 }
 0x8d2   : > { %v3185_v0 = vmul.f32 %v6549_v36, %v6549_v36  ;;  %v3164_v51 = vsel %vm1349_vm2, %v6549_v36, 0.0 }
 0x8d3   : > { %v3132_v48 = vpop.f32.mrb[26].mxu1  ;;  %v3165_v12 = vadd.f32 %v3164_v51, %v3163_v35 }
 0x8d4   : > { %v3134_v49 = vpop.f32.mrb[27].mxu1  ;;  %v6553_v32 = vadd.f32 %v4045_v34, %v3132_v48  ;;  %v3193_v2 = vsel %vm1349_vm2, %v3185_v0, 0.0 }
 0x8d5   : > { %v3194_v62 = vadd.f32 %v3193_v2, %v3192_v43 }
 0x8d6   : > { %v3186_v50 = vmul.f32 %v6553_v32, %v6553_v32  ;;  %v3166_v28 = vsel %vm1349_vm2, %v6553_v32, 0.0 }
 0x8d7   : > { %v3137_v15 = vpop.f32.mrb[28].mxu1  ;;  %v3167_v24 = vadd.f32 %v3166_v28, %v3165_v12 }
 0x8d8   : > { %v3139_v14 = vpop.f32.mrb[29].mxu1  ;;  %v6557_v56 = vadd.f32 %v4045_v34, %v3137_v15  ;;  %v3195_v8 = vsel %vm1349_vm2, %v3186_v50, 0.0 }
 0x8d9   : > { %v3196_v10 = vadd.f32 %v3195_v8, %v3194_v62 }
 0x8da   : > { %v3187_v37 = vmul.f32 %v6557_v56, %v6557_v56  ;;  %v3168_v17 = vsel %vm1349_vm2, %v6557_v56, 0.0 }
 0x8db   : > { %v3142_v4 = vpop.f32.mrb[30].mxu1  ;;  %v3169_v13 = vadd.f32 %v3168_v17, %v3167_v24 }
 0x8dc   : > { %v6565_v11 = vadd.f32 %v4045_v34, %v3142_v4  ;;  %v3144_v21 = vpop.f32.mrb[31].mxu1  ;;  %v3197_v20 = vsel %vm1349_vm2, %v3187_v37, 0.0 }
 0x8dd   : > { %v3198_v41 = vadd.f32 %v3197_v20, %v3196_v10 }
 0x8de   : > { %v3188_v40 = vmul.f32 %v6565_v11, %v6565_v11  ;;  %v3170_v46 = vsel %vm1349_vm2, %v6565_v11, 0.0 }
 0x8df   : > { %v3147_v7 = vpop.f32.mrb[32].mxu1  ;;  %v3171_v47 = vadd.f32 %v3170_v46, %v3169_v13  ;;  %v3740_v46 = vld [vmem:[%s7053_s19] sm:$0xff] }
 0x8e0   : > { %v6580_v63 = vadd.f32 %v4045_v34, %v3147_v7  ;;  %v3149_v52 = vpop.f32.mrb[33].mxu1  ;;  %v3199_v27 = vsel %vm1349_vm2, %v3188_v40, 0.0 }
 0x8e1   : > { %v3200_v18 = vadd.f32 %v3199_v27, %v3198_v41 }
 0x8e2   : > { %v3189_v16 = vmul.f32 %v6580_v63, %v6580_v63  ;;  %v3172_v45 = vsel %vm1349_vm2, %v6580_v63, 0.0 }
 0x8e3   : > { %v3152_v25 = vpop.f32.mrb[34].mxu1  ;;  %v3173_v48 = vadd.f32 %v3172_v45, %v3171_v47 }
 0x8e4   : > { %v6590_v59 = vadd.f32 %v4045_v34, %v3152_v25  ;;  %v3154_v42 = vpop.f32.mrb[35].mxu1  ;;  %v3201_v9 = vsel %vm1349_vm2, %v3189_v16, 0.0  ;;  %v3741_v16 = vld [vmem:[%s7053_s19 + $0x8] sm:$0xff] }
 0x8e5   : > { %v3202_v23 = vadd.f32 %v3201_v9, %v3200_v18  ;;  %v4315_v10 = vpack.c.bf16 %v3741_v16, %v3740_v46 }
 0x8e6   : > { %v3174_v58 = vsel %vm1349_vm2, %v6590_v59, 0.0  ;;  %v3190_v19 = vmul.f32 %v6590_v59, %v6590_v59 }
 0x8e7   : > { %v3157_v49 = vpop.f32.mrb[36].mxu1  ;;  %v3175_v4 = vadd.f32 %v3174_v58, %v3173_v48  ;;  %4316 = vmatpush1.bf16.msra.mxu0 %v4315_v10 }
 0x8e8   : > { %v3203_v15 = vsel %vm1349_vm2, %v3190_v19, 0.0  ;;  %v6598_v14 = vadd.f32 %v4045_v34, %v3157_v49  ;;  %v3159_v0 = vpop.f32.mrb[37].mxu1  ;;  %4317 = vmatprep.subr.bf16.mxu0 %v4956_v33 }
 0x8e9   : > { %v3204_v21 = vadd.f32 %v3203_v15, %v3202_v23  ;;  %v4056_v23 = vld [vmem:[%s7051_s17] ss:$0 sm:$0xff] }
 0x8ea   : > { %v3176_v51 = vsel %vm1349_vm2, %v6598_v14, 0.0  ;;  %v3191_v50 = vmul.f32 %v6598_v14, %v6598_v14 }
 0x8eb   : > { %v3177_v35 = vadd.f32 %v3176_v51, %v3175_v4 }
 0x8ec   : > { %v3205_v2 = vsel %vm1349_vm2, %v3191_v50, 0.0 }
 0x8ed   : > { %v3178_v28 = vrot.slane %v3177_v35, 4  ;;  %v3206_v37 = vadd.f32 %v3205_v2, %v3204_v21 }
 0x8ef   : > { %v3179_v43 = vadd.f32 %v3178_v28, %v3177_v35  ;;  %v3207_v12 = vrot.slane %v3206_v37, 4 }
 0x8f1   : > { %v3180_v7 = vrot.slane %v3179_v43, 2  ;;  %v3208_v34 = vadd.f32 %v3207_v12, %v3206_v37 }
 0x8f3   : > { %v3181_v8 = vadd.f32 %v3180_v7, %v3179_v43  ;;  %v3209_v17 = vrot.slane %v3208_v34, 2 }
 0x8f5   : > { %v3182_v40 = vrot.slane %v3181_v8, 1  ;;  %v3210_v52 = vadd.f32 %v3209_v17, %v3208_v34 }
 0x8f7   : > { %v3183_v62 = vadd.f32 %v3182_v40, %v3181_v8  ;;  %v3211_v24 = vrot.slane %v3210_v52, 1 }
 0x8f9   : > { %4217 = vmatmul.mubr.msk.f32.vlgmr.msra.gmra.mrb[38].mxu1 %vm1349_vm2, %v3183_v62  ;;  %v3212_v20 = vadd.f32 %v3211_v24, %v3210_v52 }
 0x8fa   : > { %4313 = vmatpush3.bf16.msra.mxu1 %v5669_v44  ;;  %4223 = vmatprep.mubr.msk.f32.mxu1 %vm4946_vm0, %v7123_v22 }
 0x8fd   : > { %4224 = vmatmul.mubr.msk.f32.vlgmr.msra.gmra.mrb[40].mxu1 %vm1349_vm2, %v3212_v20 }
 0x9cc   : > { %v3282_v13 = vpop.f32.mrb[38].mxu1 }
 0x9cd   : > { %v3359_v44 = vmul.f32 0.00390625, %v3282_v13  ;;  %v4218_v25 = vpop.f32.mrb[39].mxu1 }
 0x9cf   : > { %v3361_v22 = vmul.f32 %v3359_v44, %v3359_v44  ;;  %v3367_v58 = vrot.slane %v3359_v44, %v5296_v6 }
 0x9d0   : > { %v3355_v27 = vpop.f32.mrb[40].mxu1 }
 0x9d1   : > { %v3360_v45 = vmul.f32 0.00390625, %v3355_v27  ;;  %v4225_v42 = vpop.f32.mrb[41].mxu1  ;;  %v3368_v18 = vsub.f32 %v6551_v60, %v3367_v58  ;;  %v3369_v49 = vsub.f32 %v6549_v36, %v3367_v58  ;;  %v3370_v15 = vsub.f32 %v6553_v32, %v3367_v58  ;;  %v4057_v32 = vld [vmem:[%s7052_s18] ss:$0 sm:$0xff] }
 0x9d2   : > { %v3371_v0 = vsub.f32 %v6557_v56, %v3367_v58  ;;  %v3372_v4 = vsub.f32 %v6565_v11, %v3367_v58  ;;  %v3373_v51 = vsub.f32 %v6580_v63, %v3367_v58  ;;  %v3374_v50 = vsub.f32 %v6590_v59, %v3367_v58 }
 0x9d3   : > { %v3362_v41 = vsub.f32 %v3360_v45, %v3361_v22  ;;  %v3375_v60 = vsub.f32 %v6598_v14, %v3367_v58 }
 0x9d5   : > { %v3363_v47 = vmax.f32 %v3362_v41, 0.0 }
 0x9d7   : > { %v3376_v9 = vadd.f32 1e-05, %v3363_v47 }
 0x9d9   : > { %4846 = vrsqrt.f32 %v3376_v9 }
 0x9e3   : > { %v4847_v19 = vpop.eup %4846 }
 0x9e4   : > { %v3381_v48 = vrot.slane %v4847_v19, %v5296_v6 }
 0x9e6   : > { %v3382_v21 = vmul.f32 %v3381_v48, %v3368_v18  ;;  %v3383_v6 = vmul.f32 %v3381_v48, %v3369_v49  ;;  %v3384_v35 = vmul.f32 %v3381_v48, %v3370_v15  ;;  %v3385_v36 = vmul.f32 %v3381_v48, %v3371_v0 }
 0x9e7   : > { %v3386_v56 = vmul.f32 %v3381_v48, %v3372_v4  ;;  %v3387_v2 = vmul.f32 %v3381_v48, %v3373_v51  ;;  %v3388_v28 = vmul.f32 %v3381_v48, %v3374_v50  ;;  %v3389_v37 = vmul.f32 %v3381_v48, %v3375_v60  ;;  %v3742_v50 = vld [vmem:[%s7053_s19 + $0x10] sm:$0xff]  ;;  %v3743_v60 = vld [vmem:[%s7053_s19 + $0x18] sm:$0xff] }
 0x9e8   : > { %v3396_v43 = vmul.f32 %v4056_v23, %v3382_v21  ;;  %v3397_v11 = vmul.f32 %v4056_v23, %v3383_v6  ;;  %v3398_v12 = vmul.f32 %v4056_v23, %v3384_v35  ;;  %v3399_v63 = vmul.f32 %v4056_v23, %v3385_v36  ;;  %v3744_v35 = vld [vmem:[%s7053_s19 + $0x20] sm:$0xff]  ;;  %v3745_v36 = vld [vmem:[%s7053_s19 + $0x28] sm:$0xff] }
 0x9e9   : > { %v3400_v7 = vmul.f32 %v4056_v23, %v3386_v56  ;;  %v3401_v59 = vmul.f32 %v4056_v23, %v3387_v2  ;;  %v3402_v34 = vmul.f32 %v4056_v23, %v3388_v28  ;;  %v3403_v44 = vmul.f32 %v4056_v23, %v3389_v37  ;;  %v3746_v37 = vld [vmem:[%s7053_s19 + $0x30] sm:$0xff] }
 0x9ea   : > { %v3410_v14 = vadd.f32 %v4057_v32, %v3396_v43  ;;  %v3411_v8 = vadd.f32 %v4057_v32, %v3397_v11  ;;  %v3412_v17 = vadd.f32 %v4057_v32, %v3398_v12  ;;  %v6633_v40 = vadd.f32 %v4057_v32, %v3399_v63  ;;  %v3747_v43 = vld [vmem:[%s7053_s19 + $0x38] sm:$0xff] }
 0x9eb   : > { %v6635_v52 = vadd.f32 %v4057_v32, %v3400_v7  ;;  %v6637_v62 = vadd.f32 %v4057_v32, %v3401_v59  ;;  %v6639_v16 = vadd.f32 %v4057_v32, %v3402_v34  ;;  %v6645_v22 = vadd.f32 %v4057_v32, %v3403_v44 }
 0x9ec   : > { %v4058_v24 = vmul.f32 -1.442695, %v3410_v14  ;;  %v4059_v20 = vmul.f32 -1.442695, %v3411_v8  ;;  %v4060_v46 = vmul.f32 -1.442695, %v3412_v17  ;;  %v4318_v21 = vpack.c.bf16 %v3743_v60, %v3742_v50 }
 0x9ed   : > { %v4061_v10 = vmul.f32 -1.442695, %v6633_v40  ;;  %v4062_v13 = vmul.f32 -1.442695, %v6635_v52  ;;  %v4063_v25 = vmul.f32 -1.442695, %v6637_v62  ;;  %v4321_v56 = vpack.c.bf16 %v3745_v36, %v3744_v35 }
 0x9ee   : > { %4848 = vpow2.f32 %v4058_v24  ;;  %v4064_v27 = vmul.f32 -1.442695, %v6639_v16  ;;  %v4065_v45 = vmul.f32 -1.442695, %v6645_v22  ;;  %4319 = vmatpush1.bf16.msra.mxu0 %v4318_v21  ;;  %v4324_v34 = vpack.c.bf16 %v3747_v43, %v3746_v37  ;;  %v3754_v35 = vld [vmem:[%s7053_s19 + $0x70] sm:$0xff]  ;;  %v3755_v36 = vld [vmem:[%s7053_s19 + $0x78] sm:$0xff] }
 0x9ef   : > { %4850 = vpow2.f32 %v4059_v20  ;;  %4320 = vmatprep.subr.bf16.mxu0 %v4956_v33  ;;  %v3756_v43 = vld [vmem:[%s7053_s19 + $0x80] sm:$0xff] }
 0x9f0   : > { %4852 = vpow2.f32 %v4060_v46 }
 0x9f1   : > { %4854 = vpow2.f32 %v4061_v10 }
 0x9f2   : > { %4856 = vpow2.f32 %v4062_v13  ;;  %4322 = vmatpush1.bf16.msra.mxu0 %v4321_v56 }
 0x9f3   : > { %4858 = vpow2.f32 %v4063_v25  ;;  %4323 = vmatprep.subr.bf16.mxu0 %v4956_v33 }
 0x9f4   : > { %4860 = vpow2.f32 %v4064_v27 }
 0x9f5   : > { %4862 = vpow2.f32 %v4065_v45 }
 0x9f6   : > { %4325 = vmatpush1.bf16.msra.mxu0 %v4324_v34 }
 0x9f7   : > { %4326 = vmatprep.subr.bf16.mxu0 %v4956_v33 }
 0x9f8   : > { %v4849_v42 = vpop.eup %4848 }
 0x9f9   : > { %v4851_v41 = vpop.eup %4850  ;;  %v3442_v47 = vadd.f32 1.0, %v4849_v42 }
 0x9fa   : > { %v4853_v9 = vpop.eup %4852  ;;  %v3443_v58 = vadd.f32 1.0, %v4851_v41 }
 0x9fb   : > { %v4855_v19 = vpop.eup %4854  ;;  %4864 = vrcp.f32 %v3442_v47  ;;  %v3444_v18 = vadd.f32 1.0, %v4853_v9 }
 0x9fc   : > { %v4857_v48 = vpop.eup %4856  ;;  %4866 = vrcp.f32 %v3443_v58  ;;  %v3445_v49 = vadd.f32 1.0, %v4855_v19  ;;  %v3750_v58 = vld [vmem:[%s7053_s19 + $0x50] sm:$0xff]  ;;  %v3751_v19 = vld [vmem:[%s7053_s19 + $0x58] sm:$0xff] }
 0x9fd   : > { %v4859_v15 = vpop.eup %4858  ;;  %4868 = vrcp.f32 %v3444_v18  ;;  %v3446_v0 = vadd.f32 1.0, %v4857_v48  ;;  %v4330_v48 = vpack.c.bf16 %v3751_v19, %v3750_v58 }
 0x9fe   : > { %v4861_v23 = vpop.eup %4860  ;;  %4870 = vrcp.f32 %v3445_v49  ;;  %v3447_v4 = vadd.f32 1.0, %v4859_v15 }
 0x9ff   : > { %4872 = vrcp.f32 %v3446_v0  ;;  %v3448_v51 = vadd.f32 1.0, %v4861_v23  ;;  %v4863_v6 = vpop.eup %4862  ;;  %v3752_v0 = vld [vmem:[%s7053_s19 + $0x60] sm:$0xff]  ;;  %v3753_v23 = vld [vmem:[%s7053_s19 + $0x68] sm:$0xff] }
 0xa00   : > { %4874 = vrcp.f32 %v3447_v4  ;;  %v3449_v42 = vadd.f32 1.0, %v4863_v6  ;;  %v4333_v50 = vpack.c.bf16 %v3753_v23, %v3752_v0 }
 0xa01   : > { %4876 = vrcp.f32 %v3448_v51 }
 0xa02   : > { %4878 = vrcp.f32 %v3449_v42 }
 0xa05   : > { %v4865_v32 = vpop.eup %4864 }
 0xa06   : > { %v4867_v2 = vpop.eup %4866  ;;  %v3466_v28 = vmul.f32 %v4865_v32, %v3410_v14  ;;  %v4336_v32 = vpack.c.bf16 %v3755_v36, %v3754_v35 }
 0xa07   : > { %v4869_v11 = vpop.eup %4868  ;;  %v3467_v12 = vmul.f32 %v4867_v2, %v3411_v8 }
 0xa08   : > { %v4871_v63 = vpop.eup %4870  ;;  %v6667_v7 = vmul.f32 %v4869_v11, %v3412_v17  ;;  %v3488_v59 = vrot.slane %v3466_v28, 1  ;;  %v3474_v49 = vrot.slane %v3466_v28, 7  ;;  %v3757_v11 = vld [vmem:[%s7053_s19 + $0x88] sm:$0xff] }
 0xa09   : > { %v4873_v24 = vpop.eup %4872  ;;  %v4639_v14 = vpack.i.bf16 %v3467_v12, %v3466_v28  ;;  %v3489_v20 = vrot.slane %v3467_v12, 1  ;;  %v6671_v46 = vmul.f32 %v4871_v63, %v6633_v40  ;;  %v3475_v15 = vrot.slane %v3467_v12, 7 }
 0xa0a   : > { %v4875_v10 = vpop.eup %4874  ;;  %v4644_v13 = vpack.i.bf16 %v6667_v7, %v3467_v12  ;;  %v6675_v44 = vmul.f32 %v4873_v24, %v6635_v52  ;;  %v3495_v8 = vmul.f32 %v3488_v59, %v5278_v53  ;;  %v3476_v51 = vrot.slane %v6667_v7, 7 }
 0xa0b   : > { %v4877_v17 = vpop.eup %4876  ;;  %4640 = vrot.lane.b32.xlu0 %v4639_v14, %s7110_s0  ;;  %4635 = vrot.lane.b32.xlu1 %v4639_v14, %s7119_s6  ;;  %v3496_v25 = vmul.f32 %v3489_v20, %v5278_v53  ;;  %v4654_v27 = vpack.i.bf16 %v6671_v46, %v6667_v7  ;;  %v6686_v45 = vmul.f32 %v4875_v10, %v6637_v62  ;;  %v3748_v62 = vld [vmem:[%s7053_s19 + $0x40] sm:$0xff]  ;;  %v3477_v2 = vrot.slane %v6671_v46, 7 }
 0xa0c   : > { %v4659_v40 = vpack.i.bf16 %v6675_v44, %v6671_v46  ;;  %v6689_v52 = vmul.f32 %v4877_v17, %v6639_v16  ;;  %v3749_v16 = vld [vmem:[%s7053_s19 + $0x48] sm:$0xff]  ;;  %v4879_v4 = vpop.eup %4878  ;;  %v6730_v21 = vmul.f32 %v3474_v49, %v5287_v55  ;;  %v6733_v6 = vmul.f32 %v3475_v15, %v5287_v55 }
 0xa0d   : > { %4067 = vmatprep.mubr.msk.f32.mxu0 %vm1349_vm2, %v3496_v25  ;;  %v4684_v41 = vpack.i.bf16 %v3496_v25, %v3495_v8  ;;  %v4669_v47 = vpack.i.bf16 %v6686_v45, %v6675_v44  ;;  %v4327_v18 = vpack.c.bf16 %v3749_v16, %v3748_v62  ;;  %v6727_v60 = vmul.f32 %v4879_v4, %v6645_v22 }
 0xa0e   : > { %v4674_v9 = vpack.i.bf16 %v6689_v52, %v6686_v45  ;;  %v6747_v22 = vmul.f32 %v3476_v51, %v5287_v55  ;;  %v4679_v56 = vpack.i.bf16 %v6733_v6, %v6730_v21  ;;  %v3490_v28 = vrot.slane %v6667_v7, 1 }
 0xa0f   : > { %4645 = vrot.lane.b32.xlu0 %v4644_v13, %s7124_s10  ;;  %4655 = vrot.lane.b32.xlu1 %v4654_v27, %s7110_s0  ;;  %v3491_v37 = vrot.slane %v6671_v46, 1  ;;  %v4339_v63 = vpack.c.bf16 %v3757_v11, %v3756_v43  ;;  %v6766_v7 = vmul.f32 %v3477_v2, %v5287_v55  ;;  %v3478_v24 = vrot.slane %v6675_v44, 7 }
 0xa10   : > { %4328 = vmatpush1.bf16.msra.mxu0 %v4327_v18  ;;  %v4694_v12 = vpack.i.bf16 %v6747_v22, %v6733_v6  ;;  %v6769_v59 = vmul.f32 %v3490_v28, %v5278_v53  ;;  %v3492_v14 = vrot.slane %v6675_v44, 1  ;;  %v3493_v20 = vrot.slane %v6686_v45, 1 }
 0xa11   : > { %4329 = vmatprep.subr.bf16.mxu0 %v4956_v33  ;;  %v6772_v34 = vmul.f32 %v3491_v37, %v5278_v53  ;;  %v4699_v46 = vpack.i.bf16 %v6766_v7, %v6747_v22  ;;  %v6785_v13 = vmul.f32 %v3478_v24, %v5287_v55  ;;  %v3480_v8 = vrot.slane %v6689_v52, 7 }
 0xa12   : > { %v6791_v44 = vmul.f32 %v3492_v14, %v5278_v53  ;;  %v6797_v25 = vmul.f32 %v3493_v20, %v5278_v53  ;;  %v3494_v62 = vrot.slane %v6689_v52, 1  ;;  %v3504_v19 = vrot.slane %v6727_v60, 1 }
 0xa13   : > { %4650 = vrot.lane.b32.xlu0 %v4654_v27, %s7119_s6  ;;  %4660 = vrot.lane.b32.xlu1 %v4659_v40, %s7124_s10  ;;  %v4704_v10 = vpack.i.bf16 %v6772_v34, %v6769_v59  ;;  %v4714_v17 = vpack.i.bf16 %v6785_v13, %v6766_v7  ;;  %v6809_v42 = vmul.f32 %v3480_v8, %v5287_v55 }
 0xa14   : > { %4331 = vmatpush1.bf16.msra.mxu0 %v4330_v48  ;;  %v4724_v40 = vpack.i.bf16 %v6797_v25, %v6791_v44  ;;  %v6822_v58 = vmul.f32 %v3494_v62, %v5278_v53 }
 0xa15   : > { %4332 = vmatprep.subr.bf16.mxu0 %v4956_v33 }
 0xa17   : > { %4670 = vrot.lane.b32.xlu0 %v4669_v47, %s7110_s0  ;;  %4665 = vrot.lane.b32.xlu1 %v4669_v47, %s7119_s6 }
 0xa18   : > { %4334 = vmatpush1.bf16.msra.mxu0 %v4333_v50 }
 0xa19   : > { %4335 = vmatprep.subr.bf16.mxu0 %v4956_v33 }
 0xa1b   : > { %4675 = vrot.lane.b32.xlu0 %v4674_v9, %s7124_s10  ;;  %3525 = vrot.lane.b32.xlu1 %v6689_v52, %s7110_s0  ;;  %s6983_s0 = scalar_lea.hbm %s7055_s21, %s4081_s28 }
 0xa1c   : > { %4337 = vmatpush1.bf16.msra.mxu0 %v4336_v32 }
 0xa1d   : > { %4338 = vmatprep.subr.bf16.mxu0 %v4956_v33  ;;  %v3479_v33 = vrot.slane %v6686_v45, 7 }
 0xa1f   : > { %3607 = vrot.lane.b32.xlu0 %v6689_v52, %s7119_s6  ;;  %3677 = vrot.lane.b32.xlu1 %v6727_v60, %s7124_s10  ;;  %v6800_v27 = vmul.f32 %v3479_v33, %v5287_v55  ;;  %s4886_s10 = scalar_lea.vmem %s4885_s7, 2048 }
 0xa20   : > { %4340 = vmatpush1.bf16.msra.mxu0 %v4339_v63 }
 0xa21   : > { %v4719_v45 = vpack.i.bf16 %v6800_v27, %v6785_v13  ;;  %v4734_v47 = vpack.i.bf16 %v6809_v42, %v6800_v27 }
 0xa23   : > { %4685 = vrot.lane.b32.xlu1 %v4684_v41, %s7121_s29  ;;  %4680 = vrot.lane.b32.xlu0 %v4679_v56, %s7112_s26 }
 0xa27   : > { %4695 = vrot.lane.b32.xlu1 %v4694_v12, %s7122_s9  ;;  %4690 = vrot.lane.b32.xlu0 %v4684_v41, %s7111_s1  ;;  %v3502_v41 = vrot.slane %v6727_v60, 7 }
 0xa29   : > { %v3503_v9 = vmul.f32 %v3502_v41, %v5287_v55  ;;  %v6832_v55 = vmul.f32 %v3504_v19, %v5278_v53 }
 0xa2b   : > { %4700 = vrot.lane.b32.xlu1 %v4699_v46, %s7112_s26  ;;  %4705 = vrot.lane.b32.xlu0 %v4704_v10, %s7121_s29  ;;  %v4739_v16 = vpack.i.bf16 %v3503_v9, %v6809_v42 }
 0xa2f   : > { %4710 = vrot.lane.b32.xlu1 %v4704_v10, %s7111_s1  ;;  %4715 = vrot.lane.b32.xlu0 %v4714_v17, %s7122_s9 }
 0xa33   : > { %4725 = vrot.lane.b32.xlu1 %v4724_v40, %s7121_s29  ;;  %4720 = vrot.lane.b32.xlu0 %v4719_v45, %s7112_s26 }
 0xa37   : > { %4735 = vrot.lane.b32.xlu1 %v4734_v47, %s7122_s9  ;;  %4730 = vrot.lane.b32.xlu0 %v4724_v40, %s7111_s1 }
 0xa3b   : > { %4740 = vrot.lane.b32.xlu1 %v4739_v16, %s7112_s26  ;;  %3632 = vrot.lane.b32.xlu0 %v6822_v58, %s7121_s29 }
 0xa3f   : > { %3553 = vrot.lane.b32.xlu1 %v6822_v58, %s7111_s1  ;;  %3656 = vrot.lane.b32.xlu0 %v3503_v9, %s7122_s9  ;;  %s647_s1 = sand.u32 1, %s4934_s25  }
 0xa40   : > { %s6992_s3 = scalar_lea.sflag [#allocation3], %s647_s1 }
 0xa43   : > { %3634 = vrot.lane.b32.xlu1 %v6832_v55, %s7121_s29  ;;  %3609 = vrot.lane.b32.xlu0 %v6727_v60, %s7119_s6  ;;  %s3980_s29 = sshll.u32 %s647_s1, 6 }
 0xa44   : > { %s6956_s9 = scalar_lea.vmem [#allocation2], %s3980_s29 }
 0xa45   : > { %s3914_s8 = sshll.u32 %s6956_s9, 4  ;;  %s6986_s8 = int_to_ptr.vmem [resolvable:$true] %s3914_s8 }
 0xa46   : > { %s4880_s30 = scalar_lea.vmem %s6986_s8, 1024  ;;  %p4887_p0 = scmp.lt.s32.totalorder %s6986_s8, %s4885_s7 }
 0xa47   : > { %p4881_p11 = scmp.ne.s32.totalorder %s6986_s8, %s4880_s30  ;;  %p4888_p1 = scmp.lt.s32.totalorder %s4886_s10, %s4880_s30 }
 0xa49   : > { %p4882_p12 = pnand %p4881_p11, %p5110_p5  ;;  %p4889_p2 = por %p4888_p1, %p4887_p0 }
 0xa4b   : > { %p4883_p13 = pneg %p4882_p12 }
 0xa4d   : > { %p4890_p3 = pnand %p4889_p2, %p4883_p13 }
 0xa7d   : > { %v4641_v52 = vpop.permute.xlu0 %4640  ;;  %v4636_v18 = vpop.permute.xlu1 %4635 }
 0xa7e   : > { %v4642_v32 = vunpack.i.l.bf16 %v4641_v52  ;;  %v4637_v2 = vunpack.i.l.bf16 %v4636_v18  ;;  %v4643_v63 = vunpack.i.h.bf16 %v4641_v52  ;;  %v4638_v40 = vunpack.i.h.bf16 %v4636_v18 }
 0xa80   : > { %v3686_v24 = vsel %vm1349_vm2, %v6730_v21, %v4642_v32  ;;  %v3687_v21 = vsel %vm1349_vm2, %v6733_v6, %v4643_v63 }
 0xa81   : > { %v4646_v48 = vpop.permute.xlu0 %4645  ;;  %v6838_v49 = vpop.permute.xlu1 %4655 }
 0xa82   : > { %v4647_v46 = vunpack.i.l.bf16 %v4646_v48  ;;  %v4657_v62 = vunpack.i.l.bf16 %v6838_v49 }
 0xa84   : > { %v3688_v63 = vsel %vm1349_vm2, %v6747_v22, %v4657_v62 }
 0xa85   : > { %v6840_v15 = vpop.permute.xlu0 %4650  ;;  %v6842_v0 = vpop.permute.xlu1 %4660 }
 0xa86   : > { %v4652_v52 = vunpack.i.l.bf16 %v6840_v15 }
 0xa89   : > { %v6844_v23 = vpop.permute.xlu0 %4670  ;;  %v6846_v4 = vpop.permute.xlu1 %4665 }
 0xa8a   : > { %v4667_v62 = vunpack.i.l.bf16 %v6846_v4 }
 0xa8d   : > { %v6848_v53 = vpop.permute.xlu0 %4675  ;;  %v6850_v51 = vpop.permute.xlu1 %3525 }
 0xa91   : > { %v6852_v50 = vpop.permute.xlu0 %3607  ;;  %v6854_v60 = vpop.permute.xlu1 %3677 }
 0xa95   : > { %v4686_v35 = vpop.permute.xlu1 %4685  ;;  %v4681_v36 = vpop.permute.xlu0 %4680 }
 0xa96   : > { %v4682_v56 = vunpack.i.l.bf16 %v4681_v36  ;;  %v4687_v37 = vunpack.i.l.bf16 %v4686_v35  ;;  %v4683_v10 = vunpack.i.h.bf16 %v4681_v36  ;;  %v4688_v16 = vunpack.i.h.bf16 %v4686_v35 }
 0xa98   : > { %v3700_v28 = vsel %vm1385_vm6, %v6027_v38, %v4682_v56  ;;  %v4648_v56 = vunpack.i.h.bf16 %v4646_v48 }
 0xa99   : > { %v3708_v43 = vsel %vm1403_vm8, %v3700_v28, %v4637_v2  ;;  %v4696_v11 = vpop.permute.xlu1 %4695  ;;  %v4691_v12 = vpop.permute.xlu0 %4690  ;;  %v4658_v28 = vunpack.i.h.bf16 %v6838_v49 }
 0xa9a   : > { %v4697_v14 = vunpack.i.l.bf16 %v4696_v11  ;;  %v4692_v20 = vunpack.i.l.bf16 %v4691_v12  ;;  %v4693_v33 = vunpack.i.h.bf16 %v4691_v12  ;;  %v3716_v8 = vsel %vm2127_vm10, %v3708_v43, %v4687_v37 }
 0xa9b   : > { %v4698_v36 = vunpack.i.h.bf16 %v4696_v11 }
 0xa9c   : > { %v3693_v17 = vsel %vm1367_vm4, %v3686_v24, %v4692_v20  ;;  %v3724_v38 = vsel %vm2136_vm11, %v3716_v8, %v4697_v14  ;;  %v3694_v32 = vsel %vm1367_vm4, %v3687_v21, %v4693_v33  ;;  %v4653_v8 = vunpack.i.h.bf16 %v6840_v15 }
 0xa9d   : > { %v3701_v45 = vsel %vm1385_vm6, %v3693_v17, %v4683_v10  ;;  %v4701_v41 = vpop.permute.xlu1 %4700  ;;  %v4706_v47 = vpop.permute.xlu0 %4705  ;;  %v3732_v9 = vsel %vm2145_vm12, %v3724_v38, %v4647_v46 }
 0xa9e   : > { %v4702_v19 = vunpack.i.l.bf16 %v4701_v41  ;;  %3844 = vmatmul.mubr.f32.vlgmr.msra.gmra.mrb[22].mxu0 %v3732_v9  ;;  %v3709_v18 = vsel %vm1403_vm8, %v3701_v45, %v4638_v40  ;;  %v4707_v35 = vunpack.i.l.bf16 %v4706_v47  ;;  %v4703_v14 = vunpack.i.h.bf16 %v4701_v41 }
 0xa9f   : > { %4068 = vmatprep.mubr.msk.f32.mxu0 %vm1349_vm2, %v6769_v59  ;;  %v3717_v6 = vsel %vm2127_vm10, %v3709_v18, %v4688_v16  ;;  %v4662_v59 = vunpack.i.l.bf16 %v6842_v0  ;;  %v3689_v45 = vsel %vm1349_vm2, %v6766_v7, %v4658_v28  ;;  %v4672_v41 = vunpack.i.l.bf16 %v6844_v23 }
 0xaa0   : > { %v3702_v2 = vsel %vm1385_vm6, %v3694_v32, %v4702_v19  ;;  %v3725_v12 = vsel %vm2136_vm11, %v3717_v6, %v4698_v36  ;;  %v4708_v9 = vunpack.i.h.bf16 %v4706_v47  ;;  %v4673_v7 = vunpack.i.h.bf16 %v6844_v23 }
 0xaa1   : > { %v4711_v37 = vpop.permute.xlu1 %4710  ;;  %v4716_v43 = vpop.permute.xlu0 %4715  ;;  %v3710_v11 = vsel %vm1403_vm8, %v3702_v2, %v4652_v52  ;;  %v3733_v46 = vsel %vm2145_vm12, %v3725_v12, %v4648_v56  ;;  %v4677_v6 = vunpack.i.l.bf16 %v6848_v53 }
 0xaa2   : > { %v4712_v24 = vunpack.i.l.bf16 %v4711_v37  ;;  %v4717_v48 = vunpack.i.l.bf16 %v4716_v43  ;;  %v4713_v20 = vunpack.i.h.bf16 %v4711_v37  ;;  %v3718_v49 = vsel %vm2127_vm10, %v3710_v11, %v4707_v35  ;;  %3849 = vmatmul.mubr.f32.gmra.mrb[24].mxu0 %v3733_v46 }
 0xaa3   : > { %4069 = vmatprep.mubr.msk.f32.mxu0 %vm1349_vm2, %v6772_v34  ;;  %v4718_v16 = vunpack.i.h.bf16 %v4716_v43  ;;  %v4663_v34 = vunpack.i.h.bf16 %v6842_v0  ;;  %v3690_v0 = vsel %vm1349_vm2, %v6785_v13, %v4672_v41 }
 0xaa4   : > { %v3695_v10 = vsel %vm1367_vm4, %v3688_v63, %v4712_v24  ;;  %v3726_v33 = vsel %vm2136_vm11, %v3718_v49, %v4717_v48  ;;  %v3696_v15 = vsel %vm1367_vm4, %v3689_v45, %v4713_v20  ;;  %v3691_v20 = vsel %vm1349_vm2, %v6800_v27, %v4673_v7 }
 0xaa5   : > { %v3703_v17 = vsel %vm1385_vm6, %v3695_v10, %v4703_v14  ;;  %v4726_v22 = vpop.permute.xlu1 %4725  ;;  %v4721_v38 = vpop.permute.xlu0 %4720  ;;  %v3734_v40 = vsel %vm2145_vm12, %v3726_v33, %v4662_v59  ;;  %v4678_v10 = vunpack.i.h.bf16 %v6848_v53 }
 0xaa6   : > { %v4722_v21 = vunpack.i.l.bf16 %v4721_v38  ;;  %v3711_v19 = vsel %vm1403_vm8, %v3703_v17, %v4653_v8  ;;  %3854 = vmatmul.mubr.f32.gmra.mrb[26].mxu0 %v3734_v40  ;;  %v4727_v32 = vunpack.i.l.bf16 %v4726_v22  ;;  %v4723_v37 = vunpack.i.h.bf16 %v4721_v38 }
 0xaa7   : > { %v3719_v36 = vsel %vm2127_vm10, %v3711_v19, %v4708_v9  ;;  %4070 = vmatprep.mubr.msk.f32.mxu0 %vm1349_vm2, %v6791_v44  ;;  %v4668_v44 = vunpack.i.h.bf16 %v6846_v4  ;;  %v4728_v59 = vunpack.i.h.bf16 %v4726_v22  ;;  %v3692_v22 = vsel %vm1349_vm2, %v6809_v42, %v6850_v51 }
 0xaa8   : > { %v3704_v52 = vsel %vm1385_vm6, %v3696_v15, %v4722_v21  ;;  %v3727_v56 = vsel %vm2136_vm11, %v3719_v36, %v4718_v16 }
 0xaa9   : > { %v4736_v47 = vpop.permute.xlu1 %4735  ;;  %v4731_v18 = vpop.permute.xlu0 %4730  ;;  %v3712_v2 = vsel %vm1403_vm8, %v3704_v52, %v4667_v62  ;;  %v3735_v23 = vsel %vm2145_vm12, %v3727_v56, %v4663_v34 }
 0xaaa   : > { %v4737_v28 = vunpack.i.l.bf16 %v4736_v47  ;;  %v4732_v35 = vunpack.i.l.bf16 %v4731_v18  ;;  %v4733_v43 = vunpack.i.h.bf16 %v4731_v18  ;;  %v3720_v12 = vsel %vm2127_vm10, %v3712_v2, %v4727_v32  ;;  %3859 = vmatmul.mubr.f32.gmra.mrb[28].mxu0 %v3735_v23 }
 0xaab   : > { %4071 = vmatprep.mubr.msk.f32.mxu0 %vm1349_vm2, %v6797_v25  ;;  %v4738_v46 = vunpack.i.h.bf16 %v4736_v47 }
 0xaac   : > { %v3697_v11 = vsel %vm1367_vm4, %v3690_v0, %v4732_v35  ;;  %v3728_v63 = vsel %vm2136_vm11, %v3720_v12, %v4737_v28  ;;  %v3698_v33 = vsel %vm1367_vm4, %v3691_v20, %v4733_v43 }
 0xaad   : > { %v3705_v13 = vsel %vm1385_vm6, %v3697_v11, %v4723_v37  ;;  %v4741_v24 = vpop.permute.xlu1 %4740  ;;  %v3633_v48 = vpop.permute.xlu0 %3632  ;;  %v3736_v14 = vsel %vm2145_vm12, %v3728_v63, %v4677_v6 }
 0xaae   : > { %v4742_v4 = vunpack.i.l.bf16 %v4741_v24  ;;  %v3713_v49 = vsel %vm1403_vm8, %v3705_v13, %v4668_v44  ;;  %3864 = vmatmul.mubr.f32.gmra.mrb[30].mxu0 %v3736_v14  ;;  %v4743_v9 = vunpack.i.h.bf16 %v4741_v24 }
 0xaaf   : > { %v3721_v8 = vsel %vm2127_vm10, %v3713_v49, %v4728_v59  ;;  %4072 = vmatprep.mubr.msk.f32.mxu0 %vm1349_vm2, %v6822_v58 }
 0xab0   : > { %v3706_v17 = vsel %vm1385_vm6, %v3698_v33, %v4742_v4  ;;  %v3729_v25 = vsel %vm2136_vm11, %v3721_v8, %v4738_v46 }
 0xab1   : > { %v3714_v27 = vsel %vm1403_vm8, %v3706_v17, %v6852_v50  ;;  %v3554_v53 = vpop.permute.xlu1 %3553  ;;  %v3657_v38 = vpop.permute.xlu0 %3656  ;;  %v3737_v40 = vsel %vm2145_vm12, %v3729_v25, %v4678_v10 }
 0xab2   : > { %v3722_v45 = vsel %vm2127_vm10, %v3714_v27, %v3633_v48  ;;  %v3699_v41 = vsel %vm1367_vm4, %v3692_v22, %v3554_v53  ;;  %3869 = vmatmul.mubr.f32.gmra.mrb[32].mxu0 %v3737_v40 }
 0xab3   : > { %v3730_v21 = vsel %vm2136_vm11, %v3722_v45, %v3657_v38  ;;  %4073 = vmatprep.mubr.msk.f32.mxu0 %vm1349_vm2, %v6832_v55  ;;  %v3707_v58 = vsel %vm1385_vm6, %v3699_v41, %v4743_v9 }
 0xab4   : > { %v3738_v50 = vsel %vm2145_vm12, %v3730_v21, %v6854_v60  ;;  %v4066_v60 = vld [vmem:[%s7054_s20] ss:$0 sm:$0xff] }
 0xab5   : > { %v3635_v42 = vpop.permute.xlu1 %3634  ;;  %v3610_v51 = vpop.permute.xlu0 %3609 }
 0xab6   : > { %v3715_v62 = vsel %vm1403_vm8, %v3707_v58, %v3610_v51  ;;  %3874 = vmatmul.mubr.f32.gmra.mrb[34].mxu0 %v3738_v50 }
 0xab7   : > { %v3723_v15 = vsel %vm2127_vm10, %v3715_v62, %v3635_v42  ;;  %4074 = vmatprep.mubr.msk.f32.mxu0 %vm1349_vm2, %v5283_v54 }
 0xab8   : > { %v3731_v16 = vsel %vm2136_vm11, %v3723_v15, %v6114_v31 }
 0xab9   : > { %v3739_v55 = vsel %vm2145_vm12, %v3731_v16, %v6119_v61 }
 0xaba   : > { %3879 = vmatmul.mubr.f32.gmra.mrb[36].mxu0 %v3739_v55 }
 0xb71   : > { %v3845_v19 = vpop.f32.mrb[22].mxu0 }
 0xb72   : > { %v3846_v34 = vadd.f32 %v4066_v60, %v3845_v19  ;;  %v3847_v52 = vpop.f32.mrb[23].mxu0 }
 0xb74   : > { %v3884_v36 = vadd.f32 %v3846_v34, %v6129_v39 }
 0xb75   : > { %v3850_v54 = vpop.f32.mrb[24].mxu0 }
 0xb76   : > { %3892 = vst.msk [vmem:[%s6956_s9] sm:$0xff] %vm1349_vm2, %v3884_v36  ;;  %v3851_v31 = vadd.f32 %v4066_v60, %v3850_v54  ;;  %v3852_v61 = vpop.f32.mrb[25].mxu0 }
 0xb78   : > { %v3885_v7 = vadd.f32 %v3851_v31, %v6132_v1 }
 0xb79   : > { %v3855_v32 = vpop.f32.mrb[26].mxu0 }
 0xb7a   : > { %3893 = vst.msk [vmem:[%s6956_s9 + $0x8] sm:$0xff] %vm1349_vm2, %v3885_v7  ;;  %v3856_v47 = vadd.f32 %v4066_v60, %v3855_v32  ;;  %v3857_v18 = vpop.f32.mrb[27].mxu0 }
 0xb7c   : > { %v3886_v39 = vadd.f32 %v3856_v47, %v6135_v3 }
 0xb7d   : > { %v3860_v56 = vpop.f32.mrb[28].mxu0 }
 0xb7e   : > { %3894 = vst.msk [vmem:[%s6956_s9 + $0x10] sm:$0xff] %vm1349_vm2, %v3886_v39  ;;  %v3861_v2 = vadd.f32 %v4066_v60, %v3860_v56  ;;  %v3862_v0 = vpop.f32.mrb[29].mxu0 }
 0xb80   : > { %v3887_v6 = vadd.f32 %v3861_v2, %v6138_v26 }
 0xb81   : > { %v3865_v28 = vpop.f32.mrb[30].mxu0 }
 0xb82   : > { %3895 = vst.msk [vmem:[%s6956_s9 + $0x18] sm:$0xff] %vm1349_vm2, %v3887_v6  ;;  %v3866_v1 = vadd.f32 %v4066_v60, %v3865_v28  ;;  %v3867_v35 = vpop.f32.mrb[31].mxu0 }
 0xb84   : > { %v3888_v37 = vadd.f32 %v3866_v1, %v6149_v5 }
 0xb85   : > { %v3870_v43 = vpop.f32.mrb[32].mxu0 }
 0xb86   : > { %3896 = vst.msk [vmem:[%s6956_s9 + $0x20] sm:$0xff] %vm1349_vm2, %v3888_v37  ;;  %v3871_v3 = vadd.f32 %v4066_v60, %v3870_v43  ;;  %v3872_v23 = vpop.f32.mrb[33].mxu0 }
 0xb88   : > { %v3889_v12 = vadd.f32 %v3871_v3, %v6165_v57 }
 0xb89   : > { %v3875_v26 = vpop.f32.mrb[34].mxu0 }
 0xb8a   : > { %3897 = vst.msk [vmem:[%s6956_s9 + $0x28] sm:$0xff] %vm1349_vm2, %v3889_v12  ;;  %v3876_v44 = vadd.f32 %v4066_v60, %v3875_v26  ;;  %v3877_v11 = vpop.f32.mrb[35].mxu0 }
 0xb8c   : > { %v3890_v63 = vadd.f32 %v3876_v44, %v6176_v29 }
 0xb8d   : > { %v3880_v59 = vpop.f32.mrb[36].mxu0 }
 0xb8e   : > { %3898 = vst.msk [vmem:[%s6956_s9 + $0x30] sm:$0xff] %vm1349_vm2, %v3890_v63  ;;  %v3881_v5 = vadd.f32 %v4066_v60, %v3880_v59  ;;  %v3882_v13 = vpop.f32.mrb[37].mxu0 }
 0xb90   : > { %v3891_v57 = vadd.f32 %v3881_v5, %v6185_v30 }
 0xb92   : > { %3899 = vst.msk [vmem:[%s6956_s9 + $0x38] sm:$0xff] %vm1349_vm2, %v3891_v57 }
 0xb93   : > { %4893 = shalt.err (!%p4890_p3)
}
 0xb94   : > { %s4894_s12 = scalar_lea.hbm %s6983_s0, 1024  ;;  %s4898_s6 = scalar_lea.hbm %s7055_s21, 2048 }
 0xb95   : > { %p4895_p4 = scmp.ne.s32.totalorder %s6983_s0, %s4894_s12  ;;  %p4899_p9 = scmp.lt.u32.totalorder %s6983_s0, %s7055_s21 }
 0xb96   : > { %p4900_p10 = scmp.lt.u32.totalorder %s4898_s6, %s4894_s12  ;;  %p4902_p12 = scmp.lt.u32.totalorder %s4894_s12, %s6983_s0 }
 0xb97   : > { %p4896_p7 = pnand %p4895_p4, %p5110_p5 }
 0xb98   : > { %p4901_p11 = por %p4900_p10, %p4899_p9 }
 0xb99   : > { %p4897_p8 = pneg %p4896_p7 }
 0xb9a   : > { %p4903_p13 = por %p4902_p12, %p4901_p11 }
 0xb9c   : > { %p4904_p0 = pnand %p4903_p13, %p4897_p8 }
 0xb9e   : > { %4907 = shalt.err (!%p4904_p0)
}
 0xb9f   : > { %s4961_s28 = smov 128  }
 0xba0   : > { %4341 = dma.vmem_to_hbm [thread:$0]  (%p5110_p5), %s6986_s8, 1024, %s6983_s0, %s6992_s3, %s4961_s28, %s4961_s28, %s7107_s4  }
 0xba1 PF: > { %p4347_p1 = scmp.ge.s32.totalorder %s4942_s27, 2  ;;  %s3929_s23 = sand.u32 1, %s4930_s2  }
 0xba2   : > { %s3930_s30 = scalar_lea.sflag [#allocation3], %s3929_s23 }
 0xba3   : > { %p4344_p2 = pnand %p4347_p1, %p5114_p6 }
 0xba5   : > { %4925 = dma.done.wait (!%p4344_p2), %s3930_s30, 1024  }
 0xba6   : > { %4927 = vsyncadd (!%p4344_p2), %s3930_s30, 4294966272  ;;  %s7126_s27 = sld [smem:[#allocation6_spill]]  ;;  %s7127_s22 = sld [smem:[#allocation5_spill]] }
 0xba7   : > { %s7128_s26 = sld [smem:[#allocation7_spill]]  ;;  %s7129_s2 = smov %s4934_s25 }
 0xbac   : > { %p31_p3 = scmp.ge.s32.totalorder %s7126_s27, 4   ;;  %s7130_s25 = smov %s7127_s22 }
 0xbae   :  { %33 = sbr.rel (!%p31_p3) target bundleno = 17 (0x11), region = 139 }
 0xbb5   :  { %3935 = vsyncpa [#allocation3], 1 }
 0xbb6   :  { %3937 = vsyncpa [#allocation3 + $0x1], 1 }

</bundles_post_ra>
